<compile_context>
chip_gen: v7x
topology: tpu7x:2x2x1
jax: 0.10.0
libtpu: 0.0.40
codegen_flags: <defaults>
</compile_context>

<pallas_src>
import jax
import jax.numpy as jnp
from jax import lax
from jax.experimental import pallas as pl
from jax.experimental.pallas import tpu as pltpu


# --------------------------------------------------------------------------
# Kernel 1: fused (2-branch) 3x3 conv (pad=1, no bias) + folded BN + ReLU
# --------------------------------------------------------------------------
def _conv3x3_bn_relu_kernel(x_ref, w_ref, scale_ref, bias_ref, out_ref):
    # x_ref:     (1, 1, H, W, Cin)   one branch / one batch element (bf16)
    # w_ref:     (1, 9*Cin, Cout)    im2col-flattened 3x3 weights (bf16)
    # scale_ref: (1, 1, Cout)        folded BN scale (f32)
    # bias_ref:  (1, 1, Cout)        folded BN bias  (f32)
    # out_ref:   (1, 1, H, W, Cout)
    _, _, h, w, cin = x_ref.shape
    cout = out_ref.shape[-1]

    x = x_ref[0, 0]                                         # (H, W, Cin)

    # Build the zero halo in-kernel (no wrapper-level jnp.pad / HBM round trip).
    zrow = jnp.zeros((1, w, cin), x.dtype)
    zcol = jnp.zeros((h + 2, 1, cin), x.dtype)
    xp = jnp.concatenate([zrow, x, zrow], axis=0)           # (H+2, W,   Cin)
    xp = jnp.concatenate([zcol, xp, zcol], axis=1)          # (H+2, W+2, Cin)

    # im2col: one matmul with contraction K = 9*Cin instead of 9 tiny matmuls.
    pieces = []
    for dy in range(3):                                     # leading-axis slices (cheap)
        row = xp[dy:dy + h]                                 # (H, W+2, Cin)
        for dx in range(3):
            pieces.append(row[:, dx:dx + w, :].reshape(h * w, cin))
    patches = jnp.concatenate(pieces, axis=-1)              # (H*W, 9*Cin) bf16

    acc = jnp.dot(patches, w_ref[0],
                  preferred_element_type=jnp.float32)       # (H*W, Cout) f32

    y = acc * scale_ref[0] + bias_ref[0]                    # folded BN affine
    y = jnp.maximum(y, 0.0)                                 # ReLU
    out_ref[...] = y.reshape(1, 1, h, w, cout).astype(out_ref.dtype)


def fused_conv3x3_bn_relu(x_stacked, w_stacked, scale_stacked, bias_stacked):
    """x_stacked: (2,B,H,W,Cin) bf16; w_stacked: (2,9*Cin,Cout) bf16;
    scale/bias: (2,1,Cout) f32.  Returns (2,B,H,W,Cout) bf16."""
    _, b, h, w, cin = x_stacked.shape
    cout = w_stacked.shape[-1]
    return pl.pallas_call(
        _conv3x3_bn_relu_kernel,
        out_shape=jax.ShapeDtypeStruct((2, b, h, w, cout), x_stacked.dtype),
        grid=(2, b),
        in_specs=[
            pl.BlockSpec((1, 1, h, w, cin), lambda g, i: (g, i, 0, 0, 0)),
            pl.BlockSpec((1, 9 * cin, cout), lambda g, i: (g, 0, 0)),
            pl.BlockSpec((1, 1, cout), lambda g, i: (g, 0, 0)),
            pl.BlockSpec((1, 1, cout), lambda g, i: (g, 0, 0)),
        ],
        out_specs=pl.BlockSpec((1, 1, h, w, cout), lambda g, i: (g, i, 0, 0, 0)),
        compiler_params=pltpu.CompilerParams(
            dimension_semantics=("parallel", "parallel")),
    )(x_stacked, w_stacked, scale_stacked, bias_stacked)


# --------------------------------------------------------------------------
# Kernel 2a: channel-attention energy + softmax, tiled reduction over N
#   energy[i,j] = sum_n q[n,i]*kv[n,j] ; attn = softmax(rowmin(E) - E, -1)
# --------------------------------------------------------------------------
def _chan_energy_softmax_kernel(q_ref, kv_ref, attn_ref, acc_ref):
    # q_ref, kv_ref: (1, 1, tn, C) bf16 ; attn_ref: (1, 1, C, C) ; acc_ref: (C, C) f32
    k = pl.program_id(2)

    @pl.when(k == 0)
    def _():
        acc_ref[...] = jnp.zeros_like(acc_ref)

    q = q_ref[0, 0]                                          # (tn, C)
    kv = kv_ref[0, 0]                                        # (tn, C)
    acc_ref[...] += lax.dot_general(
        q, kv, (((0,), (0,)), ((), ())),
        preferred_element_type=jnp.float32)                  # (C, C)

    @pl.when(k == pl.num_programs(2) - 1)
    def _():
        e = acc_ref[...]
        # softmax(max(e)-e) stabilized == softmax(min(e)-e): one reduction saved.
        z = jnp.min(e, axis=-1, keepdims=True) - e
        p = jnp.exp(z)
        attn = p * pl.reciprocal(jnp.sum(p, axis=-1, keepdims=True), approx=True)
        c = attn.shape[0]
        attn_ref[...] = attn.reshape(1, 1, c, c).astype(attn_ref.dtype)


# --------------------------------------------------------------------------
# Kernel 2b: apply attention per N-tile:  out = gamma * (value @ attn^T) + q
# --------------------------------------------------------------------------
def _chan_apply_kernel(gamma_ref, attn_ref, q_ref, kv_ref, out_ref):
    # gamma_ref: (2,) f32 in SMEM ; attn_ref: (1,1,C,C) ; q/kv: (1,1,tn,C)
    a = pl.program_id(0)
    g = gamma_ref[a]                                         # scalar f32 from SMEM

    attn = attn_ref[0, 0]                                    # (C, C) bf16
    q = q_ref[0, 0]                                          # (tn, C)
    kv = kv_ref[0, 0]                                        # (tn, C)

    # out[n, i] = sum_j kv[n, j] * attn[i, j]   (== (attn @ value) in (C,N))
    o = lax.dot_general(kv, attn, (((1,), (1,)), ((), ())),
                        preferred_element_type=jnp.float32)  # (tn, C)
    y = g * o + q.astype(jnp.float32)
    out_ref[...] = y.reshape(out_ref.shape).astype(out_ref.dtype)


def channel_attention_pair(feats_abnc, gammas):
    """feats_abnc: (2, B, N, C) bf16 with index 0 = feat1 (PV), 1 = feat2 (ART).
    gammas: (2,) f32 = [gamma_sc, gamma_pa].
    Returns (2, B, N, C): index 0 = CAM(feat1), 1 = PA(feat1, feat2)."""
    _, b, n, c = feats_abnc.shape
    tn = 128 if (n % 128 == 0) else n                        # N tile (mult. of 8)
    nt = n // tn

    attn = pl.pallas_call(
        _chan_energy_softmax_kernel,
        out_shape=jax.ShapeDtypeStruct((2, b, c, c), feats_abnc.dtype),
        grid=(2, b, nt),
        in_specs=[
            pl.BlockSpec((1, 1, tn, c), lambda a, i, k: (0, i, k, 0)),  # q = feat1
            pl.BlockSpec((1, 1, tn, c), lambda a, i, k: (a, i, k, 0)),  # kv
        ],
        out_specs=pl.BlockSpec((1, 1, c, c), lambda a, i, k: (a, i, 0, 0)),
        scratch_shapes=[pltpu.VMEM((c, c), jnp.float32)],
        compiler_params=pltpu.CompilerParams(
            dimension_semantics=("parallel", "parallel", "arbitrary")),
    )(feats_abnc, feats_abnc)

    out = pl.pallas_call(
        _chan_apply_kernel,
        out_shape=jax.ShapeDtypeStruct((2, b, n, c), feats_abnc.dtype),
        grid=(2, b, nt),
        in_specs=[
            pl.BlockSpec(memory_space=pltpu.MemorySpace.SMEM),            # gammas
            pl.BlockSpec((1, 1, c, c), lambda a, i, k: (a, i, 0, 0)),     # attn
            pl.BlockSpec((1, 1, tn, c), lambda a, i, k: (0, i, k, 0)),    # q (residual)
            pl.BlockSpec((1, 1, tn, c), lambda a, i, k: (a, i, k, 0)),    # value
        ],
        out_specs=pl.BlockSpec((1, 1, tn, c), lambda a, i, k: (a, i, k, 0)),
        compiler_params=pltpu.CompilerParams(
            dimension_semantics=("parallel", "parallel", "parallel")),
    )(gammas, attn, feats_abnc, feats_abnc)
    return out


# --------------------------------------------------------------------------
# FANetHead parameters + forward
# --------------------------------------------------------------------------
def _fold_bn(gamma, beta, mean, var, eps=1e-5):
    scale = gamma / jnp.sqrt(var + eps)
    return scale, beta - mean * scale


def init_fanet_head_params(key, in_channels):
    inter = in_channels // 4
    keys = jax.random.split(key, 8)
    params = {}

    def conv_block(kw, kb, cin, cout, tag):
        w = jax.random.normal(kw, (3, 3, cin, cout), jnp.float32) * 0.1
        bn_gamma = 1.0 + 0.05 * jax.random.normal(kb, (cout,), jnp.float32)
        bn_beta = 0.01 * jnp.arange(cout, dtype=jnp.float32)
        bn_mean = 0.02 * jnp.arange(cout, dtype=jnp.float32)
        bn_var = jnp.ones((cout,), jnp.float32) * 0.9
        scale, bias = _fold_bn(bn_gamma, bn_beta, bn_mean, bn_var)
        params[f"w{tag}"], params[f"s{tag}"], params[f"b{tag}"] = w, scale, bias

    conv_block(keys[0], keys[1], in_channels, inter, "5c")
    conv_block(keys[2], keys[3], in_channels, inter, "5p")
    conv_block(keys[4], keys[5], inter, inter, "51")
    conv_block(keys[6], keys[7], inter, inter, "52")
    # torch initializes CAM/PA gamma to 0; nonzero here so the attention
    # path is actually exercised by the demo.
    params["gamma_sc"] = jnp.float32(0.5)
    params["gamma_pa"] = jnp.float32(0.3)
    return params


@jax.jit
def fanet_head_forward(x_pv, x_art, params):
    """x_pv, x_art: (B, C_in, H, W) NCHW float32. Returns (B, C_in//2, H, W)."""
    b, cin, h, w = x_pv.shape
    ci = params["w5c"].shape[-1]
    n = h * w
    cdt = jnp.bfloat16

    to_nhwc = lambda t: jnp.transpose(t, (0, 2, 3, 1)).astype(cdt)
    x_stacked = jnp.stack([to_nhwc(x_pv), to_nhwc(x_art)], axis=0)  # (2,B,H,W,Cin)

    # Stage 1: feat1 = conv5c(x_pv), feat2 = conv5p(x_art)  (fused branches)
    w1 = jnp.stack([params["w5c"].reshape(9 * cin, ci),
                    params["w5p"].reshape(9 * cin, ci)], axis=0).astype(cdt)
    s1 = jnp.stack([params["s5c"], params["s5p"]], axis=0)[:, None, :]
    b1 = jnp.stack([params["b5c"], params["b5p"]], axis=0)[:, None, :]
    feats = fused_conv3x3_bn_relu(x_stacked, w1, s1, b1)            # (2,B,H,W,Ci)

    # Channel attention in lane-dense (N, C) layout (no (C,N) transposes).
    feats_nc = feats.reshape(2, b, n, ci)
    gammas = jnp.stack([params["gamma_sc"], params["gamma_pa"]]).astype(jnp.float32)
    att = channel_attention_pair(feats_nc, gammas)                  # (2,B,N,Ci)
    att_img = att.reshape(2, b, h, w, ci)                           # 0=sc_feat,1=pa_feat

    # Stage 2: sc_conv = conv51(sc_feat), pa_conv = conv52(pa_feat)  (fused)
    w2 = jnp.stack([params["w51"].reshape(9 * ci, ci),
                    params["w52"].reshape(9 * ci, ci)], axis=0).astype(cdt)
    s2 = jnp.stack([params["s51"], params["s52"]], axis=0)[:, None, :]
    b2 = jnp.stack([params["b51"], params["b52"]], axis=0)[:, None, :]
    convs = fused_conv3x3_bn_relu(att_img, w2, s2, b2)              # (2,B,H,W,Ci)

    # torch.cat([sc_conv, pa_conv], dim=1) in NCHW: single transpose, no concat copy.
    out = jnp.transpose(convs, (1, 0, 4, 2, 3)).reshape(b, 2 * ci, h, w)
    return out.astype(x_pv.dtype)


if __name__ == "__main__":
    key = jax.random.PRNGKey(0)
    k_pv, k_art, k_par = jax.random.split(key, 3)

    B, C_IN, H, W = 2, 32, 16, 16   # inter_channels = 8
    x_pv = jax.random.normal(k_pv, (B, C_IN, H, W), jnp.float32)
    x_art = jax.random.normal(k_art, (B, C_IN, H, W), jnp.float32)
    params = init_fanet_head_params(k_par, C_IN)

    out = fanet_head_forward(x_pv, x_art, params)
    jax.block_until_ready(out)
    assert out.shape == (B, C_IN // 2, H, W), out.shape
    assert bool(jnp.all(jnp.isfinite(out)))
    print("KERNEL_OK")
</pallas_src>

<mosaic_0001>
module attributes {stable_mosaic.version = 11 : i64} {
  func.func @_chan_energy_softmax_kernel(%arg0: i32, %arg1: i32, %arg2: i32, %arg3: memref<1x1x128x8xbf16, #tpu.memory_space<vmem>>, %arg4: memref<1x1x128x8xbf16, #tpu.memory_space<vmem>>, %arg5: memref<1x1x8x8xbf16, #tpu.memory_space<vmem>>, %arg6: memref<8x8xf32, #tpu.memory_space<vmem>>) attributes {dimension_semantics = [#tpu.dimension_semantics<parallel>, #tpu.dimension_semantics<parallel>, #tpu.dimension_semantics<arbitrary>], iteration_bounds = array<i64: 2, 2, 2>, scalar_prefetch = 0 : i64, scratch_operands = 1 : i64, tpu.core_type = #tpu.core_type<tc>, window_params = [{transform_indices = @transform_0, window_bounds = array<i64: 1, 1, 128, 8>}, {transform_indices = @transform_1, window_bounds = array<i64: 1, 1, 128, 8>}, {transform_indices = @transform_2, window_bounds = array<i64: 1, 1, 8, 8>}]} {
    %c0_i32 = arith.constant 0 : i32
    %0 = arith.cmpi eq, %arg2, %c0_i32 : i32
    %1 = arith.extui %0 : i1 to i32
    %c0_i32_0 = arith.constant 0 : i32
    %2 = arith.cmpi ne, %1, %c0_i32_0 : i32
    scf.if %2 {
      %cst_13 = arith.constant 0.000000e+00 : f32
      %14 = vector.broadcast %cst_13 : f32 to vector<8x8xf32>
      %c0_14 = arith.constant 0 : index
      %c0_15 = arith.constant 0 : index
      %15 = vector.load %arg6[%c0_14, %c0_15] : memref<8x8xf32, #tpu.memory_space<vmem>>, vector<8x8xf32>
      tpu.vector_store %arg6[%c0_14, %c0_15], %14 {strides = array<i32>} : memref<8x8xf32, #tpu.memory_space<vmem>>, vector<8x8xf32>,
    } else {
    }
    %c0 = arith.constant 0 : index
    %c0_1 = arith.constant 0 : index
    %c0_2 = arith.constant 0 : index
    %c0_3 = arith.constant 0 : index
    %3 = vector.load %arg3[%c0, %c0_1, %c0_2, %c0_3] : memref<1x1x128x8xbf16, #tpu.memory_space<vmem>>, vector<1x1x128x8xbf16>
    %4 = vector.shape_cast %3 : vector<1x1x128x8xbf16> to vector<128x8xbf16>
    %c0_4 = arith.constant 0 : index
    %c0_5 = arith.constant 0 : index
    %c0_6 = arith.constant 0 : index
    %c0_7 = arith.constant 0 : index
    %5 = vector.load %arg4[%c0_4, %c0_5, %c0_6, %c0_7] : memref<1x1x128x8xbf16, #tpu.memory_space<vmem>>, vector<1x1x128x8xbf16>
    %6 = vector.shape_cast %5 : vector<1x1x128x8xbf16> to vector<128x8xbf16>
    %c0_8 = arith.constant 0 : index
    %c0_9 = arith.constant 0 : index
    %7 = vector.load %arg6[%c0_8, %c0_9] : memref<8x8xf32, #tpu.memory_space<vmem>>, vector<8x8xf32>
    %cst = arith.constant dense<0.000000e+00> : vector<8x8xf32>
    %8 = tpu.matmul %4, %6, %cst {dimension_numbers = #tpu.dot_dimension_numbers<[0], [0], [1], [1], [0, 1, 1, 1], [], []>} : vector<128x8xbf16>, vector<128x8xbf16>, vector<8x8xf32> -> vector<8x8xf32>
    %9 = arith.addf %7, %8 : vector<8x8xf32>
    %c0_10 = arith.constant 0 : index
    %c0_11 = arith.constant 0 : index
    %10 = vector.load %arg6[%c0_10, %c0_11] : memref<8x8xf32, #tpu.memory_space<vmem>>, vector<8x8xf32>
    tpu.vector_store %arg6[%c0_10, %c0_11], %9 {strides = array<i32>} : memref<8x8xf32, #tpu.memory_space<vmem>>, vector<8x8xf32>,
    %c1_i32 = arith.constant 1 : i32
    %11 = arith.cmpi eq, %arg2, %c1_i32 : i32
    %12 = arith.extui %11 : i1 to i32
    %c0_i32_12 = arith.constant 0 : i32
    %13 = arith.cmpi ne, %12, %c0_i32_12 : i32
    scf.if %13 {
      %c0_13 = arith.constant 0 : index
      %c0_14 = arith.constant 0 : index
      %14 = vector.load %arg6[%c0_13, %c0_14] : memref<8x8xf32, #tpu.memory_space<vmem>>, vector<8x8xf32>
      %cst_15 = arith.constant dense<0x7F800000> : vector<8xf32>
      %15 = vector.multi_reduction <minimumf>, %14, %cst_15 [1] : vector<8x8xf32> to vector<8xf32>
      %16 = vector.shape_cast %15 : vector<8xf32> to vector<8x1xf32>
      %17 = vector.broadcast %16 : vector<8x1xf32> to vector<8x8xf32>
      %18 = arith.subf %17, %14 : vector<8x8xf32>
      %19 = math.exp %18 : vector<8x8xf32>
      %cst_16 = arith.constant dense<0.000000e+00> : vector<8xf32>
      %20 = vector.multi_reduction <add>, %19, %cst_16 [1] : vector<8x8xf32> to vector<8xf32>
      %21 = vector.shape_cast %20 : vector<8xf32> to vector<8x1xf32>
      %22 = tpu.reciprocal %21 {approx = true} : vector<8x1xf32> -> vector<8x1xf32>
      %23 = vector.broadcast %22 : vector<8x1xf32> to vector<8x8xf32>
      %24 = arith.mulf %19, %23 : vector<8x8xf32>
      %25 = vector.shape_cast %24 : vector<8x8xf32> to vector<1x1x8x8xf32>
      %26 = arith.truncf %25 : vector<1x1x8x8xf32> to vector<1x1x8x8xbf16>
      %c0_17 = arith.constant 0 : index
      %c0_18 = arith.constant 0 : index
      %c0_19 = arith.constant 0 : index
      %c0_20 = arith.constant 0 : index
      %27 = vector.load %arg5[%c0_17, %c0_18, %c0_19, %c0_20] : memref<1x1x8x8xbf16, #tpu.memory_space<vmem>>, vector<1x1x8x8xbf16>
      tpu.vector_store %arg5[%c0_17, %c0_18, %c0_19, %c0_20], %26 {strides = array<i32>} : memref<1x1x8x8xbf16, #tpu.memory_space<vmem>>, vector<1x1x8x8xbf16>,
    } else {
    }
    return
  }
  func.func @transform_0(%arg0: i32, %arg1: i32, %arg2: i32) -> (i32, i32, i32, i32) {
    %c0_i32 = arith.constant 0 : i32
    %c0_i32_0 = arith.constant 0 : i32
    %c0_i32_1 = arith.constant 0 : i32
    return %c0_i32, %arg1, %arg2, %c0_i32_0 : i32, i32, i32, i32
  }
  func.func @transform_1(%arg0: i32, %arg1: i32, %arg2: i32) -> (i32, i32, i32, i32) {
    %c0_i32 = arith.constant 0 : i32
    %c0_i32_0 = arith.constant 0 : i32
    return %arg0, %arg1, %arg2, %c0_i32 : i32, i32, i32, i32
  }
  func.func @transform_2(%arg0: i32, %arg1: i32, %arg2: i32) -> (i32, i32, i32, i32) {
    %c0_i32 = arith.constant 0 : i32
    %c0_i32_0 = arith.constant 0 : i32
    %c0_i32_1 = arith.constant 0 : i32
    return %arg0, %arg1, %c0_i32, %c0_i32_0 : i32, i32, i32, i32
  }
}

module attributes {stable_mosaic.version = 11 : i64} {
  func.func @_conv3x3_bn_relu_kernel(%arg0: i32, %arg1: i32, %arg2: memref<1x1x16x16x32xbf16, #tpu.memory_space<vmem>>, %arg3: memref<1x288x8xbf16, #tpu.memory_space<vmem>>, %arg4: memref<1x1x8xf32, #tpu.memory_space<vmem>>, %arg5: memref<1x1x8xf32, #tpu.memory_space<vmem>>, %arg6: memref<1x1x16x16x8xbf16, #tpu.memory_space<vmem>>) attributes {dimension_semantics = [#tpu.dimension_semantics<parallel>, #tpu.dimension_semantics<parallel>], iteration_bounds = array<i64: 2, 2>, scalar_prefetch = 0 : i64, scratch_operands = 0 : i64, tpu.core_type = #tpu.core_type<tc>, window_params = [{transform_indices = @transform_0, window_bounds = array<i64: 1, 1, 16, 16, 32>}, {transform_indices = @transform_1, window_bounds = array<i64: 1, 288, 8>}, {transform_indices = @transform_2, window_bounds = array<i64: 1, 1, 8>}, {transform_indices = @transform_3, window_bounds = array<i64: 1, 1, 8>}, {transform_indices = @transform_4, window_bounds = array<i64: 1, 1, 16, 16, 8>}]} {
    %c0 = arith.constant 0 : index
    %c0_0 = arith.constant 0 : index
    %c0_1 = arith.constant 0 : index
    %c0_2 = arith.constant 0 : index
    %c0_3 = arith.constant 0 : index
    %0 = vector.load %arg2[%c0, %c0_0, %c0_1, %c0_2, %c0_3] : memref<1x1x16x16x32xbf16, #tpu.memory_space<vmem>>, vector<1x1x16x16x32xbf16>
    %1 = vector.shape_cast %0 : vector<1x1x16x16x32xbf16> to vector<16x16x32xbf16>
    %cst = arith.constant 0.000000e+00 : bf16
    %2 = vector.broadcast %cst : bf16 to vector<1x16x32xbf16>
    %cst_4 = arith.constant 0.000000e+00 : bf16
    %3 = vector.broadcast %cst_4 : bf16 to vector<18x1x32xbf16>
    %4 = tpu.concatenate %2, %1, %2 in 0 : vector<1x16x32xbf16>, vector<16x16x32xbf16>, vector<1x16x32xbf16> -> vector<18x16x32xbf16>
    %5 = tpu.concatenate %3, %4, %3 in 1 : vector<18x1x32xbf16>, vector<18x16x32xbf16>, vector<18x1x32xbf16> -> vector<18x18x32xbf16>
    %6 = vector.extract_strided_slice %5 {offsets = [0, 0, 0], sizes = [16, 18, 32], strides = [1, 1, 1]} : vector<18x18x32xbf16> to vector<16x18x32xbf16>
    %7 = vector.extract_strided_slice %6 {offsets = [0, 0, 0], sizes = [16, 16, 32], strides = [1, 1, 1]} : vector<16x18x32xbf16> to vector<16x16x32xbf16>
    %8 = vector.shape_cast %7 : vector<16x16x32xbf16> to vector<256x32xbf16>
    %9 = vector.extract_strided_slice %6 {offsets = [0, 1, 0], sizes = [16, 16, 32], strides = [1, 1, 1]} : vector<16x18x32xbf16> to vector<16x16x32xbf16>
    %10 = vector.shape_cast %9 : vector<16x16x32xbf16> to vector<256x32xbf16>
    %11 = vector.extract_strided_slice %6 {offsets = [0, 2, 0], sizes = [16, 16, 32], strides = [1, 1, 1]} : vector<16x18x32xbf16> to vector<16x16x32xbf16>
    %12 = vector.shape_cast %11 : vector<16x16x32xbf16> to vector<256x32xbf16>
    %13 = vector.extract_strided_slice %5 {offsets = [1, 0, 0], sizes = [16, 18, 32], strides = [1, 1, 1]} : vector<18x18x32xbf16> to vector<16x18x32xbf16>
    %14 = vector.extract_strided_slice %13 {offsets = [0, 0, 0], sizes = [16, 16, 32], strides = [1, 1, 1]} : vector<16x18x32xbf16> to vector<16x16x32xbf16>
    %15 = vector.shape_cast %14 : vector<16x16x32xbf16> to vector<256x32xbf16>
    %16 = vector.extract_strided_slice %13 {offsets = [0, 1, 0], sizes = [16, 16, 32], strides = [1, 1, 1]} : vector<16x18x32xbf16> to vector<16x16x32xbf16>
    %17 = vector.shape_cast %16 : vector<16x16x32xbf16> to vector<256x32xbf16>
    %18 = vector.extract_strided_slice %13 {offsets = [0, 2, 0], sizes = [16, 16, 32], strides = [1, 1, 1]} : vector<16x18x32xbf16> to vector<16x16x32xbf16>
    %19 = vector.shape_cast %18 : vector<16x16x32xbf16> to vector<256x32xbf16>
    %20 = vector.extract_strided_slice %5 {offsets = [2, 0, 0], sizes = [16, 18, 32], strides = [1, 1, 1]} : vector<18x18x32xbf16> to vector<16x18x32xbf16>
    %21 = vector.extract_strided_slice %20 {offsets = [0, 0, 0], sizes = [16, 16, 32], strides = [1, 1, 1]} : vector<16x18x32xbf16> to vector<16x16x32xbf16>
    %22 = vector.shape_cast %21 : vector<16x16x32xbf16> to vector<256x32xbf16>
    %23 = vector.extract_strided_slice %20 {offsets = [0, 1, 0], sizes = [16, 16, 32], strides = [1, 1, 1]} : vector<16x18x32xbf16> to vector<16x16x32xbf16>
    %24 = vector.shape_cast %23 : vector<16x16x32xbf16> to vector<256x32xbf16>
    %25 = vector.extract_strided_slice %20 {offsets = [0, 2, 0], sizes = [16, 16, 32], strides = [1, 1, 1]} : vector<16x18x32xbf16> to vector<16x16x32xbf16>
    %26 = vector.shape_cast %25 : vector<16x16x32xbf16> to vector<256x32xbf16>
    %27 = tpu.concatenate %8, %10, %12, %15, %17, %19, %22, %24, %26 in 1 : vector<256x32xbf16>, vector<256x32xbf16>, vector<256x32xbf16>, vector<256x32xbf16>, vector<256x32xbf16>, vector<256x32xbf16>, vector<256x32xbf16>, vector<256x32xbf16>, vector<256x32xbf16> -> vector<256x288xbf16>
    %c0_5 = arith.constant 0 : index
    %c0_6 = arith.constant 0 : index
    %c0_7 = arith.constant 0 : index
    %28 = vector.load %arg3[%c0_5, %c0_6, %c0_7] : memref<1x288x8xbf16, #tpu.memory_space<vmem>>, vector<1x288x8xbf16>
    %29 = vector.shape_cast %28 : vector<1x288x8xbf16> to vector<288x8xbf16>
    %cst_8 = arith.constant dense<0.000000e+00> : vector<256x8xf32>
    %30 = tpu.matmul %27, %29, %cst_8 {dimension_numbers = #tpu.dot_dimension_numbers<[1], [0], [0], [1], [0, 0, 1, 1], [], []>} : vector<256x288xbf16>, vector<288x8xbf16>, vector<256x8xf32> -> vector<256x8xf32>
    %c0_9 = arith.constant 0 : index
    %c0_10 = arith.constant 0 : index
    %c0_11 = arith.constant 0 : index
    %31 = vector.load %arg4[%c0_9, %c0_10, %c0_11] : memref<1x1x8xf32, #tpu.memory_space<vmem>>, vector<1x1x8xf32>
    %32 = vector.shape_cast %31 : vector<1x1x8xf32> to vector<1x8xf32>
    %33 = vector.broadcast %32 : vector<1x8xf32> to vector<256x8xf32>
    %34 = arith.mulf %30, %33 : vector<256x8xf32>
    %c0_12 = arith.constant 0 : index
    %c0_13 = arith.constant 0 : index
    %c0_14 = arith.constant 0 : index
    %35 = vector.load %arg5[%c0_12, %c0_13, %c0_14] : memref<1x1x8xf32, #tpu.memory_space<vmem>>, vector<1x1x8xf32>
    %36 = vector.shape_cast %35 : vector<1x1x8xf32> to vector<1x8xf32>
    %37 = vector.broadcast %36 : vector<1x8xf32> to vector<256x8xf32>
    %38 = arith.addf %34, %37 : vector<256x8xf32>
    %cst_15 = arith.constant 0.000000e+00 : f32
    %39 = vector.broadcast %cst_15 : f32 to vector<256x8xf32>
    %40 = arith.maximumf %38, %39 : vector<256x8xf32>
    %41 = vector.shape_cast %40 : vector<256x8xf32> to vector<1x1x16x16x8xf32>
    %42 = arith.truncf %41 : vector<1x1x16x16x8xf32> to vector<1x1x16x16x8xbf16>
    %c0_16 = arith.constant 0 : index
    %c0_17 = arith.constant 0 : index
    %c0_18 = arith.constant 0 : index
    %c0_19 = arith.constant 0 : index
    %c0_20 = arith.constant 0 : index
    %43 = vector.load %arg6[%c0_16, %c0_17, %c0_18, %c0_19, %c0_20] : memref<1x1x16x16x8xbf16, #tpu.memory_space<vmem>>, vector<1x1x16x16x8xbf16>
    tpu.vector_store %arg6[%c0_16, %c0_17, %c0_18, %c0_19, %c0_20], %42 {strides = array<i32>} : memref<1x1x16x16x8xbf16, #tpu.memory_space<vmem>>, vector<1x1x16x16x8xbf16>,
    return
  }
  func.func @transform_0(%arg0: i32, %arg1: i32) -> (i32, i32, i32, i32, i32) {
    %c0_i32 = arith.constant 0 : i32
    %c0_i32_0 = arith.constant 0 : i32
    %c0_i32_1 = arith.constant 0 : i32
    %c0_i32_2 = arith.constant 0 : i32
    return %arg0, %arg1, %c0_i32, %c0_i32_0, %c0_i32_1 : i32, i32, i32, i32, i32
  }
  func.func @transform_1(%arg0: i32, %arg1: i32) -> (i32, i32, i32) {
    %c0_i32 = arith.constant 0 : i32
    %c0_i32_0 = arith.constant 0 : i32
    %c0_i32_1 = arith.constant 0 : i32
    return %arg0, %c0_i32, %c0_i32_0 : i32, i32, i32
  }
  func.func @transform_2(%arg0: i32, %arg1: i32) -> (i32, i32, i32) {
    %c0_i32 = arith.constant 0 : i32
    %c0_i32_0 = arith.constant 0 : i32
    %c0_i32_1 = arith.constant 0 : i32
    return %arg0, %c0_i32, %c0_i32_0 : i32, i32, i32
  }
  func.func @transform_3(%arg0: i32, %arg1: i32) -> (i32, i32, i32) {
    %c0_i32 = arith.constant 0 : i32
    %c0_i32_0 = arith.constant 0 : i32
    %c0_i32_1 = arith.constant 0 : i32
    return %arg0, %c0_i32, %c0_i32_0 : i32, i32, i32
  }
  func.func @transform_4(%arg0: i32, %arg1: i32) -> (i32, i32, i32, i32, i32) {
    %c0_i32 = arith.constant 0 : i32
    %c0_i32_0 = arith.constant 0 : i32
    %c0_i32_1 = arith.constant 0 : i32
    %c0_i32_2 = arith.constant 0 : i32
    return %arg0, %arg1, %c0_i32, %c0_i32_0, %c0_i32_1 : i32, i32, i32, i32, i32
  }
}

module attributes {stable_mosaic.version = 11 : i64} {
  func.func @_chan_apply_kernel(%arg0: i32, %arg1: i32, %arg2: i32, %arg3: memref<2xf32, #tpu.memory_space<smem>>, %arg4: memref<1x1x8x8xbf16, #tpu.memory_space<vmem>>, %arg5: memref<1x1x128x8xbf16, #tpu.memory_space<vmem>>, %arg6: memref<1x1x128x8xbf16, #tpu.memory_space<vmem>>, %arg7: memref<1x1x128x8xbf16, #tpu.memory_space<vmem>>) attributes {dimension_semantics = [#tpu.dimension_semantics<parallel>, #tpu.dimension_semantics<parallel>, #tpu.dimension_semantics<parallel>], iteration_bounds = array<i64: 2, 2, 2>, scalar_prefetch = 0 : i64, scratch_operands = 0 : i64, tpu.core_type = #tpu.core_type<tc>, window_params = [{transform_indices = @transform_0, window_bounds = array<i64: 2>}, {transform_indices = @transform_1, window_bounds = array<i64: 1, 1, 8, 8>}, {transform_indices = @transform_2, window_bounds = array<i64: 1, 1, 128, 8>}, {transform_indices = @transform_3, window_bounds = array<i64: 1, 1, 128, 8>}, {transform_indices = @transform_4, window_bounds = array<i64: 1, 1, 128, 8>}]} {
    %0 = arith.index_cast %arg0 : i32 to index
    %1 = memref.load %arg3[%0] : memref<2xf32, #tpu.memory_space<smem>>
    %c0 = arith.constant 0 : index
    %c0_0 = arith.constant 0 : index
    %c0_1 = arith.constant 0 : index
    %c0_2 = arith.constant 0 : index
    %2 = vector.load %arg4[%c0, %c0_0, %c0_1, %c0_2] : memref<1x1x8x8xbf16, #tpu.memory_space<vmem>>, vector<1x1x8x8xbf16>
    %3 = vector.shape_cast %2 : vector<1x1x8x8xbf16> to vector<8x8xbf16>
    %c0_3 = arith.constant 0 : index
    %c0_4 = arith.constant 0 : index
    %c0_5 = arith.constant 0 : index
    %c0_6 = arith.constant 0 : index
    %4 = vector.load %arg5[%c0_3, %c0_4, %c0_5, %c0_6] : memref<1x1x128x8xbf16, #tpu.memory_space<vmem>>, vector<1x1x128x8xbf16>
    %5 = vector.shape_cast %4 : vector<1x1x128x8xbf16> to vector<128x8xbf16>
    %c0_7 = arith.constant 0 : index
    %c0_8 = arith.constant 0 : index
    %c0_9 = arith.constant 0 : index
    %c0_10 = arith.constant 0 : index
    %6 = vector.load %arg6[%c0_7, %c0_8, %c0_9, %c0_10] : memref<1x1x128x8xbf16, #tpu.memory_space<vmem>>, vector<1x1x128x8xbf16>
    %7 = vector.shape_cast %6 : vector<1x1x128x8xbf16> to vector<128x8xbf16>
    %cst = arith.constant dense<0.000000e+00> : vector<128x8xf32>
    %8 = tpu.matmul %7, %3, %cst {dimension_numbers = #tpu.dot_dimension_numbers<[1], [1], [0], [0], [0, 0, 1, 0], [], []>} : vector<128x8xbf16>, vector<8x8xbf16>, vector<128x8xf32> -> vector<128x8xf32>
    %9 = vector.broadcast %1 : f32 to vector<128x8xf32>
    %10 = arith.mulf %9, %8 : vector<128x8xf32>
    %11 = arith.extf %5 : vector<128x8xbf16> to vector<128x8xf32>
    %12 = arith.addf %10, %11 : vector<128x8xf32>
    %13 = vector.shape_cast %12 : vector<128x8xf32> to vector<1x1x128x8xf32>
    %14 = arith.truncf %13 : vector<1x1x128x8xf32> to vector<1x1x128x8xbf16>
    %c0_11 = arith.constant 0 : index
    %c0_12 = arith.constant 0 : index
    %c0_13 = arith.constant 0 : index
    %c0_14 = arith.constant 0 : index
    %15 = vector.load %arg7[%c0_11, %c0_12, %c0_13, %c0_14] : memref<1x1x128x8xbf16, #tpu.memory_space<vmem>>, vector<1x1x128x8xbf16>
    tpu.vector_store %arg7[%c0_11, %c0_12, %c0_13, %c0_14], %14 {strides = array<i32>} : memref<1x1x128x8xbf16, #tpu.memory_space<vmem>>, vector<1x1x128x8xbf16>,
    return
  }
  func.func @transform_0(%arg0: i32, %arg1: i32, %arg2: i32) -> i32 {
    %c0_i32 = arith.constant 0 : i32
    %c0_i32_0 = arith.constant 0 : i32
    return %c0_i32 : i32
  }
  func.func @transform_1(%arg0: i32, %arg1: i32, %arg2: i32) -> (i32, i32, i32, i32) {
    %c0_i32 = arith.constant 0 : i32
    %c0_i32_0 = arith.constant 0 : i32
    %c0_i32_1 = arith.constant 0 : i32
    return %arg0, %arg1, %c0_i32, %c0_i32_0 : i32, i32, i32, i32
  }
  func.func @transform_2(%arg0: i32, %arg1: i32, %arg2: i32) -> (i32, i32, i32, i32) {
    %c0_i32 = arith.constant 0 : i32
    %c0_i32_0 = arith.constant 0 : i32
    %c0_i32_1 = arith.constant 0 : i32
    return %c0_i32, %arg1, %arg2, %c0_i32_0 : i32, i32, i32, i32
  }
  func.func @transform_3(%arg0: i32, %arg1: i32, %arg2: i32) -> (i32, i32, i32, i32) {
    %c0_i32 = arith.constant 0 : i32
    %c0_i32_0 = arith.constant 0 : i32
    return %arg0, %arg1, %arg2, %c0_i32 : i32, i32, i32, i32
  }
  func.func @transform_4(%arg0: i32, %arg1: i32, %arg2: i32) -> (i32, i32, i32, i32) {
    %c0_i32 = arith.constant 0 : i32
    %c0_i32_0 = arith.constant 0 : i32
    return %arg0, %arg1, %arg2, %c0_i32 : i32, i32, i32, i32
  }
}

module attributes {stable_mosaic.version = 11 : i64} {
  func.func @_conv3x3_bn_relu_kernel(%arg0: i32, %arg1: i32, %arg2: memref<1x1x16x16x8xbf16, #tpu.memory_space<vmem>>, %arg3: memref<1x72x8xbf16, #tpu.memory_space<vmem>>, %arg4: memref<1x1x8xf32, #tpu.memory_space<vmem>>, %arg5: memref<1x1x8xf32, #tpu.memory_space<vmem>>, %arg6: memref<1x1x16x16x8xbf16, #tpu.memory_space<vmem>>) attributes {dimension_semantics = [#tpu.dimension_semantics<parallel>, #tpu.dimension_semantics<parallel>], iteration_bounds = array<i64: 2, 2>, scalar_prefetch = 0 : i64, scratch_operands = 0 : i64, tpu.core_type = #tpu.core_type<tc>, window_params = [{transform_indices = @transform_0, window_bounds = array<i64: 1, 1, 16, 16, 8>}, {transform_indices = @transform_1, window_bounds = array<i64: 1, 72, 8>}, {transform_indices = @transform_2, window_bounds = array<i64: 1, 1, 8>}, {transform_indices = @transform_3, window_bounds = array<i64: 1, 1, 8>}, {transform_indices = @transform_4, window_bounds = array<i64: 1, 1, 16, 16, 8>}]} {
    %c0 = arith.constant 0 : index
    %c0_0 = arith.constant 0 : index
    %c0_1 = arith.constant 0 : index
    %c0_2 = arith.constant 0 : index
    %c0_3 = arith.constant 0 : index
    %0 = vector.load %arg2[%c0, %c0_0, %c0_1, %c0_2, %c0_3] : memref<1x1x16x16x8xbf16, #tpu.memory_space<vmem>>, vector<1x1x16x16x8xbf16>
    %1 = vector.shape_cast %0 : vector<1x1x16x16x8xbf16> to vector<16x16x8xbf16>
    %cst = arith.constant 0.000000e+00 : bf16
    %2 = vector.broadcast %cst : bf16 to vector<1x16x8xbf16>
    %cst_4 = arith.constant 0.000000e+00 : bf16
    %3 = vector.broadcast %cst_4 : bf16 to vector<18x1x8xbf16>
    %4 = tpu.concatenate %2, %1, %2 in 0 : vector<1x16x8xbf16>, vector<16x16x8xbf16>, vector<1x16x8xbf16> -> vector<18x16x8xbf16>
    %5 = tpu.concatenate %3, %4, %3 in 1 : vector<18x1x8xbf16>, vector<18x16x8xbf16>, vector<18x1x8xbf16> -> vector<18x18x8xbf16>
    %6 = vector.extract_strided_slice %5 {offsets = [0, 0, 0], sizes = [16, 18, 8], strides = [1, 1, 1]} : vector<18x18x8xbf16> to vector<16x18x8xbf16>
    %7 = vector.extract_strided_slice %6 {offsets = [0, 0, 0], sizes = [16, 16, 8], strides = [1, 1, 1]} : vector<16x18x8xbf16> to vector<16x16x8xbf16>
    %8 = vector.shape_cast %7 : vector<16x16x8xbf16> to vector<256x8xbf16>
    %9 = vector.extract_strided_slice %6 {offsets = [0, 1, 0], sizes = [16, 16, 8], strides = [1, 1, 1]} : vector<16x18x8xbf16> to vector<16x16x8xbf16>
    %10 = vector.shape_cast %9 : vector<16x16x8xbf16> to vector<256x8xbf16>
    %11 = vector.extract_strided_slice %6 {offsets = [0, 2, 0], sizes = [16, 16, 8], strides = [1, 1, 1]} : vector<16x18x8xbf16> to vector<16x16x8xbf16>
    %12 = vector.shape_cast %11 : vector<16x16x8xbf16> to vector<256x8xbf16>
    %13 = vector.extract_strided_slice %5 {offsets = [1, 0, 0], sizes = [16, 18, 8], strides = [1, 1, 1]} : vector<18x18x8xbf16> to vector<16x18x8xbf16>
    %14 = vector.extract_strided_slice %13 {offsets = [0, 0, 0], sizes = [16, 16, 8], strides = [1, 1, 1]} : vector<16x18x8xbf16> to vector<16x16x8xbf16>
    %15 = vector.shape_cast %14 : vector<16x16x8xbf16> to vector<256x8xbf16>
    %16 = vector.extract_strided_slice %13 {offsets = [0, 1, 0], sizes = [16, 16, 8], strides = [1, 1, 1]} : vector<16x18x8xbf16> to vector<16x16x8xbf16>
    %17 = vector.shape_cast %16 : vector<16x16x8xbf16> to vector<256x8xbf16>
    %18 = vector.extract_strided_slice %13 {offsets = [0, 2, 0], sizes = [16, 16, 8], strides = [1, 1, 1]} : vector<16x18x8xbf16> to vector<16x16x8xbf16>
    %19 = vector.shape_cast %18 : vector<16x16x8xbf16> to vector<256x8xbf16>
    %20 = vector.extract_strided_slice %5 {offsets = [2, 0, 0], sizes = [16, 18, 8], strides = [1, 1, 1]} : vector<18x18x8xbf16> to vector<16x18x8xbf16>
    %21 = vector.extract_strided_slice %20 {offsets = [0, 0, 0], sizes = [16, 16, 8], strides = [1, 1, 1]} : vector<16x18x8xbf16> to vector<16x16x8xbf16>
    %22 = vector.shape_cast %21 : vector<16x16x8xbf16> to vector<256x8xbf16>
    %23 = vector.extract_strided_slice %20 {offsets = [0, 1, 0], sizes = [16, 16, 8], strides = [1, 1, 1]} : vector<16x18x8xbf16> to vector<16x16x8xbf16>
    %24 = vector.shape_cast %23 : vector<16x16x8xbf16> to vector<256x8xbf16>
    %25 = vector.extract_strided_slice %20 {offsets = [0, 2, 0], sizes = [16, 16, 8], strides = [1, 1, 1]} : vector<16x18x8xbf16> to vector<16x16x8xbf16>
    %26 = vector.shape_cast %25 : vector<16x16x8xbf16> to vector<256x8xbf16>
    %27 = tpu.concatenate %8, %10, %12, %15, %17, %19, %22, %24, %26 in 1 : vector<256x8xbf16>, vector<256x8xbf16>, vector<256x8xbf16>, vector<256x8xbf16>, vector<256x8xbf16>, vector<256x8xbf16>, vector<256x8xbf16>, vector<256x8xbf16>, vector<256x8xbf16> -> vector<256x72xbf16>
    %c0_5 = arith.constant 0 : index
    %c0_6 = arith.constant 0 : index
    %c0_7 = arith.constant 0 : index
    %28 = vector.load %arg3[%c0_5, %c0_6, %c0_7] : memref<1x72x8xbf16, #tpu.memory_space<vmem>>, vector<1x72x8xbf16>
    %29 = vector.shape_cast %28 : vector<1x72x8xbf16> to vector<72x8xbf16>
    %cst_8 = arith.constant dense<0.000000e+00> : vector<256x8xf32>
    %30 = tpu.matmul %27, %29, %cst_8 {dimension_numbers = #tpu.dot_dimension_numbers<[1], [0], [0], [1], [0, 0, 1, 1], [], []>} : vector<256x72xbf16>, vector<72x8xbf16>, vector<256x8xf32> -> vector<256x8xf32>
    %c0_9 = arith.constant 0 : index
    %c0_10 = arith.constant 0 : index
    %c0_11 = arith.constant 0 : index
    %31 = vector.load %arg4[%c0_9, %c0_10, %c0_11] : memref<1x1x8xf32, #tpu.memory_space<vmem>>, vector<1x1x8xf32>
    %32 = vector.shape_cast %31 : vector<1x1x8xf32> to vector<1x8xf32>
    %33 = vector.broadcast %32 : vector<1x8xf32> to vector<256x8xf32>
    %34 = arith.mulf %30, %33 : vector<256x8xf32>
    %c0_12 = arith.constant 0 : index
    %c0_13 = arith.constant 0 : index
    %c0_14 = arith.constant 0 : index
    %35 = vector.load %arg5[%c0_12, %c0_13, %c0_14] : memref<1x1x8xf32, #tpu.memory_space<vmem>>, vector<1x1x8xf32>
    %36 = vector.shape_cast %35 : vector<1x1x8xf32> to vector<1x8xf32>
    %37 = vector.broadcast %36 : vector<1x8xf32> to vector<256x8xf32>
    %38 = arith.addf %34, %37 : vector<256x8xf32>
    %cst_15 = arith.constant 0.000000e+00 : f32
    %39 = vector.broadcast %cst_15 : f32 to vector<256x8xf32>
    %40 = arith.maximumf %38, %39 : vector<256x8xf32>
    %41 = vector.shape_cast %40 : vector<256x8xf32> to vector<1x1x16x16x8xf32>
    %42 = arith.truncf %41 : vector<1x1x16x16x8xf32> to vector<1x1x16x16x8xbf16>
    %c0_16 = arith.constant 0 : index
    %c0_17 = arith.constant 0 : index
    %c0_18 = arith.constant 0 : index
    %c0_19 = arith.constant 0 : index
    %c0_20 = arith.constant 0 : index
    %43 = vector.load %arg6[%c0_16, %c0_17, %c0_18, %c0_19, %c0_20] : memref<1x1x16x16x8xbf16, #tpu.memory_space<vmem>>, vector<1x1x16x16x8xbf16>
    tpu.vector_store %arg6[%c0_16, %c0_17, %c0_18, %c0_19, %c0_20], %42 {strides = array<i32>} : memref<1x1x16x16x8xbf16, #tpu.memory_space<vmem>>, vector<1x1x16x16x8xbf16>,
    return
  }
  func.func @transform_0(%arg0: i32, %arg1: i32) -> (i32, i32, i32, i32, i32) {
    %c0_i32 = arith.constant 0 : i32
    %c0_i32_0 = arith.constant 0 : i32
    %c0_i32_1 = arith.constant 0 : i32
    %c0_i32_2 = arith.constant 0 : i32
    return %arg0, %arg1, %c0_i32, %c0_i32_0, %c0_i32_1 : i32, i32, i32, i32, i32
  }
  func.func @transform_1(%arg0: i32, %arg1: i32) -> (i32, i32, i32) {
    %c0_i32 = arith.constant 0 : i32
    %c0_i32_0 = arith.constant 0 : i32
    %c0_i32_1 = arith.constant 0 : i32
    return %arg0, %c0_i32, %c0_i32_0 : i32, i32, i32
  }
  func.func @transform_2(%arg0: i32, %arg1: i32) -> (i32, i32, i32) {
    %c0_i32 = arith.constant 0 : i32
    %c0_i32_0 = arith.constant 0 : i32
    %c0_i32_1 = arith.constant 0 : i32
    return %arg0, %c0_i32, %c0_i32_0 : i32, i32, i32
  }
  func.func @transform_3(%arg0: i32, %arg1: i32) -> (i32, i32, i32) {
    %c0_i32 = arith.constant 0 : i32
    %c0_i32_0 = arith.constant 0 : i32
    %c0_i32_1 = arith.constant 0 : i32
    return %arg0, %c0_i32, %c0_i32_0 : i32, i32, i32
  }
  func.func @transform_4(%arg0: i32, %arg1: i32) -> (i32, i32, i32, i32, i32) {
    %c0_i32 = arith.constant 0 : i32
    %c0_i32_0 = arith.constant 0 : i32
    %c0_i32_1 = arith.constant 0 : i32
    %c0_i32_2 = arith.constant 0 : i32
    return %arg0, %arg1, %c0_i32, %c0_i32_0, %c0_i32_1 : i32, i32, i32, i32, i32
  }
}

</mosaic_0001>

<bundles_post_ra>
// kernel: fanet_head_forward.5
= control target key start
LH: loop header
LB: loop body
LE: loop exit
PB: predicated region body
PF: predicated region fallthrough
CT: control target
= control target key end

     0   :  { %s783_s9 = smov 0   ;;  %s785_s10 = smov 0   ;;  %s890_s0 = inlined_call_operand.vmem [shape: bf16[2,2,256,8], index: 0, kind: input, shape index: {}, may-alias: {0,1}]   ;;  %s891_s1 = inlined_call_operand.vmem [shape: bf16[2,2,256,8], index: 1, kind: input, shape index: {}, may-alias: {0,1}]   ;;  %s892_s2 = inlined_call_operand.vmem [shape: bf16[2,2,8,8], index: 2, kind: output, shape index: {}]  }
   0x1   :  { %s787_s11 = smov 0   ;;  %s789_s12 = smov 0  }
   0x2   :  { %s791_s13 = smov 0   ;;  %s793_s14 = smov 0  }
   0x3   :  { %s795_s15 = smov 0  }
   0x4 LB: > { %s24_s16 = sadd.s32 1, %s751_s12  ;;  %s27_s17 = sadd.s32 1, %s755_s13  ;;  %s763_s15 = sphi %s795_s15, %s12_s15   ;;  %s759_s14 = sphi %s793_s14, %s898_s14   ;;  %s755_s13 = sphi %s791_s13, %s897_s13   ;;  %s751_s12 = sphi %s789_s12, %s896_s12   ;;  %s747_s11 = sphi %s787_s11, %s895_s11   ;;  %s743_s10 = sphi %s785_s10, %s894_s10   ;;  %s739_s9 = sphi %s783_s9, %s893_s9  }
   0x5   : > { %p25_p0 = scmp.ge.s32.totalorder %s24_s16, 2  ;;  %p571_p1 = scmp.ge.s32.totalorder %s763_s15, 1 }
   0x6   : > { %p163_p2 = scmp.lt.s32.totalorder %s763_s15, 9  ;;  %s31_s18 = sadd.s32 1, %s759_s14 }
   0x7   : > { %s900_s16 = smov (%p25_p0, %s24_s16), 0  ;;  %s902_s17 = smov (!%p25_p0, %s27_s17), %s755_s13 }
   0x8   : > { %p164_p3 = pnand %p571_p1, %p163_p2  ;;  %p29_p4 = scmp.ge.s32.totalorder %s902_s17, 2 }
   0x9   : > { %s572_s19 = sshll.u32 (!%p164_p3), %s739_s9, 4  ;;  %p206_p6 = scmp.lt.s32.totalorder (!%p164_p3), %s743_s10, 1 }
   0xa   : > { %s904_s17 = smov (%p29_p4, %s902_s17), 0  ;;  %s906_s18 = smov (!%p29_p4, %s31_s18), %s759_s14 }
   0xb   : > { %p33_p5 = scmp.ge.s32.totalorder %s906_s18, 2  ;;  %167 = sbr.rel (%p164_p3) target bundleno = 675 (0x2a3), region = 28 }
   0xc   : > { %p208_p7 = scmp.lt.s32.totalorder (!%p164_p3), %s572_s19, 31  ;;  %p216_p8 = scmp.lt.s32.totalorder (!%p164_p3), %s747_s11, 1 }
   0xd   : > { %s908_s18 = smov (%p33_p5, %s906_s18), 0  ;;  %p581_p9 = scmp.ne.s32.totalorder (!%p164_p3), %s739_s9, 0 }
  0x12   : > { %s910_s10 = smov (!%p206_p6, %s743_s10), 1  ;;  %s912_s19 = smov (!%p208_p7, %s572_s19), 31 }
  0x13   : > { %s573_s20 = sshll.u32 %s910_s10, 5  ;;  %s914_s11 = smov (!%p216_p8, %s747_s11), 1  ;;  %vm242_vm0 = vcmask (!%p581_p9), 64512   ;;  %v765_v0 = vmov (!%p581_p9), 0.0  }
  0x14   : > { %s211_s21 = sadd.s32 %s573_s20, %s912_s19  ;;  %s577_s26 = sshll.u32 %s914_s11, 6  ;;  %243 = vst.msk [vmem:[#allocation2] sm:$0xff] (!%p581_p9), %vm242_vm0, %v765_v0 }
  0x15   : > { %s574_s22 = sshll.u32 %s211_s21, 2  ;;  %s579_s27 = sshll.u32 %s914_s11, 1 }
  0x16   : > { %s834_s25 = scalar_lea.vmem %s890_s0, %s574_s22  ;;  %s225_s28 = sadd.s32 %s577_s26, %s211_s21 }
  0x17   : > { %s234_s29 = sadd.s32 %s579_s27, %s910_s10  ;;  %s578_s30 = sshll.u32 %s225_s28, 2 }
  0x18   : > { %s580_s3 = sshll.u32 %s234_s29, 2  ;;  %s840_s6 = scalar_lea.vmem %s891_s1, %s578_s30 }
  0x19   : > { %s845_s19 = scalar_lea.vmem %s892_s2, %s580_s3  ;;  %241 = sbr.rel (%p581_p9) target bundleno = 32 (0x20), region = 32 }
  0x20 PF: > { %v689_v1 = vld [vmem:[%s834_s25] sm:$0xff]   ;;  %v766_v2 = vmov 0.0   ;;  %v690_v3 = vld [vmem:[%s834_s25 + $0x8] sm:$0xff]   ;;  %vm767_vm1 = vmmov 0   ;;  %v691_v4 = vld [vmem:[%s834_s25 + $0x10] sm:$0xff]   ;;  %vm430_vm2 = vcmask 64512  }
  0x21   : > { %610 = vmatprep.subr.bf16.mxu0 %v766_v2  ;;  %325 = vxpose.xlu0.c.b16.start [1/8] (narrow) %v689_v1, 16  ;;  %v697_v5 = vld [vmem:[%s840_s6] sm:$0xff]   ;;  %v692_v6 = vld [vmem:[%s834_s25 + $0x18] sm:$0xff]   ;;  %v698_v7 = vld [vmem:[%s840_s6 + $0x8] sm:$0xff]   ;;  %p598_p10 = scmp.ne.s32.totalorder %s739_s9, 1 }
  0x22   : > { %626 = vmatprep.mubr.msk.bf16.mxu0 %vm767_vm1, %v766_v2  ;;  %611 = vmatpush3.bf16.msra.mxu0 %v697_v5  ;;  %v693_v8 = vld [vmem:[%s834_s25 + $0x20] sm:$0xff]   ;;  %v699_v9 = vld [vmem:[%s840_s6 + $0x10] sm:$0xff]   ;;  %v694_v10 = vld [vmem:[%s834_s25 + $0x28] sm:$0xff]   ;;  %vm449_vm3 = vcmask (!%p598_p10), 60416  }
  0x23   : > { %612 = vmatprep.subr.bf16.mxu0 %v766_v2  ;;  %v700_v11 = vld [vmem:[%s840_s6 + $0x18] sm:$0xff]   ;;  %v695_v12 = vld [vmem:[%s834_s25 + $0x30] sm:$0xff]   ;;  %v701_v13 = vld [vmem:[%s840_s6 + $0x20] sm:$0xff]  }
  0x24   : > { %v696_v14 = vld [vmem:[%s834_s25 + $0x38] sm:$0xff]   ;;  %v702_v15 = vld [vmem:[%s840_s6 + $0x28] sm:$0xff]   ;;  %v703_v16 = vld [vmem:[%s840_s6 + $0x30] sm:$0xff]  }
  0x25   : > { %326 = vxpose.xlu0.c.b16.cont [2/8] (narrow) %v690_v3, 16  ;;  %v704_v17 = vld [vmem:[%s840_s6 + $0x38] sm:$0xff]   ;;  %v276_v19 = vld [vmem:[#allocation2] sm:$0xff] }
  0x26   : > { %613 = vmatpush3.bf16.msra.mxu0 %v698_v7 }
  0x27   : > { %614 = vmatprep.subr.bf16.mxu0 %v766_v2 }
  0x29   : > { %327 = vxpose.xlu0.c.b16.cont [3/8] (narrow) %v691_v4, 16 }
  0x2a   : > { %615 = vmatpush3.bf16.msra.mxu0 %v699_v9 }
  0x2b   : > { %616 = vmatprep.subr.bf16.mxu0 %v766_v2 }
  0x2d   : > { %328 = vxpose.xlu0.c.b16.cont [4/8] (narrow) %v692_v6, 16 }
  0x2e   : > { %617 = vmatpush3.bf16.msra.mxu0 %v700_v11 }
  0x2f   : > { %618 = vmatprep.subr.bf16.mxu0 %v766_v2 }
  0x31   : > { %329 = vxpose.xlu0.c.b16.cont [5/8] (narrow) %v693_v8, 16 }
  0x32   : > { %619 = vmatpush3.bf16.msra.mxu0 %v701_v13 }
  0x33   : > { %620 = vmatprep.subr.bf16.mxu0 %v766_v2 }
  0x35   : > { %330 = vxpose.xlu0.c.b16.cont [6/8] (narrow) %v694_v10, 16 }
  0x36   : > { %621 = vmatpush3.bf16.msra.mxu0 %v702_v15 }
  0x37   : > { %622 = vmatprep.subr.bf16.mxu0 %v766_v2 }
  0x39   : > { %331 = vxpose.xlu0.c.b16.cont [7/8] (narrow) %v695_v12, 16 }
  0x3a   : > { %623 = vmatpush3.bf16.msra.mxu0 %v703_v16 }
  0x3b   : > { %624 = vmatprep.subr.bf16.mxu0 %v766_v2 }
  0x3d   : > { %332 = vxpose.xlu0.c.b16.end [8/8] (narrow) %v696_v14, 16 }
  0x3e   : > { %625 = vmatpush3.bf16.msra.mxu0 %v704_v17 }
  0x87   : > { %v333_v18 = vpop.trf.xlu0 }
  0x88   : > { %627 = vmatmul.mubr.bf16.vlgmr.msra.gmra.mrb[0].mxu0 %v333_v18 }
 0x158   : > { %435 = sbr.rel (%p598_p10) target bundleno = 675 (0x2a3), region = 36 }
 0x15b   : > { %v423_v20 = vpop.f32.mrb[0].mxu0 }
 0x15c   : > { %v429_v21 = vadd.f32 %v423_v20, %v276_v19  ;;  %v628_v22 = vpop.f32.mrb[1].mxu0 }
 0x15d   : > { %v426_v23 = vpop.f32.mrb[2].mxu0 }
 0x15e   : > { %431 = vst.msk [vmem:[#allocation2] sm:$0xff] %vm430_vm2, %v429_v21  ;;  %v629_v24 = vpop.f32.mrb[3].mxu0 }
 0x165   : > { %v436_v25 = vld [vmem:[#allocation2] sm:$0xff] }
 0x166   : > { %v437_v26 = vsel %vm430_vm2, %v436_v25, inf }
 0x167   : > { %438 = vmin.xlane.f32.xlu0 %v437_v26 }
 0x1f4   : > { %v439_v27 = vpop.xlane.xlu0 %438 }
 0x1f5   : > { %v440_v28 = vsub.f32 %v439_v27, %v436_v25 }
 0x1f7   : > { %v441_v29 = vmul.f32 1.442695, %v440_v28 }
 0x1f9   : > { %705 = vpow2.f32 %v441_v29 }
 0x203   : > { %v706_v30 = vpop.eup %705 }
 0x204   : > { %v443_v31 = vsel %vm430_vm2, %v706_v30, 0.0 }
 0x205   : > { %444 = vadd.xlane.f32.xlu0 %v443_v31 }
 0x292   : > { %v445_v32 = vpop.xlane.xlu0 %444 }
 0x293   : > { %707 = vrcp.f32 %v445_v32 }
 0x29d   : > { %v708_v33 = vpop.eup %707 }
 0x29e   : > { %v447_v34 = vmul.f32 %v708_v33, %v706_v30 }
 0x2a0   : > { %v448_v35 = vpack.c.bf16 %v447_v34, %v447_v34 }
 0x2a2   : > { %450 = vst.msk [vmem:[%s845_s19] sm:$0xf] %vm449_vm3, %v448_v35 }
 0x2a3 PF: > { %s12_s15 = sadd.s32 1, %s763_s15   ;;  %s893_s9 = smov %s751_s12 }
 0x2a4   : > { %p9_p11 = scmp.ge.s32.totalorder %s12_s15, 10   ;;  %s894_s10 = smov %s755_s13 }
 0x2a5   : > { %s895_s11 = smov %s759_s14  ;;  %s896_s12 = smov %s900_s16 }
 0x2a6   : > { %s897_s13 = smov %s904_s17  ;;  %s898_s14 = smov %s908_s18 }
 0x2a7   :  { %11 = sbr.rel (!%p9_p11) target bundleno = 4 (0x4), region = 69 }

// kernel: fanet_head_forward.6
= control target key start
LH: loop header
LB: loop body
LE: loop exit
PB: predicated region body
PF: predicated region fallthrough
CT: control target
= control target key end

     0   :  { %9 = vsyncpa [#allocation3], 0  ;;  %s1161_s15 = smov 0   ;;  %s1163_s16 = smov 0   ;;  %s1350_s0 = inlined_call_operand.vmem [shape: f32[2], index: 0, kind: input, shape index: {}]   ;;  %s1351_s1 = inlined_call_operand.vmem [shape: bf16[2,2,8,8], index: 1, kind: input, shape index: {}]   ;;  %s1352_s2 = inlined_call_operand.vmem [shape: bf16[2,2,256,8], index: 2, kind: input, shape index: {}, may-alias: {2,3}]   ;;  %s1353_s3 = inlined_call_operand.vmem [shape: bf16[2,2,256,8], index: 3, kind: input, shape index: {}, may-alias: {2,3}]   ;;  %s1354_s4 = inlined_call_operand.vmem [shape: bf16[2,2,256,8], index: 4, kind: output, shape index: {}]  }
   0x1   :  { %s1165_s17 = smov 0   ;;  %s1167_s18 = smov 0  }
   0x2   :  { %s1169_s19 = smov 0   ;;  %s1171_s20 = smov 0  }
   0x3   :  { %s1173_s21 = smov 0  }
   0x4 LB: > { %s845_s22 = sadd.s32 4294967295, %s1133_s21   ;;  %s27_s23 = sadd.s32 1, %s1121_s18  ;;  %s1133_s21 = sphi %s1173_s21, %s15_s21   ;;  %s1129_s20 = sphi %s1171_s20, %s1362_s20   ;;  %s1125_s19 = sphi %s1169_s19, %s1361_s19   ;;  %s1121_s18 = sphi %s1167_s18, %s1360_s18   ;;  %s1117_s17 = sphi %s1165_s17, %s1359_s17   ;;  %s1113_s16 = sphi %s1163_s16, %s1358_s16   ;;  %s1109_s15 = sphi %s1161_s15, %s1357_s15  }
   0x5   : > { %p28_p0 = scmp.ge.s32.totalorder %s27_s23, 2  ;;  %s30_s24 = sadd.s32 1, %s1125_s19 }
   0x6   : > { %s34_s25 = sadd.s32 1, %s1129_s20  ;;  %p847_p1 = scmp.ge.s32.totalorder %s1133_s21, 1 }
   0x7   : > { %s1364_s23 = smov (%p28_p0, %s27_s23), 0  ;;  %s1366_s24 = smov (!%p28_p0, %s30_s24), %s1125_s19 }
   0x8   : > { %p176_p2 = scmp.lt.s32.totalorder %s1133_s21, 9  ;;  %p32_p3 = scmp.ge.s32.totalorder %s1366_s24, 2 }
   0x9   : > { %p1205_p4 = scmp.eq.s32.totalorder %s845_s22, 0  ;;  %s189_s30 = sshll.u32 %s1350_s0, 4  ;;  %s190_s30 = int_to_ptr.vmem [resolvable:$true] %s189_s30 }
   0xa   : > { %p1209_p5 = pnand %p847_p1, %p176_p2  ;;  %s1368_s24 = smov (%p32_p3, %s1366_s24), 0 }
   0xb   : > { %s1370_s25 = smov (!%p32_p3, %s34_s25), %s1129_s20  ;;  %s1060_s5 = scalar_lea.vmem %s190_s30, 16 }
   0xc   : > { %p989_p6 = pneg %p1209_p5  ;;  %p36_p7 = scmp.ge.s32.totalorder %s1370_s25, 2 }
   0xd   : > { %p1061_p9 = scmp.ne.s32.totalorder %s190_s30, %s1060_s5  ;;  %p1068_p13 = scmp.lt.s32.totalorder %s190_s30, %s190_s30 }
   0xe   : > { %p990_p8 = pnand %p1205_p4, %p989_p6  ;;  %s1372_s25 = smov (%p36_p7, %s1370_s25), 0 }
   0xf   : > { %p1069_p0 = scmp.lt.s32.totalorder %s1060_s5, %s1060_s5 }
  0x10   : > { %p1062_p10 = pneg %p990_p8 }
  0x11   : > { %p1070_p1 = por %p1069_p0, %p1068_p13 }
  0x12   : > { %p1063_p11 = pnand %p1062_p10, %p1061_p9 }
  0x14   : > { %p1064_p12 = pneg %p1063_p11 }
  0x16   : > { %p1071_p2 = pnand %p1070_p1, %p1064_p12 }
  0x18   : > { %1074 = shalt.err (!%p1071_p2)
}
  0x19   : > { %s1135_s6 = smov [#allocation2]   ;;  %243 = sbr.rel (%p1209_p5) target bundleno = 282 (0x11a), region = 36 }
  0x1a   : > { %992 = dma.vmem_to_smem (!%p990_p8), %s190_s30, 16, %s1135_s6, [#allocation3]  }
  0x20   : > { %1104 = dma.done.wait (%p1205_p4), [#allocation3], 16  }
  0x21   : > { %1106 = vsyncadd (%p1205_p4), [#allocation3], 4294967280 }
  0x22   : > { %249 = sfence }
  0x23   : > { %p303_p3 = scmp.lt.s32.totalorder %s1117_s17, 1  ;;  %p305_p6 = scmp.lt.s32.totalorder %s1113_s16, 1  ;;  %vm424_vm0 = vcmask 64512   ;;  %vm662_vm1 = vcmask 60416  }
  0x24   : > { %s854_s7 = sshll.u32 %s1109_s15, 4  ;;  %s350_s6 = sld [smem:[#allocation2 + %s1117_s17]] }
  0x25   : > { %s304_s8 = scalar_select %p303_p3, %s1117_s17, 1 }
  0x26   : > { %s1374_s16 = smov (!%p305_p6, %s1113_s16), 1  ;;  %p314_p7 = scmp.lt.s32.totalorder %s854_s7, 31 }
  0x27   : > { %s852_s9 = sshll.u32 %s304_s8, 1  ;;  %s855_s12 = sshll.u32 %s1374_s16, 5 }
  0x28   : > { %s308_s10 = sadd.s32 %s852_s9, %s1374_s16  ;;  %s859_s26 = sshll.u32 %s304_s8, 6 }
  0x29   : > { %s853_s11 = sshll.u32 %s308_s10, 2  ;;  %s1376_s7 = smov (!%p314_p7, %s854_s7), 31 }
  0x2a   : > { %s310_s22 = scalar_lea.vmem %s1351_s1, %s853_s11  ;;  %s317_s15 = sadd.s32 %s855_s12, %s1376_s7  ;;  %v1267_v13 = vstv %s350_s6 }
  0x2b   : > { %v351_v0 = vld [vmem:[%s310_s22] sm:$0xf]  ;;  %s1242_s27 = sadd.s32 %s859_s26, %s317_s15  ;;  %s856_s5 = sshll.u32 %s317_s15, 2 }
  0x2c   : > { %983 = vmatprep.subr.msk.bf16.mxu0 %vm424_vm0, %v351_v0  ;;  %984 = vmatprep.subr.msk.bf16.mxu1 %vm424_vm0, %v351_v0  ;;  %v450_v1 = vsel %vm424_vm0, %v351_v0, 0  ;;  %s860_s16 = sshll.u32 %s1242_s27, 2  ;;  %s1262_s9 = scalar_lea.vmem %s1352_s2, %s856_s5 }
  0x2d   : > { %964 = vmatpush3.bf16.xpose.msra.mxu0 %v450_v1  ;;  %982 = vmatpush3.bf16.xpose.msra.mxu1 %v450_v1  ;;  %s333_s30 = scalar_lea.vmem %s1353_s3, %s860_s16  ;;  %v947_v10 = vld [vmem:[%s1262_s9 + $0x8] sm:$0xff]   ;;  %v916_v12 = vld [vmem:[%s1262_s9] sm:$0xff]   ;;  %s1280_s11 = scalar_lea.vmem %s1354_s4, %s860_s16  ;;  %v949_v41 = vld [vmem:[%s1262_s9 + $0x18] sm:$0xff]  }
  0x2e   : > { %v1052_v2 = vld [vmem:[%s333_s30] sm:$0xff]   ;;  %v1054_v4 = vld [vmem:[%s333_s30 + $0x8] sm:$0xff]   ;;  %v1056_v6 = vld [vmem:[%s333_s30 + $0x10] sm:$0xff]   ;;  %v921_v15 = vunpack.c.l.bf16 %v947_v10  ;;  %v917_v18 = vunpack.c.l.bf16 %v916_v12  ;;  %v922_v23 = vunpack.c.h.bf16 %v947_v10  ;;  %v918_v29 = vunpack.c.h.bf16 %v916_v12 }
  0x2f   : > { %v1053_v3 = vld [vmem:[%s333_s30 + $0x20] sm:$0xff]   ;;  %965 = vmatprep.mubr.msk.bf16.mxu0 %vm424_vm0, %v1052_v2  ;;  %v1055_v5 = vld [vmem:[%s333_s30 + $0x28] sm:$0xff]   ;;  %v1057_v7 = vld [vmem:[%s333_s30 + $0x30] sm:$0xff]   ;;  %v929_v56 = vunpack.c.l.bf16 %v949_v41 }
  0x30   : > { %973 = vmatprep.mubr.msk.bf16.mxu1 %vm424_vm0, %v1053_v3  ;;  %v1058_v8 = vld [vmem:[%s333_s30 + $0x18] sm:$0xff]   ;;  %v951_v11 = vld [vmem:[%s1262_s9 + $0x28] sm:$0xff]   ;;  %v950_v14 = vld [vmem:[%s1262_s9 + $0x20] sm:$0xff]   ;;  %v930_v3 = vunpack.c.h.bf16 %v949_v41 }
  0x31   : > { %v1059_v9 = vld [vmem:[%s333_s30 + $0x38] sm:$0xff]   ;;  %v937_v17 = vunpack.c.l.bf16 %v951_v11  ;;  %v933_v22 = vunpack.c.l.bf16 %v950_v14  ;;  %v938_v24 = vunpack.c.h.bf16 %v951_v11  ;;  %v934_v35 = vunpack.c.h.bf16 %v950_v14  ;;  %v948_v47 = vld [vmem:[%s1262_s9 + $0x10] sm:$0xff]  }
  0x32   : > { %v953_v46 = vld [vmem:[%s1262_s9 + $0x38] sm:$0xff]   ;;  %v952_v52 = vld [vmem:[%s1262_s9 + $0x30] sm:$0xff]   ;;  %v925_v61 = vunpack.c.l.bf16 %v948_v47 }
  0x33   : > { %v945_v60 = vunpack.c.l.bf16 %v953_v46  ;;  %v941_v2 = vunpack.c.l.bf16 %v952_v52 }
  0x34   : > { %966 = vmatmul.mubr.msk.bf16.vlgmr.msra.gmra.mrb[0].mxu0 %vm424_vm0, %v1054_v4  ;;  %974 = vmatmul.mubr.msk.bf16.vlgmr.msra.gmra.mrb[0].mxu1 %vm424_vm0, %v1055_v5 }
  0x35   : > { %969 = vmatprep.mubr.msk.bf16.mxu0 %vm424_vm0, %v1056_v6  ;;  %977 = vmatprep.mubr.msk.bf16.mxu1 %vm424_vm0, %v1057_v7 }
  0x3c   : > { %970 = vmatmul.mubr.msk.bf16.gmra.mrb[4].mxu0 %vm424_vm0, %v1058_v8  ;;  %978 = vmatmul.mubr.msk.bf16.gmra.mrb[4].mxu1 %vm424_vm0, %v1059_v9  ;;  %v946_v8 = vunpack.c.h.bf16 %v953_v46  ;;  %v926_v9 = vunpack.c.h.bf16 %v948_v47 }
 0x107   : > { %v967_v16 = vpop.f32.mrb[0].mxu0  ;;  %v975_v20 = vpop.f32.mrb[0].mxu1 }
 0x108   : > { %v552_v19 = vmul.f32 %v967_v16, %v1267_v13  ;;  %v486_v21 = vpop.f32.mrb[1].mxu0  ;;  %v560_v25 = vmul.f32 %v975_v20, %v1267_v13  ;;  %v518_v27 = vpop.f32.mrb[1].mxu1  ;;  %v942_v16 = vunpack.c.h.bf16 %v952_v52 }
 0x109   : > { %v550_v26 = vmul.f32 %v1267_v13, %v486_v21  ;;  %v968_v28 = vpop.f32.mrb[2].mxu0  ;;  %v558_v31 = vmul.f32 %v1267_v13, %v518_v27  ;;  %v976_v33 = vpop.f32.mrb[2].mxu1 }
 0x10a   : > { %v584_v30 = vadd.f32 %v921_v15, %v552_v19  ;;  %v553_v32 = vmul.f32 %v968_v28, %v1267_v13  ;;  %v489_v34 = vpop.f32.mrb[3].mxu0  ;;  %v592_v36 = vadd.f32 %v937_v17, %v560_v25  ;;  %v561_v38 = vmul.f32 %v976_v33, %v1267_v13  ;;  %v521_v40 = vpop.f32.mrb[3].mxu1 }
 0x10b   : > { %v582_v37 = vadd.f32 %v917_v18, %v550_v26  ;;  %v551_v39 = vmul.f32 %v1267_v13, %v489_v34  ;;  %v590_v43 = vadd.f32 %v933_v22, %v558_v31  ;;  %v559_v45 = vmul.f32 %v1267_v13, %v521_v40 }
 0x10c   : > { %v901_v42 = vpack.c.bf16 %v584_v30, %v584_v30  ;;  %v585_v44 = vadd.f32 %v922_v23, %v553_v32  ;;  %v909_v48 = vpack.c.bf16 %v592_v36, %v592_v36  ;;  %v593_v50 = vadd.f32 %v938_v24, %v561_v38 }
 0x10d   : > { %v899_v49 = vpack.c.bf16 %v582_v37, %v582_v37  ;;  %v583_v51 = vadd.f32 %v918_v29, %v551_v39  ;;  %v907_v53 = vpack.c.bf16 %v590_v43, %v590_v43  ;;  %v591_v55 = vadd.f32 %v934_v35, %v559_v45 }
 0x10e   : > { %665 = vst.msk [vmem:[%s1280_s11 + $0x8] sm:$0xf] %vm662_vm1, %v901_v42  ;;  %v902_v54 = vpack.c.bf16 %v585_v44, %v585_v44  ;;  %673 = vst.msk [vmem:[%s1280_s11 + $0x28] sm:$0xf] %vm662_vm1, %v909_v48  ;;  %v910_v57 = vpack.c.bf16 %v593_v50, %v593_v50 }
 0x10f   : > { %663 = vst.msk [vmem:[%s1280_s11] sm:$0xf] %vm662_vm1, %v899_v49  ;;  %v900_v58 = vpack.c.bf16 %v583_v51, %v583_v51  ;;  %v971_v59 = vpop.f32.mrb[4].mxu0  ;;  %671 = vst.msk [vmem:[%s1280_s11 + $0x20] sm:$0xf] %vm662_vm1, %v907_v53  ;;  %v908_v62 = vpack.c.bf16 %v591_v55, %v591_v55  ;;  %v979_v0 = vpop.f32.mrb[4].mxu1 }
 0x110   : > { %666 = vst.msk [vmem:[%s1280_s11 + $0xc] sm:$0xf] %vm662_vm1, %v902_v54  ;;  %v556_v63 = vmul.f32 %v971_v59, %v1267_v13  ;;  %v502_v1 = vpop.f32.mrb[5].mxu0  ;;  %674 = vst.msk [vmem:[%s1280_s11 + $0x2c] sm:$0xf] %vm662_vm1, %v910_v57  ;;  %v564_v4 = vmul.f32 %v979_v0, %v1267_v13  ;;  %v534_v6 = vpop.f32.mrb[5].mxu1 }
 0x111   : > { %664 = vst.msk [vmem:[%s1280_s11 + $0x4] sm:$0xf] %vm662_vm1, %v900_v58  ;;  %v554_v5 = vmul.f32 %v1267_v13, %v502_v1  ;;  %v972_v7 = vpop.f32.mrb[6].mxu0  ;;  %672 = vst.msk [vmem:[%s1280_s11 + $0x24] sm:$0xf] %vm662_vm1, %v908_v62  ;;  %v562_v11 = vmul.f32 %v1267_v13, %v534_v6  ;;  %v980_v14 = vpop.f32.mrb[6].mxu1 }
 0x112   : > { %v588_v10 = vadd.f32 %v929_v56, %v556_v63  ;;  %v557_v12 = vmul.f32 %v972_v7, %v1267_v13  ;;  %v505_v15 = vpop.f32.mrb[7].mxu0  ;;  %v596_v17 = vadd.f32 %v945_v60, %v564_v4  ;;  %v565_v19 = vmul.f32 %v980_v14, %v1267_v13  ;;  %v537_v21 = vpop.f32.mrb[7].mxu1 }
 0x113   : > { %v586_v18 = vadd.f32 %v925_v61, %v554_v5  ;;  %v555_v20 = vmul.f32 %v1267_v13, %v505_v15  ;;  %v594_v23 = vadd.f32 %v941_v2, %v562_v11  ;;  %v563_v25 = vmul.f32 %v1267_v13, %v537_v21 }
 0x114   : > { %v905_v22 = vpack.c.bf16 %v588_v10, %v588_v10  ;;  %v589_v24 = vadd.f32 %v930_v3, %v557_v12  ;;  %v913_v26 = vpack.c.bf16 %v596_v17, %v596_v17  ;;  %v597_v28 = vadd.f32 %v946_v8, %v565_v19 }
 0x115   : > { %v903_v27 = vpack.c.bf16 %v586_v18, %v586_v18  ;;  %v587_v29 = vadd.f32 %v926_v9, %v555_v20  ;;  %v911_v30 = vpack.c.bf16 %v594_v23, %v594_v23  ;;  %v595_v32 = vadd.f32 %v942_v16, %v563_v25 }
 0x116   : > { %669 = vst.msk [vmem:[%s1280_s11 + $0x18] sm:$0xf] %vm662_vm1, %v905_v22  ;;  %v906_v31 = vpack.c.bf16 %v589_v24, %v589_v24  ;;  %677 = vst.msk [vmem:[%s1280_s11 + $0x38] sm:$0xf] %vm662_vm1, %v913_v26  ;;  %v914_v33 = vpack.c.bf16 %v597_v28, %v597_v28 }
 0x117   : > { %667 = vst.msk [vmem:[%s1280_s11 + $0x10] sm:$0xf] %vm662_vm1, %v903_v27  ;;  %v904_v34 = vpack.c.bf16 %v587_v29, %v587_v29  ;;  %675 = vst.msk [vmem:[%s1280_s11 + $0x30] sm:$0xf] %vm662_vm1, %v911_v30  ;;  %v912_v13 = vpack.c.bf16 %v595_v32, %v595_v32 }
 0x118   : > { %670 = vst.msk [vmem:[%s1280_s11 + $0x1c] sm:$0xf] %vm662_vm1, %v906_v31  ;;  %678 = vst.msk [vmem:[%s1280_s11 + $0x3c] sm:$0xf] %vm662_vm1, %v914_v33 }
 0x119   : > { %668 = vst.msk [vmem:[%s1280_s11 + $0x14] sm:$0xf] %vm662_vm1, %v904_v34  ;;  %676 = vst.msk [vmem:[%s1280_s11 + $0x34] sm:$0xf] %vm662_vm1, %v912_v13 }
 0x11a PF: > { %s15_s21 = sadd.s32 1, %s1133_s21   ;;  %s1357_s15 = smov %s1121_s18 }
 0x11b   : > { %p12_p4 = scmp.ge.s32.totalorder %s15_s21, 10   ;;  %s1358_s16 = smov %s1125_s19 }
 0x11c   : > { %s1359_s17 = smov %s1129_s20  ;;  %s1360_s18 = smov %s1364_s23 }
 0x11d   : > { %s1361_s19 = smov %s1368_s24  ;;  %s1362_s20 = smov %s1372_s25 }
 0x11e   :  { %14 = sbr.rel (!%p12_p4) target bundleno = 4 (0x4), region = 77 }
 0x125   :  { %717 = vsyncpa [#allocation3], 1 }
 0x126   :  { %719 = vsyncpa [#allocation3 + $0x1], 1 }

// kernel: fanet_head_forward.4
= control target key start
LH: loop header
LB: loop body
LE: loop exit
PB: predicated region body
PF: predicated region fallthrough
CT: control target
= control target key end

     0   :  { %s2686_s15 = smov 0   ;;  %s2688_s16 = smov 0   ;;  %s3624_s0 = inlined_call_operand.vmem [shape: bf16[2,2,16,16,32], index: 0, kind: input, shape index: {}]   ;;  %s3625_s1 = inlined_call_operand.vmem [shape: bf16[2,288,8], index: 1, kind: input, shape index: {}]   ;;  %s3626_s2 = inlined_call_operand.vmem [shape: f32[2,1,8], index: 2, kind: input, shape index: {}]   ;;  %s3627_s3 = inlined_call_operand.vmem [shape: f32[2,1,8], index: 3, kind: input, shape index: {}]   ;;  %s3628_s4 = inlined_call_operand.vmem [shape: bf16[2,2,16,16,8], index: 4, kind: output, shape index: {}]  }
   0x1   :  { %s2690_s17 = smov 0   ;;  %s2692_s18 = smov 0  }
   0x2   :  { %s2694_s19 = smov 0  }
   0x3 LB: > { %s23_s20 = sadd.s32 1, %s2647_s17  ;;  %s26_s21 = sadd.s32 1, %s2651_s18  ;;  %s2655_s19 = sphi %s2694_s19, %s14_s19   ;;  %s2651_s18 = sphi %s2692_s18, %s3652_s18   ;;  %s2647_s17 = sphi %s2690_s17, %s3651_s17   ;;  %s2643_s16 = sphi %s2688_s16, %s3650_s16   ;;  %s2639_s15 = sphi %s2686_s15, %s3649_s15  }
   0x4   : > { %p24_p0 = scmp.ge.s32.totalorder %s23_s20, 2  ;;  %p2225_p1 = scmp.ge.s32.totalorder %s2655_s19, 1 }
   0x5   : > { %p208_p2 = scmp.lt.s32.totalorder %s2655_s19, 5 }
   0x6   : > { %s3654_s20 = smov (%p24_p0, %s23_s20), 0  ;;  %s3656_s21 = smov (!%p24_p0, %s26_s21), %s2651_s18 }
   0x7   : > { %p209_p3 = pnand %p2225_p1, %p208_p2  ;;  %p28_p4 = scmp.ge.s32.totalorder %s3656_s21, 2 }
   0x9   : > { %s3658_s21 = smov (%p28_p4, %s3656_s21), 0  ;;  %212 = sbr.rel (%p209_p3) target bundleno = 560 (0x230), region = 36 }
  0x10   : > { %vm548_vm0 = vcmask 1040384   ;;  %vm549_vm1 = vsmask.f32 256  ;;  %v2657_v0 = vmov 0   ;;  %p253_p5 = scmp.lt.s32.totalorder %s2643_s16, 1  ;;  %p255_p6 = scmp.lt.s32.totalorder %s2639_s15, 1 }
  0x11   : > { %v398_v1 = vrot.slane %v2657_v0, 7  ;;  %vm2718_vm2 = vmand %vm548_vm0, %vm549_vm1  ;;  %vm810_vm3 = vcmask 1046528   ;;  %vm585_vm4 = vsmask.f32 7424  ;;  %s2658_s30 = smov 64   ;;  %s2659_s8 = smov 32  }
  0x12   : > { %s3660_s16 = smov (!%p253_p5, %s2643_s16), 1  ;;  %s3662_s15 = smov (!%p255_p6, %s2639_s15), 1  ;;  %vm1068_vm5 = vcmask 261120   ;;  %vm1101_vm6 = vcmask 523264   ;;  %vm1134_vm7 = vcmask 785408   ;;  %vm2063_vm8 = vcmask 60416  }
  0x13   : > { %v2725_v3 = vsel %vm2718_vm2, 0, %v398_v1  ;;  %v568_v4 = vsel %vm2718_vm2, %v398_v1, 0  ;;  %s2227_s22 = sshll.u32 %s3660_s16, 6  ;;  %s2533_s23 = smul.u32 144, %s3660_s16 }
  0x14   : > { %v811_v5 = vrot.slane %v2725_v3, 1  ;;  %v812_v6 = vrot.slane %v568_v4, 1  ;;  %v587_v7 = vshrl.u32 %v2725_v3, 16  ;;  %v589_v8 = vshll.u32 %v2725_v3, 16  ;;  %s2226_s24 = sshll.u32 %s3662_s15, 5  ;;  %s2660_s9 = smov 96  }
  0x15   : > { %v594_v9 = vshll.u32 %v568_v4, 16  ;;  %s2742_s25 = sadd.s32 %s2227_s22, %s2226_s24  ;;  %s2747_s28 = scalar_lea.vmem %s3625_s1, %s2533_s23 }
  0x16   : > { %v2738_v10 = vsel %vm810_vm3, %v811_v5, %v812_v6  ;;  %v591_v11 = vrot.slane %v589_v8, 1  ;;  %s2228_s29 = sshll.u32 %s2742_s25, 2  ;;  %v2594_v15 = vld [vmem:[%s2747_s28 + $0x40] sm:$0xff]   ;;  %s269_s12 = scalar_lea.vmem %s3626_s2, %s3660_s16 }
  0x17   : > { %3637 = vst [vmem:[#allocation2_spill] sm:$0xff] %v2738_v10  ;;  %v2578_v12 = vpack.i.bf16 %v2725_v3, %v2738_v10  ;;  %v596_v13 = vrot.slane %v594_v9, 1  ;;  %s2757_s7 = scalar_lea.vmem %s3624_s0, %s2228_s29  ;;  %v2595_v16 = vld [vmem:[%s2747_s28] sm:$0xff]   ;;  %2351 = vmatprep.subr.bf16.mxu0 %v2594_v15  ;;  %2517 = vmatprep.subr.bf16.mxu1 %v2594_v15  ;;  %s272_s15 = scalar_lea.vmem %s3627_s3, %s3660_s16 }
  0x18   : > { %v592_v14 = vor.u32 %v591_v11, %v587_v7  ;;  %v2583_v18 = vld [vmem:[%s2757_s7 + $0x68] sm:$0xff]   ;;  %2352 = vmatpush3.bf16.msra.mxu0 %v2595_v16  ;;  %2525 = vmatpush3.bf16.msra.mxu1 %v2595_v16  ;;  %v2585_v24 = vld [vmem:[%s2757_s7] sm:$0xff]   ;;  %v2587_v27 = vld [vmem:[%s2757_s7 + $0x58] sm:$0xff]   ;;  %s3456_s23 = scalar_lea.vmem %s3628_s4, %s2228_s29 }
  0x19   : > { %2579 = vrot.lane.b32.xlu1 %v2578_v12, %s2658_s30  ;;  %v2584_v19 = vld [vmem:[%s2757_s7 + $0x8] sm:$0xff]   ;;  %v494_v20 = vshrl.u32 %v2583_v18, 16  ;;  %v497_v21 = vshll.u32 %v2583_v18, 16  ;;  %v2586_v25 = vld [vmem:[%s2757_s7 + $0x60] sm:$0xff]   ;;  %v403_v29 = vshrl.u32 %v2585_v24, 16  ;;  %v406_v30 = vshll.u32 %v2585_v24, 16 }
  0x1a   : > { %v2761_v17 = vsel %vm585_vm4, %v592_v14, %v596_v13  ;;  %v410_v22 = vshrl.u32 %v2584_v19, 16  ;;  %v413_v23 = vshll.u32 %v2584_v19, 16  ;;  %v487_v31 = vshrl.u32 %v2586_v25, 16  ;;  %v2588_v61 = vld [vmem:[%s2757_s7 + $0x10] sm:$0xff]   ;;  %v2597_v16 = vld [vmem:[%s2747_s28 + $0x48] sm:$0xff]  }
  0x1b   : > { %876 = vrot.lane.b32.xlu0 %v2761_v17, %s2659_s8  ;;  %v496_v26 = vrot.slane %v494_v20, 7  ;;  %v490_v33 = vshll.u32 %v2586_v25, 16  ;;  %v480_v34 = vshrl.u32 %v2587_v27, 16  ;;  %v483_v35 = vshll.u32 %v2587_v27, 16  ;;  %2353 = vmatprep.subr.bf16.mxu0 %v2597_v16 }
  0x1c   : > { %v412_v28 = vrot.slane %v410_v22, 7  ;;  %v405_v37 = vrot.slane %v403_v29, 7  ;;  %v489_v38 = vrot.slane %v487_v31, 7  ;;  %v2589_v22 = vld [vmem:[%s2757_s7 + $0x70] sm:$0xff]   ;;  %v2598_v31 = vld [vmem:[%s2747_s28 + $0x8] sm:$0xff]   ;;  %2518 = vmatprep.subr.bf16.mxu1 %v2597_v16 }
  0x1d   : > { %v499_v32 = vor.u32 %v497_v21, %v496_v26  ;;  %v482_v40 = vrot.slane %v480_v34, 7  ;;  %v2829_v9 = vsel %vm2718_vm2, %v496_v26, 0  ;;  %v417_v21 = vshrl.u32 %v2588_v61, 16  ;;  %2354 = vmatpush3.bf16.msra.mxu0 %v2598_v31  ;;  %2526 = vmatpush3.bf16.msra.mxu1 %v2598_v31  ;;  %v2607_v16 = vld [vmem:[%s2747_s28 + $0x28] sm:$0xff]  }
  0x1e   : > { %v415_v36 = vor.u32 %v413_v23, %v412_v28  ;;  %v570_v41 = vsel %vm2718_vm2, %v412_v28, 0  ;;  %v408_v43 = vor.u32 %v406_v30, %v405_v37  ;;  %v2784_v44 = vsel %vm2718_vm2, %v405_v37, 0 }
  0x1f   : > { %v2772_v39 = vsel %vm2718_vm2, 0, %v499_v32  ;;  %v492_v45 = vor.u32 %v490_v33, %v489_v38  ;;  %v815_v46 = vrot.slane %v2784_v44, 1  ;;  %v2791_v47 = vsel %vm2718_vm2, %v489_v38, 0  ;;  %v2599_v32 = vld [vmem:[%s2747_s28 + $0x50] sm:$0xff]  }
  0x20   : > { %1028 = vrot.lane.b32.xlu0 %v2772_v39, %s2658_s30  ;;  %v2780_v42 = vsel %vm2718_vm2, 0, %v415_v36  ;;  %v485_v48 = vor.u32 %v483_v35, %v482_v40  ;;  %v580_v49 = vsel %vm2718_vm2, %v482_v40, 0  ;;  %v2797_v50 = vsel %vm2718_vm2, 0, %v408_v43  ;;  %v2600_v35 = vld [vmem:[%s2747_s28 + $0x10] sm:$0xff]   ;;  %2355 = vmatprep.subr.bf16.mxu0 %v2599_v32 }
  0x21   : > { %1004 = vrot.lane.b32.xlu1 %v2780_v42, %s2658_s30  ;;  %v2801_v51 = vsel %vm2718_vm2, 0, %v492_v45  ;;  %v618_v52 = vshll.u32 %v570_v41, 16  ;;  %v814_v53 = vrot.slane %v2797_v50, 1  ;;  %v851_v55 = vrot.slane %v2791_v47, 1  ;;  %2519 = vmatprep.subr.bf16.mxu1 %v2599_v32 }
  0x22   : > { %v850_v54 = vrot.slane %v2801_v51, 1  ;;  %v2808_v56 = vsel %vm2718_vm2, 0, %v485_v48  ;;  %v848_v57 = vrot.slane %v580_v49, 1  ;;  %v818_v58 = vrot.slane %v570_v41, 1  ;;  %v2601_v41 = vld [vmem:[%s2747_s28 + $0x58] sm:$0xff]   ;;  %2356 = vmatpush3.bf16.msra.mxu0 %v2600_v35  ;;  %2527 = vmatpush3.bf16.msra.mxu1 %v2600_v35 }
  0x23   : > { %v611_v59 = vshrl.u32 %v2780_v42, 16  ;;  %v613_v60 = vshll.u32 %v2780_v42, 16  ;;  %v2816_v62 = vsel %vm810_vm3, %v814_v53, %v815_v46  ;;  %v847_v63 = vrot.slane %v2808_v56, 1  ;;  %2357 = vmatprep.subr.bf16.mxu0 %v2601_v41  ;;  %2520 = vmatprep.subr.bf16.mxu1 %v2601_v41  ;;  %v2591_v35 = vld [vmem:[%s2757_s7 + $0x78] sm:$0xff]  }
  0x24   : > { %v817_v0 = vrot.slane %v2780_v42, 1  ;;  %972 = vrot.lane.b32.xlu0 %v2816_v62, %s2659_s8  ;;  %v620_v4 = vrot.slane %v618_v52, 1  ;;  %v733_v5 = vshll.u32 %v2808_v56, 16  ;;  %v738_v6 = vshll.u32 %v580_v49, 16 }
  0x25   : > { %940 = vrot.lane.b32.xlu1 %v2797_v50, %s2660_s9  ;;  %v615_v1 = vrot.slane %v613_v60, 1  ;;  %v2824_v7 = vsel %vm810_vm3, %v850_v54, %v851_v55  ;;  %v731_v8 = vshrl.u32 %v2808_v56, 16  ;;  %v757_v11 = vshll.u32 %v2772_v39, 16  ;;  %v2602_v54 = vld [vmem:[%s2747_s28 + $0x18] sm:$0xff]  }
  0x26   : > { %3638 = vst [vmem:[#allocation3_spill] sm:$0xff] %v2824_v7  ;;  %v735_v13 = vrot.slane %v733_v5, 1  ;;  %v755_v14 = vshrl.u32 %v2772_v39, 16  ;;  %v599_v15 = vshrl.u32 %v2797_v50, 16  ;;  %v740_v18 = vrot.slane %v738_v6, 1  ;;  %2358 = vmatpush3.bf16.msra.mxu0 %v2602_v54  ;;  %2528 = vmatpush3.bf16.msra.mxu1 %v2602_v54 }
  0x27   : > { %v616_v12 = vor.u32 %v615_v1, %v611_v59  ;;  %v762_v19 = vshll.u32 %v2829_v9, 16  ;;  %v601_v20 = vshll.u32 %v2797_v50, 16  ;;  %v2843_v23 = vsel %vm810_vm3, %v847_v63, %v848_v57 }
  0x28   : > { %996 = vrot.lane.b32.xlu0 %v2824_v7, %s2659_s8  ;;  %v2846_v24 = vsel %vm810_vm3, %v817_v0, %v818_v58  ;;  %v606_v25 = vshll.u32 %v2784_v44, 16  ;;  %v420_v26 = vshll.u32 %v2588_v61, 16  ;;  %v736_v27 = vor.u32 %v735_v13, %v731_v8  ;;  %v2590_v61 = vld [vmem:[%s2757_s7 + $0x18] sm:$0xff]  }
  0x29   : > { %964 = vrot.lane.b32.xlu1 %v2801_v51, %s2660_s9  ;;  %v759_v28 = vrot.slane %v757_v11, 1  ;;  %v603_v29 = vrot.slane %v601_v20, 1  ;;  %v419_v30 = vrot.slane %v417_v21, 7  ;;  %v2854_v33 = vsel %vm585_vm4, %v616_v12, %v620_v4  ;;  %v2604_v12 = vld [vmem:[%s2747_s28 + $0x60] sm:$0xff]   ;;  %v2608_v21 = vld [vmem:[%s2747_s28 + $0x70] sm:$0xff]  }
  0x2a   : > { %v764_v36 = vrot.slane %v762_v19, 1  ;;  %v608_v38 = vrot.slane %v606_v25, 1  ;;  %v2865_v43 = vsel %vm585_vm4, %v736_v27, %v740_v18  ;;  %v501_v46 = vshrl.u32 %v2589_v22, 16  ;;  %2359 = vmatprep.subr.bf16.mxu0 %v2604_v12  ;;  %2521 = vmatprep.subr.bf16.mxu1 %v2604_v12  ;;  %v2609_v27 = vld [vmem:[%s2747_s28 + $0x30] sm:$0xff]  }
  0x2b   : > { %v422_v34 = vor.u32 %v420_v26, %v419_v30  ;;  %v604_v37 = vor.u32 %v603_v29, %v599_v15  ;;  %v2861_v40 = vsel %vm2718_vm2, %v419_v30, 0  ;;  %v760_v44 = vor.u32 %v759_v28, %v755_v14  ;;  %v2605_v14 = vld [vmem:[%s2747_s28 + $0x20] sm:$0xff]   ;;  %v2606_v15 = vld [vmem:[%s2747_s28 + $0x68] sm:$0xff]   ;;  %v2611_v29 = vld [vmem:[%s2747_s28 + $0x78] sm:$0xff]  }
  0x2c   : > { %974 = vrot.lane.b32.xlu0 %v2846_v24, %s2659_s8  ;;  %v504_v49 = vshll.u32 %v2589_v22, 16  ;;  %v630_v52 = vshll.u32 %v2861_v40, 16  ;;  %v503_v53 = vrot.slane %v501_v46, 7  ;;  %v745_v59 = vshll.u32 %v2801_v51, 16  ;;  %2360 = vmatpush3.bf16.msra.mxu0 %v2605_v14 }
  0x2d   : > { %932 = vrot.lane.b32.xlu1 %v2843_v23, %s2658_s30  ;;  %v2869_v45 = vsel %vm2718_vm2, 0, %v422_v34  ;;  %v2879_v55 = vsel %vm585_vm4, %v604_v37, %v608_v38  ;;  %v2884_v60 = vsel %vm585_vm4, %v760_v44, %v764_v36  ;;  %v853_v0 = vrot.slane %v2772_v39, 1  ;;  %2361 = vmatprep.subr.bf16.mxu0 %v2606_v15  ;;  %v2612_v36 = vld [vmem:[%s2747_s28 + $0x38] sm:$0xff]  }
  0x2e   : > { %v625_v48 = vshll.u32 %v2869_v45, 16  ;;  %v623_v57 = vshrl.u32 %v2869_v45, 16  ;;  %v506_v63 = vor.u32 %v504_v49, %v503_v53  ;;  %v854_v1 = vrot.slane %v2829_v9, 1  ;;  %2529 = vmatpush3.bf16.msra.mxu1 %v2605_v14 }
  0x2f   : > { %v743_v4 = vshrl.u32 %v2801_v51, 16  ;;  %v632_v6 = vrot.slane %v630_v52, 1  ;;  %v747_v8 = vrot.slane %v745_v59, 1  ;;  %v750_v11 = vshll.u32 %v2791_v47, 16  ;;  %2522 = vmatprep.subr.bf16.mxu1 %v2606_v15 }
  0x30   : > { %900 = vrot.lane.b32.xlu0 %v2865_v43, %s2659_s8  ;;  %v627_v58 = vrot.slane %v625_v48, 1  ;;  %v424_v13 = vshrl.u32 %v2590_v61, 16  ;;  %v2900_v9 = vsel %vm2718_vm2, 0, %v506_v63  ;;  %v2908_v47 = vsel %vm810_vm3, %v853_v0, %v854_v1  ;;  %2362 = vmatpush3.bf16.msra.mxu0 %v2607_v16 }
  0x31   : > { %1036 = vrot.lane.b32.xlu1 %v2854_v33, %s2660_s9  ;;  %3639 = vst [vmem:[#allocation4_spill] sm:$0xff] %v2908_v47  ;;  %v748_v19 = vor.u32 %v747_v8, %v743_v4  ;;  %v752_v20 = vrot.slane %v750_v11, 1  ;;  %v769_v22 = vshll.u32 %v2900_v9, 16  ;;  %v427_v26 = vshll.u32 %v2590_v61, 16  ;;  %2363 = vmatprep.subr.bf16.mxu0 %v2608_v21 }
  0x32   : > { %v628_v5 = vor.u32 %v627_v58, %v623_v57  ;;  %v426_v25 = vrot.slane %v424_v13, 7  ;;  %v767_v31 = vshrl.u32 %v2900_v9, 16  ;;  %2530 = vmatpush3.bf16.msra.mxu1 %v2607_v16  ;;  %v508_v44 = vshrl.u32 %v2591_v35, 16 }
  0x33   : > { %v2927_v30 = vsel %vm585_vm4, %v748_v19, %v752_v20  ;;  %v771_v32 = vrot.slane %v769_v22, 1  ;;  %2523 = vmatprep.subr.bf16.mxu1 %v2608_v21  ;;  %v820_v49 = vrot.slane %v2869_v45, 1  ;;  %v821_v52 = vrot.slane %v2861_v40, 1  ;;  %v2592_v40 = vld [vmem:[%s2757_s7 + $0x20] sm:$0xff]  }
  0x34   : > { %1060 = vrot.lane.b32.xlu0 %v2884_v60, %s2660_s9  ;;  %v2911_v18 = vsel %vm585_vm4, %v628_v5, %v632_v6  ;;  %v429_v34 = vor.u32 %v427_v26, %v426_v25  ;;  %2364 = vmatpush3.bf16.msra.mxu0 %v2609_v27  ;;  %v510_v54 = vrot.slane %v508_v44, 7  ;;  %v511_v57 = vshll.u32 %v2591_v35, 16  ;;  %v2593_v35 = vld [vmem:[%s2757_s7 + $0x28] sm:$0xff]  }
  0x35   : > { %878 = vrot.lane.b32.xlu1 %v2879_v55, %s2659_s8  ;;  %2365 = vmatprep.subr.bf16.mxu0 %v2611_v29  ;;  %v772_v37 = vor.u32 %v771_v32, %v767_v31  ;;  %v2958_v63 = vsel %vm810_vm3, %v820_v49, %v821_v52  ;;  %v856_v5 = vrot.slane %v2900_v9, 1  ;;  %v431_v8 = vshrl.u32 %v2592_v40, 16 }
  0x36   : > { %v2938_v41 = vsel %vm2718_vm2, 0, %v429_v34  ;;  %2531 = vmatpush3.bf16.msra.mxu1 %v2609_v27  ;;  %v513_v0 = vor.u32 %v511_v57, %v510_v54  ;;  %v434_v16 = vshll.u32 %v2592_v40, 16  ;;  %v584_v19 = vsel %vm2718_vm2, %v510_v54, 0 }
  0x37   : > { %2524 = vmatprep.subr.bf16.mxu1 %v2611_v29  ;;  %v637_v46 = vshll.u32 %v2938_v41, 16  ;;  %v635_v58 = vshrl.u32 %v2938_v41, 16  ;;  %v433_v15 = vrot.slane %v431_v8, 7  ;;  %v823_v31 = vrot.slane %v2938_v41, 1 }
  0x38   : > { %1006 = vrot.lane.b32.xlu0 %v2869_v45, %s2658_s30  ;;  %2366 = vmatpush3.bf16.msra.mxu0 %v2612_v36  ;;  %v2969_v11 = vsel %vm2718_vm2, 0, %v513_v0  ;;  %v874_v54 = vrot.slane %v584_v19, 1  ;;  %v2596_v0 = vld [vmem:[%s2757_s7 + $0x30] sm:$0xff]  }
  0x39   : > { %910 = vrot.lane.b32.xlu1 %v2816_v62, %s2658_s30  ;;  %v2916_v62 = vsel %vm2718_vm2, %v503_v53, 0  ;;  %v572_v53 = vsel %vm2718_vm2, %v426_v25, 0  ;;  %v639_v59 = vrot.slane %v637_v46, 1  ;;  %v862_v14 = vshll.u32 %v2969_v11, 16 }
  0x3a   : > { %v774_v28 = vshll.u32 %v2916_v62, 16  ;;  %2532 = vmatpush3.bf16.msra.mxu1 %v2612_v36  ;;  %v642_v61 = vshll.u32 %v572_v53, 16  ;;  %v857_v6 = vrot.slane %v2916_v62, 1  ;;  %v860_v20 = vshrl.u32 %v2969_v11, 16 }
  0x3b   : > { %v640_v1 = vor.u32 %v639_v59, %v635_v58  ;;  %v864_v21 = vrot.slane %v862_v14, 1  ;;  %v867_v62 = vshll.u32 %v584_v19, 16  ;;  %v436_v22 = vor.u32 %v434_v16, %v433_v15 }
  0x3c   : > { %998 = vrot.lane.b32.xlu0 %v2908_v47, %s2659_s8  ;;  %v776_v38 = vrot.slane %v774_v28, 1  ;;  %v644_v4 = vrot.slane %v642_v61, 1  ;;  %v2979_v13 = vsel %vm810_vm3, %v856_v5, %v857_v6  ;;  %v824_v32 = vrot.slane %v572_v53, 1 }
  0x3d   : > { %1038 = vrot.lane.b32.xlu1 %v2911_v18, %s2660_s9  ;;  %3640 = vst [vmem:[#allocation5_spill] sm:$0xff] %v2979_v13  ;;  %v865_v25 = vor.u32 %v864_v21, %v860_v20  ;;  %v869_v26 = vrot.slane %v867_v62, 1  ;;  %v2995_v27 = vsel %vm2718_vm2, 0, %v436_v22  ;;  %v573_v34 = vsel %vm2718_vm2, %v433_v15, 0 }
  0x3e   : > { %v2946_v48 = vsel %vm585_vm4, %v772_v37, %v776_v38  ;;  %v2976_v12 = vsel %vm585_vm4, %v640_v1, %v644_v4  ;;  %v649_v28 = vshll.u32 %v2995_v27, 16  ;;  %v647_v36 = vshrl.u32 %v2995_v27, 16  ;;  %v3034_v1 = vld [vmem:[%s2747_s28 + $0x80] sm:$0xff]  }
  0x3f   : > { %v3003_v29 = vsel %vm585_vm4, %v865_v25, %v869_v26  ;;  %v654_v38 = vshll.u32 %v573_v34, 16  ;;  %v3015_v44 = vsel %vm810_vm3, %v823_v31, %v824_v32  ;;  %v438_v46 = vshrl.u32 %v2593_v35, 16  ;;  %2481 = vmatprep.subr.bf16.mxu1 %v3034_v1  ;;  %v2603_v26 = vld [vmem:[%s2757_s7 + $0x38] sm:$0xff]  }
  0x40   : > { %902 = vrot.lane.b32.xlu0 %v2927_v30, %s2659_s8  ;;  %v651_v37 = vrot.slane %v649_v28, 1  ;;  %v873_v53 = vrot.slane %v2969_v11, 1  ;;  %v441_v58 = vshll.u32 %v2593_v35, 16  ;;  %v445_v5 = vshrl.u32 %v2596_v0, 16 }
  0x41   : > { %942 = vrot.lane.b32.xlu1 %v2780_v42, %s2660_s9  ;;  %v656_v52 = vrot.slane %v654_v38, 1  ;;  %v440_v57 = vrot.slane %v438_v46, 7  ;;  %v826_v6 = vrot.slane %v2995_v27, 1  ;;  %v827_v8 = vrot.slane %v573_v34, 1 }
  0x42   : > { %v652_v49 = vor.u32 %v651_v37, %v647_v36  ;;  %v3030_v61 = vsel %vm810_vm3, %v873_v53, %v874_v54  ;;  %v447_v16 = vrot.slane %v445_v5, 7  ;;  %v448_v19 = vshll.u32 %v2596_v0, 16 }
  0x43   : > { %3641 = vst [vmem:[#allocation6_spill] sm:$0xff] %v3030_v61  ;;  %v443_v40 = vor.u32 %v441_v58, %v440_v57  ;;  %v574_v15 = vsel %vm2718_vm2, %v440_v57, 0  ;;  %v3058_v20 = vsel %vm810_vm3, %v826_v6, %v827_v8  ;;  %v452_v32 = vshrl.u32 %v2603_v26, 16  ;;  %v2610_v58 = vld [vmem:[%s2757_s7 + $0x40] sm:$0xff]  }
  0x44   : > { %1030 = vrot.lane.b32.xlu0 %v2900_v9, %s2658_s30  ;;  %v3027_v59 = vsel %vm585_vm4, %v652_v49, %v656_v52  ;;  %v666_v22 = vshll.u32 %v574_v15, 16  ;;  %v450_v25 = vor.u32 %v448_v19, %v447_v16  ;;  %v575_v37 = vsel %vm2718_vm2, %v447_v16, 0 }
  0x45   : > { %934 = vrot.lane.b32.xlu1 %v2824_v7, %s2658_s30  ;;  %v3043_v4 = vsel %vm2718_vm2, 0, %v443_v40  ;;  %v454_v38 = vrot.slane %v452_v32, 7  ;;  %v455_v46 = vshll.u32 %v2603_v26, 16  ;;  %v678_v54 = vshll.u32 %v575_v37, 16 }
  0x46   : > { %v661_v14 = vshll.u32 %v3043_v4, 16  ;;  %v659_v21 = vshrl.u32 %v3043_v4, 16  ;;  %v3068_v31 = vsel %vm2718_vm2, 0, %v450_v25  ;;  %v829_v35 = vrot.slane %v3043_v4, 1 }
  0x47   : > { %3642 = vst [vmem:[#allocation7_spill] sm:$0xff] %v3068_v31  ;;  %v673_v36 = vshll.u32 %v3068_v31, 16  ;;  %v671_v52 = vshrl.u32 %v3068_v31, 16  ;;  %v457_v57 = vor.u32 %v455_v46, %v454_v38  ;;  %v680_v0 = vrot.slane %v678_v54, 1 }
  0x48   : > { %1062 = vrot.lane.b32.xlu0 %v2946_v48, %s2660_s9  ;;  %v663_v62 = vrot.slane %v661_v14, 1  ;;  %v459_v6 = vshrl.u32 %v2610_v58, 16  ;;  %v832_v14 = vrot.slane %v3068_v31, 1  ;;  %v576_v19 = vsel %vm2718_vm2, %v454_v38, 0 }
  0x49   : > { %966 = vrot.lane.b32.xlu1 %v2772_v39, %s2660_s9  ;;  %v675_v53 = vrot.slane %v673_v36, 1  ;;  %v3096_v5 = vsel %vm2718_vm2, 0, %v457_v57  ;;  %v690_v32 = vshll.u32 %v576_v19, 16 }
  0x4a   : > { %v664_v28 = vor.u32 %v663_v62, %v659_v21  ;;  %v685_v16 = vshll.u32 %v3096_v5, 16  ;;  %v461_v21 = vrot.slane %v459_v6, 7  ;;  %v462_v62 = vshll.u32 %v2610_v58, 16 }
  0x4b   : > { %v676_v40 = vor.u32 %v675_v53, %v671_v52  ;;  %v692_v38 = vrot.slane %v690_v32, 1  ;;  %v835_v57 = vrot.slane %v3096_v5, 1  ;;  %v836_v58 = vrot.slane %v576_v19, 1 }
  0x4c   : > { %976 = vrot.lane.b32.xlu0 %v2958_v63, %s2659_s8  ;;  %v577_v6 = vsel %vm2718_vm2, %v461_v21, 0 }
  0x4d   : > { %880 = vrot.lane.b32.xlu1 %v2854_v33, %s2659_s8  ;;  %v3103_v8 = vsel %vm585_vm4, %v676_v40, %v680_v0 }
  0x50   : > { %1008 = vrot.lane.b32.xlu0 %v2938_v41, %s2658_s30 }
  0x51   : > { %912 = vrot.lane.b32.xlu1 %v2846_v24, %s2658_s30 }
  0x54   : > { %1000 = vrot.lane.b32.xlu0 %v2979_v13, %s2659_s8 }
  0x55   : > { %1040 = vrot.lane.b32.xlu1 %v2976_v12, %s2660_s9 }
  0x58   : > { %904 = vrot.lane.b32.xlu0 %v2884_v60, %s2659_s8 }
  0x59   : > { %944 = vrot.lane.b32.xlu1 %v2869_v45, %s2660_s9 }
  0x5c   : > { %1032 = vrot.lane.b32.xlu0 %v2969_v11, %s2658_s30 }
  0x5d   : > { %936 = vrot.lane.b32.xlu1 %v2908_v47, %s2658_s30 }
  0x60   : > { %1064 = vrot.lane.b32.xlu0 %v3003_v29, %s2660_s9 }
  0x61   : > { %968 = vrot.lane.b32.xlu1 %v2900_v9, %s2660_s9 }
  0x64   : > { %978 = vrot.lane.b32.xlu0 %v3015_v44, %s2659_s8 }
  0x65   : > { %882 = vrot.lane.b32.xlu1 %v2911_v18, %s2659_s8 }
  0x68   : > { %1010 = vrot.lane.b32.xlu0 %v2995_v27, %s2658_s30 }
  0x69   : > { %914 = vrot.lane.b32.xlu1 %v2958_v63, %s2658_s30 }
  0x6c   : > { %1002 = vrot.lane.b32.xlu0 %v3030_v61, %s2659_s8 }
  0x6d   : > { %1042 = vrot.lane.b32.xlu1 %v3027_v59, %s2660_s9 }
  0x70   : > { %906 = vrot.lane.b32.xlu0 %v2946_v48, %s2659_s8 }
  0x71   : > { %946 = vrot.lane.b32.xlu1 %v2938_v41, %s2660_s9 }
  0x74   : > { %938 = vrot.lane.b32.xlu0 %v2979_v13, %s2658_s30 }
  0x75   : > { %1066 = vrot.lane.b32.xlu1 %v2761_v17, %s2660_s9  ;;  %v668_v17 = vrot.slane %v666_v22, 1 }
  0x77   : > { %v3075_v34 = vsel %vm585_vm4, %v664_v28, %v668_v17  ;;  %v683_v28 = vshrl.u32 %v3096_v5, 16  ;;  %v687_v17 = vrot.slane %v685_v16, 1 }
  0x78   : > { %970 = vrot.lane.b32.xlu0 %v2969_v11, %s2660_s9  ;;  %v830_v11 = vrot.slane %v574_v15, 1  ;;  %v833_v15 = vrot.slane %v575_v37, 1 }
  0x79   : > { %980 = vrot.lane.b32.xlu1 %v3058_v20, %s2659_s8  ;;  %v688_v37 = vor.u32 %v687_v17, %v683_v28  ;;  %v702_v17 = vshll.u32 %v577_v6, 16 }
  0x7a   : > { %v3086_v49 = vsel %vm810_vm3, %v829_v35, %v830_v11  ;;  %v3116_v26 = vsel %vm810_vm3, %v832_v14, %v833_v15  ;;  %v464_v35 = vor.u32 %v462_v62, %v461_v21  ;;  %v2613_v11 = vld [vmem:[%s2757_s7 + $0x48] sm:$0xff]   ;;  %v3146_v62 = vsel %vm810_vm3, %v835_v57, %v836_v58 }
  0x7b   : > { %v466_v53 = vshrl.u32 %v2613_v11, 16  ;;  %v3135_v54 = vsel %vm585_vm4, %v688_v37, %v692_v38  ;;  %v469_v15 = vshll.u32 %v2613_v11, 16  ;;  %v2614_v37 = vld [vmem:[%s2757_s7 + $0x50] sm:$0xff]   ;;  %v704_v38 = vrot.slane %v702_v17, 1 }
  0x7c   : > { %884 = vrot.lane.b32.xlu0 %v2976_v12, %s2659_s8  ;;  %v3128_v52 = vsel %vm2718_vm2, 0, %v464_v35  ;;  %v473_v58 = vshrl.u32 %v2614_v37, 16  ;;  %v839_v17 = vrot.slane %v577_v6, 1  ;;  %v476_v13 = vshll.u32 %v2614_v37, 16 }
  0x7d   : > { %1012 = vrot.lane.b32.xlu1 %v3043_v4, %s2658_s30  ;;  %v697_v40 = vshll.u32 %v3128_v52, 16  ;;  %v468_v14 = vrot.slane %v466_v53, 7  ;;  %v695_v19 = vshrl.u32 %v3128_v52, 16 }
  0x7f   : > { %v699_v28 = vrot.slane %v697_v40, 1  ;;  %v471_v35 = vor.u32 %v469_v15, %v468_v14 }
  0x80   : > { %916 = vrot.lane.b32.xlu0 %v3015_v44, %s2658_s30 }
  0x81   : > { %1044 = vrot.lane.b32.xlu1 %v3075_v34, %s2660_s9  ;;  %v700_v11 = vor.u32 %v699_v28, %v695_v19  ;;  %v3156_v57 = vsel %vm2718_vm2, 0, %v471_v35  ;;  %v838_v28 = vrot.slane %v3128_v52, 1 }
  0x83   : > { %v3168_v19 = vsel %vm585_vm4, %v700_v11, %v704_v38 }
  0x84   : > { %948 = vrot.lane.b32.xlu0 %v2995_v27, %s2660_s9 }
  0x85   : > { %982 = vrot.lane.b32.xlu1 %v3086_v49, %s2659_s8 }
  0x88   : > { %886 = vrot.lane.b32.xlu0 %v3027_v59, %s2659_s8 }
  0x89   : > { %1014 = vrot.lane.b32.xlu1 %v3068_v31, %s2658_s30 }
  0x8b   : > { %v3111_v25 = vpop.permute.xlu1 %2579 }
  0x8c   : > { %918 = vrot.lane.b32.xlu0 %v3058_v20, %s2658_s30  ;;  %v2581_v40 = vunpack.i.l.bf16 %v3111_v25 }
  0x8d   : > { %v877_v22 = vpop.permute.xlu0 %876  ;;  %1046 = vrot.lane.b32.xlu1 %v3103_v8, %s2660_s9 }
  0x8e   : > { %v1070_v61 = vsel %vm1068_vm5, %v2725_v3, %v877_v22  ;;  %v578_v3 = vsel %vm2718_vm2, %v468_v14, 0  ;;  %v475_v22 = vrot.slane %v473_v58, 7  ;;  %v3187_v14 = vsel %vm810_vm3, %v838_v28, %v839_v17 }
  0x90   : > { %950 = vrot.lane.b32.xlu0 %v3043_v4, %s2660_s9  ;;  %v478_v58 = vor.u32 %v476_v13, %v475_v22 }
  0x91   : > { %984 = vrot.lane.b32.xlu1 %v3116_v26, %s2659_s8 }
  0x92   : > { %v3124_v36 = vpop.permute.xlu0 %1028 }
  0x93   : > { %v1005_v46 = vpop.permute.xlu1 %1004 }
  0x94   : > { %888 = vrot.lane.b32.xlu0 %v3075_v34, %s2659_s8 }
  0x95   : > { %1016 = vrot.lane.b32.xlu1 %v3096_v5, %s2658_s30 }
  0x96   : > { %v973_v16 = vpop.permute.xlu0 %972 }
  0x97   : > { %v941_v0 = vpop.permute.xlu1 %940  ;;  %v1185_v15 = vsel %vm1068_vm5, %v2879_v55, %v973_v16  ;;  %v709_v55 = vshll.u32 %v3156_v57, 16 }
  0x98   : > { %920 = vrot.lane.b32.xlu0 %v3086_v49, %s2658_s30  ;;  %v1232_v35 = vsel %vm1101_vm6, %v1185_v15, %v1005_v46 }
  0x99   : > { %1048 = vrot.lane.b32.xlu1 %v3135_v54, %s2660_s9  ;;  %v711_v37 = vrot.slane %v709_v55, 1  ;;  %v842_v55 = vrot.slane %v578_v3, 1 }
  0x9a   : > { %v997_v21 = vpop.permute.xlu0 %996 }
  0x9b   : > { %v965_v32 = vpop.permute.xlu1 %964  ;;  %v1221_v11 = vsel %vm1068_vm5, %v2927_v30, %v997_v21  ;;  %v714_v21 = vshll.u32 %v578_v3, 16  ;;  %v579_v3 = vsel %vm2718_vm2, %v475_v22, 0 }
  0x9c   : > { %952 = vrot.lane.b32.xlu0 %v3068_v31, %s2660_s9  ;;  %v1103_v31 = vsel %vm1101_vm6, %v1070_v61, %v2581_v40  ;;  %v707_v61 = vshrl.u32 %v3156_v57, 16 }
  0x9d   : > { %986 = vrot.lane.b32.xlu1 %v3146_v62, %s2659_s8  ;;  %v1136_v46 = vsel %vm1134_vm7, %v1103_v31, %v941_v0  ;;  %v2616_v0 = vld [vmem:[%s2747_s28 + $0x88] sm:$0xff]   ;;  %v716_v17 = vrot.slane %v714_v21, 1 }
  0x9e   : > { %v975_v10 = vpop.permute.xlu0 %974  ;;  %v712_v28 = vor.u32 %v711_v37, %v707_v61  ;;  %v726_v37 = vshll.u32 %v579_v3, 16 }
  0x9f   : > { %v933_v53 = vpop.permute.xlu1 %932 }
  0xa0   : > { %890 = vrot.lane.b32.xlu0 %v3103_v8, %s2659_s8 }
  0xa1   : > { %1018 = vrot.lane.b32.xlu1 %v3128_v52, %s2658_s30 }
  0xa2   : > { %v901_v47 = vpop.permute.xlu0 %900 }
  0xa3   : > { %v1037_v16 = vpop.permute.xlu1 %1036  ;;  %v1094_v6 = vsel %vm1068_vm5, %v2808_v56, %v901_v47 }
  0xa4   : > { %v1264_v7 = vsel %vm1134_vm7, %v1232_v35, %v1037_v16  ;;  %922 = vrot.lane.b32.xlu0 %v3116_v26, %s2658_s30  ;;  %v1127_v47 = vsel %vm1101_vm6, %v1094_v6, %v933_v53  ;;  %v3202_v53 = vsel %vm2718_vm2, 0, %v478_v58  ;;  %v1188_v16 = vsel %vm1068_vm5, %v2854_v33, %v975_v10 }
  0xa5   : > { %1050 = vrot.lane.b32.xlu1 %v3168_v19, %s2660_s9  ;;  %1535 = vmatprep.mubr.bf16.mxu0 %v1264_v7  ;;  %v1256_v7 = vsel %vm1101_vm6, %v1221_v11, %v3124_v36  ;;  %v1172_v15 = vsel %vm1134_vm7, %v1127_v47, %v965_v32  ;;  %v3212_v32 = vsel %vm585_vm4, %v712_v28, %v716_v17  ;;  %v841_v35 = vrot.slane %v3156_v57, 1 }
  0xa6   : > { %1536 = vmatmul.mubr.bf16.vlgmr.msra.gmra.mrb[0].mxu0 %v1136_v46  ;;  %v1061_v40 = vpop.permute.xlu0 %1060  ;;  %v721_v11 = vshll.u32 %v3202_v53, 16  ;;  %v719_v2 = vshrl.u32 %v3202_v53, 16  ;;  %v844_v28 = vrot.slane %v3202_v53, 1  ;;  %v845_v17 = vrot.slane %v579_v3, 1 }
  0xa7   : > { %v879_v38 = vpop.permute.xlu1 %878  ;;  %v1300_v31 = vsel %vm1134_vm7, %v1256_v7, %v1061_v40  ;;  %v3227_v61 = vsel %vm810_vm3, %v841_v35, %v842_v55  ;;  %v728_v40 = vrot.slane %v726_v37, 1 }
  0xa8   : > { %954 = vrot.lane.b32.xlu0 %v3096_v5, %s2660_s9  ;;  %1631 = vmatprep.mubr.bf16.mxu1 %v1300_v31  ;;  %v1072_v46 = vsel %vm1068_vm5, %v2797_v50, %v879_v38  ;;  %v723_v22 = vrot.slane %v721_v11, 1 }
  0xa9   : > { %988 = vrot.lane.b32.xlu1 %v3187_v14, %s2659_s8  ;;  %1632 = vmatmul.mubr.bf16.vlgmr.msra.gmra.mrb[0].mxu1 %v1172_v15 }
  0xaa   : > { %v1007_v36 = vpop.permute.xlu0 %1006  ;;  %2482 = vmatpush3.bf16.msra.mxu1 %v3034_v1  ;;  %v724_v58 = vor.u32 %v723_v22, %v719_v2 }
  0xab   : > { %v911_v13 = vpop.permute.xlu1 %910  ;;  %2483 = vmatprep.subr.bf16.mxu1 %v2616_v0  ;;  %v1234_v1 = vsel %vm1101_vm6, %v1188_v16, %v1007_v36 }
  0xac   : > { %892 = vrot.lane.b32.xlu0 %v3135_v54, %s2659_s8  ;;  %v1105_v50 = vsel %vm1101_vm6, %v1072_v46, %v911_v13  ;;  %v3243_v15 = vsel %vm585_vm4, %v724_v58, %v728_v40 }
  0xad   : > { %1020 = vrot.lane.b32.xlu1 %v3156_v57, %s2658_s30 }
  0xae   : > { %v999_v10 = vpop.permute.xlu0 %998  ;;  %2484 = vmatpush3.bf16.msra.mxu1 %v2616_v0 }
  0xaf   : > { %v1039_v6 = vpop.permute.xlu1 %1038  ;;  %v1224_v13 = vsel %vm1068_vm5, %v2884_v60, %v999_v10 }
  0xb0   : > { %v1267_v33 = vsel %vm1134_vm7, %v1234_v1, %v1039_v6  ;;  %924 = vrot.lane.b32.xlu0 %v3146_v62, %s2658_s30  ;;  %v3257_v6 = vsel %vm810_vm3, %v844_v28, %v845_v17 }
  0xb1   : > { %1052 = vrot.lane.b32.xlu1 %v3212_v32, %s2660_s9  ;;  %1543 = vmatprep.mubr.bf16.mxu0 %v1267_v33 }
  0xb2   : > { %v903_v38 = vpop.permute.xlu0 %902 }
  0xb3   : > { %v943_v21 = vpop.permute.xlu1 %942  ;;  %v1096_v0 = vsel %vm1068_vm5, %v2801_v51, %v903_v38 }
  0xb4   : > { %v1139_v47 = vsel %vm1134_vm7, %v1105_v50, %v943_v21  ;;  %956 = vrot.lane.b32.xlu0 %v3128_v52, %s2660_s9 }
  0xb5   : > { %990 = vrot.lane.b32.xlu1 %v3227_v61, %s2659_s8  ;;  %1544 = vmatmul.mubr.bf16.gmra.mrb[4].mxu0 %v1139_v47 }
  0xb6   : > { %v1031_v31 = vpop.permute.xlu0 %1030 }
  0xb7   : > { %v935_v7 = vpop.permute.xlu1 %934  ;;  %v1258_v16 = vsel %vm1101_vm6, %v1224_v13, %v1031_v31 }
  0xb8   : > { %894 = vrot.lane.b32.xlu0 %v3168_v19, %s2659_s8  ;;  %v1129_v36 = vsel %vm1101_vm6, %v1096_v0, %v935_v7 }
  0xb9   : > { %1022 = vrot.lane.b32.xlu1 %v3202_v53, %s2658_s30 }
  0xba   : > { %v1063_v35 = vpop.permute.xlu0 %1062 }
  0xbb   : > { %v967_v55 = vpop.permute.xlu1 %966  ;;  %v1303_v1 = vsel %vm1134_vm7, %v1258_v16, %v1063_v35 }
  0xbc   : > { %v1175_v11 = vsel %vm1134_vm7, %v1129_v36, %v967_v55  ;;  %926 = vrot.lane.b32.xlu0 %v3187_v14, %s2658_s30  ;;  %1639 = vmatprep.mubr.bf16.mxu1 %v1303_v1 }
  0xbd   : > { %1054 = vrot.lane.b32.xlu1 %v3243_v15, %s2660_s9  ;;  %1640 = vmatmul.mubr.bf16.gmra.mrb[4].mxu1 %v1175_v11 }
  0xbe   : > { %v977_v3 = vpop.permute.xlu0 %976 }
  0xbf   : > { %v881_v60 = vpop.permute.xlu1 %880  ;;  %v1191_v33 = vsel %vm1068_vm5, %v2911_v18, %v977_v3 }
  0xc0   : > { %958 = vrot.lane.b32.xlu0 %v3156_v57, %s2660_s9  ;;  %v1074_v37 = vsel %vm1068_vm5, %v2780_v42, %v881_v60 }
  0xc1   : > { %992 = vrot.lane.b32.xlu1 %v3257_v6, %s2659_s8 }
  0xc2   : > { %v1009_v10 = vpop.permute.xlu0 %1008 }
  0xc3   : > { %v913_v46 = vpop.permute.xlu1 %912  ;;  %v1236_v2 = vsel %vm1101_vm6, %v1191_v33, %v1009_v10 }
  0xc4   : > { %896 = vrot.lane.b32.xlu0 %v3212_v32, %s2659_s8  ;;  %v1107_v18 = vsel %vm1101_vm6, %v1074_v37, %v913_v46 }
  0xc5   : > { %1024 = vrot.lane.b32.xlu1 %v2808_v56, %s2658_s30 }
  0xc6   : > { %v1001_v50 = vpop.permute.xlu0 %1000 }
  0xc7   : > { %v1041_v22 = vpop.permute.xlu1 %1040  ;;  %v1227_v31 = vsel %vm1068_vm5, %v2946_v48, %v1001_v50 }
  0xc8   : > { %v1270_v21 = vsel %vm1134_vm7, %v1236_v2, %v1041_v22  ;;  %928 = vrot.lane.b32.xlu0 %v3227_v61, %s2658_s30 }
  0xc9   : > { %1056 = vrot.lane.b32.xlu1 %v2865_v43, %s2660_s9  ;;  %1551 = vmatprep.mubr.bf16.mxu0 %v1270_v21 }
  0xca   : > { %v905_v47 = vpop.permute.xlu0 %904 }
  0xcb   : > { %v945_v38 = vpop.permute.xlu1 %944  ;;  %v1098_v7 = vsel %vm1068_vm5, %v2772_v39, %v905_v47 }
  0xcc   : > { %v1142_v58 = vsel %vm1134_vm7, %v1107_v18, %v945_v38  ;;  %960 = vrot.lane.b32.xlu0 %v3202_v53, %s2660_s9 }
  0xcd   : > { %994 = vrot.lane.b32.xlu1 %v2843_v23, %s2659_s8  ;;  %1552 = vmatmul.mubr.bf16.gmra.mrb[8].mxu0 %v1142_v58 }
  0xce   : > { %v1033_v40 = vpop.permute.xlu0 %1032 }
  0xcf   : > { %v937_v42 = vpop.permute.xlu1 %936  ;;  %v1260_v17 = vsel %vm1101_vm6, %v1227_v31, %v1033_v40 }
  0xd0   : > { %898 = vrot.lane.b32.xlu0 %v3243_v15, %s2659_s8  ;;  %v1131_v0 = vsel %vm1101_vm6, %v1098_v7, %v937_v42 }
  0xd1   : > { %1026 = vrot.lane.b32.xlu1 %v2801_v51, %s2658_s30 }
  0xd2   : > { %v1065_v13 = vpop.permute.xlu0 %1064 }
  0xd3   : > { %v969_v28 = vpop.permute.xlu1 %968  ;;  %v1306_v51 = vsel %vm1134_vm7, %v1260_v17, %v1065_v13 }
  0xd4   : > { %v1178_v36 = vsel %vm1134_vm7, %v1131_v0, %v969_v28  ;;  %930 = vrot.lane.b32.xlu0 %v3257_v6, %s2658_s30  ;;  %1647 = vmatprep.mubr.bf16.mxu1 %v1306_v51 }
  0xd5   : > { %1058 = vrot.lane.b32.xlu1 %v2927_v30, %s2660_s9  ;;  %1648 = vmatmul.mubr.bf16.gmra.mrb[8].mxu1 %v1178_v36 }
  0xd6   : > { %v979_v48 = vpop.permute.xlu0 %978 }
  0xd7   : > { %v883_v39 = vpop.permute.xlu1 %882  ;;  %v1194_v35 = vsel %vm1068_vm5, %v2976_v12, %v979_v48  ;;  %v2582_v12 = vunpack.i.h.bf16 %v3111_v25 }
  0xd8   : > { %962 = vrot.lane.b32.xlu0 %v2808_v56, %s2660_s9  ;;  %v1076_v1 = vsel %vm1068_vm5, %v2869_v45, %v883_v39 }
  0xda   : > { %v1011_v16 = vpop.permute.xlu0 %1010 }
  0xdb   : > { %v915_v55 = vpop.permute.xlu1 %914  ;;  %v1238_v11 = vsel %vm1101_vm6, %v1194_v35, %v1011_v16 }
  0xdc   : > { %v1109_v46 = vsel %vm1101_vm6, %v1076_v1, %v915_v55 }
  0xde   : > { %v1003_v60 = vpop.permute.xlu0 %1002 }
  0xdf   : > { %v1043_v30 = vpop.permute.xlu1 %1042  ;;  %v1230_v56 = vsel %vm1068_vm5, %v3003_v29, %v1003_v60 }
  0xe0   : > { %v1273_v3 = vsel %vm1134_vm7, %v1238_v11, %v1043_v30  ;;  %v1262_v37 = vsel %vm1101_vm6, %v1230_v56, %v2582_v12  ;;  %v3643_v12 = vld [vmem:[#allocation7_spill] sm:$0xff] }
  0xe1   : > { %1559 = vmatprep.mubr.bf16.mxu0 %v1273_v3 }
  0xe2   : > { %v907_v33 = vpop.permute.xlu0 %906 }
  0xe3   : > { %v947_v10 = vpop.permute.xlu1 %946  ;;  %v1100_v21 = vsel %vm1068_vm5, %v2900_v9, %v907_v33 }
  0xe4   : > { %v1145_v2 = vsel %vm1134_vm7, %v1109_v46, %v947_v10 }
  0xe5   : > { %1560 = vmatmul.mubr.bf16.gmra.mrb[12].mxu0 %v1145_v2 }
  0xe6   : > { %v939_v45 = vpop.permute.xlu0 %938 }
  0xe7   : > { %v1067_v22 = vpop.permute.xlu1 %1066  ;;  %v1133_v38 = vsel %vm1101_vm6, %v1100_v21, %v939_v45 }
  0xe8   : > { %v1309_v50 = vsel %vm1134_vm7, %v1262_v37, %v1067_v22 }
  0xe9   : > { %1655 = vmatprep.mubr.bf16.mxu1 %v1309_v50 }
  0xea   : > { %v971_v29 = vpop.permute.xlu0 %970 }
  0xeb   : > { %v981_v18 = vpop.permute.xlu1 %980  ;;  %v1181_v47 = vsel %vm1134_vm7, %v1133_v38, %v971_v29 }
  0xec   : > { %1656 = vmatmul.mubr.bf16.gmra.mrb[12].mxu1 %v1181_v47  ;;  %v1197_v25 = vsel %vm1068_vm5, %v3027_v59, %v981_v18  ;;  %v3645_v18 = vld [vmem:[#allocation4_spill] sm:$0xff] }
  0xed   : > { %2485 = vmatprep.mubr.msk.bf16.mxu1 %vm1068_vm5, %v2846_v24 }
  0xee   : > { %v885_v42 = vpop.permute.xlu0 %884 }
  0xef   : > { %v1013_v58 = vpop.permute.xlu1 %1012  ;;  %v1078_v0 = vsel %vm1068_vm5, %v2938_v41, %v885_v42  ;;  %v3646_v42 = vld [vmem:[#allocation5_spill] sm:$0xff] }
  0xf0   : > { %v1240_v40 = vsel %vm1101_vm6, %v1197_v25, %v1013_v58 }
  0xf2   : > { %v917_v31 = vpop.permute.xlu0 %916 }
  0xf3   : > { %v1045_v7 = vpop.permute.xlu1 %1044  ;;  %v1111_v24 = vsel %vm1101_vm6, %v1078_v0, %v917_v31  ;;  %v3647_v31 = vld [vmem:[#allocation6_spill] sm:$0xff] }
  0xf4   : > { %v1276_v9 = vsel %vm1134_vm7, %v1240_v40, %v1045_v7  ;;  %2486 = vmatmul.mubr.msk.bf16.vlgmr.msra.gmra.mrb[16].mxu1 %vm1068_vm5, %v2958_v63 }
  0xf5   : > { %1567 = vmatprep.mubr.bf16.mxu0 %v1276_v9  ;;  %2489 = vmatprep.mubr.msk.bf16.mxu1 %vm1068_vm5, %v3015_v44 }
  0xf6   : > { %v949_v59 = vpop.permute.xlu0 %948 }
  0xf7   : > { %v983_v28 = vpop.permute.xlu1 %982  ;;  %v1148_v17 = vsel %vm1134_vm7, %v1111_v24, %v949_v59 }
  0xf8   : > { %1568 = vmatmul.mubr.bf16.gmra.mrb[16].mxu0 %v1148_v17  ;;  %v1200_v36 = vsel %vm1068_vm5, %v3075_v34, %v983_v28  ;;  %v3648_v17 = vld [vmem:[#allocation2_spill] sm:$0xff] }
  0xfa   : > { %v887_v51 = vpop.permute.xlu0 %886 }
  0xfb   : > { %v1015_v13 = vpop.permute.xlu1 %1014  ;;  %v1080_v48 = vsel %vm1068_vm5, %v2995_v27, %v887_v51 }
  0xfc   : > { %2490 = vmatmul.mubr.msk.bf16.gmra.mrb[20].mxu1 %vm1068_vm5, %v3058_v20  ;;  %v1242_v41 = vsel %vm1101_vm6, %v1200_v36, %v1015_v13 }
  0xfd   : > { %2493 = vmatprep.mubr.msk.bf16.mxu1 %vm1068_vm5, %v3086_v49 }
  0xfe   : > { %v919_v44 = vpop.permute.xlu0 %918 }
  0xff   : > { %v1047_v63 = vpop.permute.xlu1 %1046  ;;  %v1113_v34 = vsel %vm1101_vm6, %v1080_v48, %v919_v44 }
 0x100   : > { %v1279_v39 = vsel %vm1134_vm7, %v1242_v41, %v1047_v63 }
 0x101   : > { %1575 = vmatprep.mubr.bf16.mxu0 %v1279_v39 }
 0x102   : > { %v951_v16 = vpop.permute.xlu0 %950 }
 0x103   : > { %v985_v55 = vpop.permute.xlu1 %984  ;;  %v1151_v35 = vsel %vm1134_vm7, %v1113_v34, %v951_v16 }
 0x104   : > { %1576 = vmatmul.mubr.bf16.gmra.mrb[20].mxu0 %v1151_v35  ;;  %2494 = vmatmul.mubr.msk.bf16.gmra.mrb[24].mxu1 %vm1068_vm5, %v3116_v26  ;;  %v1203_v49 = vsel %vm1068_vm5, %v3103_v8, %v985_v55 }
 0x105   : > { %2497 = vmatprep.mubr.msk.bf16.mxu1 %vm1068_vm5, %v3146_v62 }
 0x106   : > { %v889_v11 = vpop.permute.xlu0 %888 }
 0x107   : > { %v1017_v20 = vpop.permute.xlu1 %1016  ;;  %v1082_v26 = vsel %vm1068_vm5, %v3043_v4, %v889_v11 }
 0x108   : > { %v1244_v27 = vsel %vm1101_vm6, %v1203_v49, %v1017_v20 }
 0x10a   : > { %v921_v1 = vpop.permute.xlu0 %920 }
 0x10b   : > { %v1049_v30 = vpop.permute.xlu1 %1048  ;;  %v1115_v8 = vsel %vm1101_vm6, %v1082_v26, %v921_v1 }
 0x10c   : > { %v1282_v60 = vsel %vm1134_vm7, %v1244_v27, %v1049_v30  ;;  %2498 = vmatmul.mubr.msk.bf16.gmra.mrb[28].mxu1 %vm1068_vm5, %v3187_v14 }
 0x10d   : > { %1583 = vmatprep.mubr.bf16.mxu0 %v1282_v60  ;;  %2501 = vmatprep.mubr.msk.bf16.mxu1 %vm1068_vm5, %v3227_v61 }
 0x10e   : > { %v953_v62 = vpop.permute.xlu0 %952 }
 0x10f   : > { %v987_v3 = vpop.permute.xlu1 %986  ;;  %v1154_v46 = vsel %vm1134_vm7, %v1115_v8, %v953_v62 }
 0x110   : > { %1584 = vmatmul.mubr.bf16.gmra.mrb[24].mxu0 %v1154_v46  ;;  %v1206_v56 = vsel %vm1068_vm5, %v3135_v54, %v987_v3 }
 0x112   : > { %v891_v33 = vpop.permute.xlu0 %890 }
 0x113   : > { %v1019_v10 = vpop.permute.xlu1 %1018  ;;  %v1084_v22 = vsel %vm1068_vm5, %v3643_v12, %v891_v33 }
 0x114   : > { %2502 = vmatmul.mubr.msk.bf16.gmra.mrb[32].mxu1 %vm1068_vm5, %v3257_v6  ;;  %v1246_v4 = vsel %vm1101_vm6, %v1206_v56, %v1019_v10  ;;  %v3644_v6 = vld [vmem:[#allocation3_spill] sm:$0xff] }
 0x115   : > { %2505 = vmatprep.mubr.msk.bf16.mxu1 %vm1068_vm5, %v2843_v23 }
 0x116   : > { %v923_v61 = vpop.permute.xlu0 %922 }
 0x117   : > { %v1051_v14 = vpop.permute.xlu1 %1050  ;;  %v1117_v54 = vsel %vm1101_vm6, %v1084_v22, %v923_v61 }
 0x118   : > { %v1285_v2 = vsel %vm1134_vm7, %v1246_v4, %v1051_v14 }
 0x119   : > { %1591 = vmatprep.mubr.bf16.mxu0 %v1285_v2 }
 0x11a   : > { %v955_v45 = vpop.permute.xlu0 %954 }
 0x11b   : > { %v989_v37 = vpop.permute.xlu1 %988  ;;  %v1157_v50 = vsel %vm1134_vm7, %v1117_v54, %v955_v45 }
 0x11c   : > { %1592 = vmatmul.mubr.bf16.gmra.mrb[28].mxu0 %v1157_v50  ;;  %2506 = vmatmul.mubr.msk.bf16.gmra.mrb[36].mxu1 %vm1068_vm5, %v3644_v6  ;;  %v1209_v23 = vsel %vm1068_vm5, %v3168_v19, %v989_v37 }
 0x11d   : > { %2509 = vmatprep.mubr.msk.bf16.mxu1 %vm1068_vm5, %v3645_v18 }
 0x11e   : > { %v893_v38 = vpop.permute.xlu0 %892 }
 0x11f   : > { %v1021_v21 = vpop.permute.xlu1 %1020  ;;  %v1086_v40 = vsel %vm1068_vm5, %v3096_v5, %v893_v38 }
 0x120   : > { %v1248_v29 = vsel %vm1101_vm6, %v1209_v23, %v1021_v21 }
 0x122   : > { %v925_v58 = vpop.permute.xlu0 %924 }
 0x123   : > { %v1053_v47 = vpop.permute.xlu1 %1052  ;;  %v1119_v19 = vsel %vm1101_vm6, %v1086_v40, %v925_v58 }
 0x124   : > { %v1288_v25 = vsel %vm1134_vm7, %v1248_v29, %v1053_v47  ;;  %2510 = vmatmul.mubr.msk.bf16.gmra.mrb[40].mxu1 %vm1068_vm5, %v3646_v42 }
 0x125   : > { %1599 = vmatprep.mubr.bf16.mxu0 %v1288_v25  ;;  %2513 = vmatprep.mubr.msk.bf16.mxu1 %vm1068_vm5, %v3647_v31 }
 0x126   : > { %v957_v9 = vpop.permute.xlu0 %956 }
 0x127   : > { %v991_v7 = vpop.permute.xlu1 %990  ;;  %v1160_v0 = vsel %vm1134_vm7, %v1119_v19, %v957_v9 }
 0x128   : > { %1600 = vmatmul.mubr.bf16.gmra.mrb[32].mxu0 %v1160_v0  ;;  %v1212_v24 = vsel %vm1068_vm5, %v3212_v32, %v991_v7 }
 0x12a   : > { %v895_v59 = vpop.permute.xlu0 %894 }
 0x12b   : > { %v1023_v28 = vpop.permute.xlu1 %1022  ;;  %v1088_v41 = vsel %vm1068_vm5, %v3128_v52, %v895_v59 }
 0x12c   : > { %2514 = vmatmul.mubr.msk.bf16.gmra.mrb[44].mxu1 %vm1068_vm5, %v3648_v17  ;;  %v1250_v5 = vsel %vm1101_vm6, %v1212_v24, %v1023_v28 }
 0x12e   : > { %v927_v36 = vpop.permute.xlu0 %926 }
 0x12f   : > { %v1055_v13 = vpop.permute.xlu1 %1054  ;;  %v1121_v44 = vsel %vm1101_vm6, %v1088_v41, %v927_v36 }
 0x130   : > { %v1291_v51 = vsel %vm1134_vm7, %v1250_v5, %v1055_v13 }
 0x131   : > { %1607 = vmatprep.mubr.bf16.mxu0 %v1291_v51 }
 0x132   : > { %v959_v39 = vpop.permute.xlu0 %958 }
 0x133   : > { %v993_v63 = vpop.permute.xlu1 %992  ;;  %v1163_v32 = vsel %vm1134_vm7, %v1121_v44, %v959_v39 }
 0x134   : > { %1608 = vmatmul.mubr.bf16.gmra.mrb[36].mxu0 %v1163_v32  ;;  %v1215_v55 = vsel %vm1068_vm5, %v3243_v15, %v993_v63 }
 0x136   : > { %v897_v34 = vpop.permute.xlu0 %896 }
 0x137   : > { %v1025_v48 = vpop.permute.xlu1 %1024  ;;  %v1090_v52 = vsel %vm1068_vm5, %v3156_v57, %v897_v34 }
 0x138   : > { %v1252_v16 = vsel %vm1101_vm6, %v1215_v55, %v1025_v48 }
 0x13a   : > { %v929_v20 = vpop.permute.xlu0 %928 }
 0x13b   : > { %v1057_v35 = vpop.permute.xlu1 %1056  ;;  %v1123_v27 = vsel %vm1101_vm6, %v1090_v52, %v929_v20 }
 0x13c   : > { %v1294_v49 = vsel %vm1134_vm7, %v1252_v16, %v1057_v35 }
 0x13d   : > { %1615 = vmatprep.mubr.bf16.mxu0 %v1294_v49 }
 0x13e   : > { %v961_v30 = vpop.permute.xlu0 %960 }
 0x13f   : > { %v995_v11 = vpop.permute.xlu1 %994  ;;  %v1166_v1 = vsel %vm1134_vm7, %v1123_v27, %v961_v30 }
 0x140   : > { %1616 = vmatmul.mubr.bf16.gmra.mrb[40].mxu0 %v1166_v1  ;;  %v1218_v15 = vsel %vm1068_vm5, %v2865_v43, %v995_v11  ;;  %v3440_v11 = vld [vmem:[%s269_s12] ss:$0 sm:$0xff] }
 0x141   : > { %v3442_v1 = vld [vmem:[%s272_s15] ss:$0 sm:$0xff] }
 0x142   : > { %v899_v26 = vpop.permute.xlu0 %898 }
 0x143   : > { %v1027_v60 = vpop.permute.xlu1 %1026  ;;  %v1092_v57 = vsel %vm1068_vm5, %v3202_v53, %v899_v26 }
 0x144   : > { %v1254_v3 = vsel %vm1101_vm6, %v1218_v15, %v1027_v60 }
 0x146   : > { %v931_v62 = vpop.permute.xlu0 %930 }
 0x147   : > { %v1059_v8 = vpop.permute.xlu1 %1058  ;;  %v1125_v10 = vsel %vm1101_vm6, %v1092_v57, %v931_v62 }
 0x148   : > { %v1297_v46 = vsel %vm1134_vm7, %v1254_v3, %v1059_v8 }
 0x149   : > { %1623 = vmatprep.mubr.bf16.mxu0 %v1297_v46 }
 0x14a   : > { %v963_v56 = vpop.permute.xlu0 %962 }
 0x14b   : > { %v1169_v33 = vsel %vm1134_vm7, %v1125_v10, %v963_v56 }
 0x14c   : > { %1624 = vmatmul.mubr.bf16.gmra.mrb[44].mxu0 %v1169_v33 }
 0x179   : > { %v2367_v4 = vpop.f32.mrb[0].mxu0 }
 0x17a   : > { %v2368_v14 = vpop.f32.mrb[1].mxu0 }
 0x17b   : > { %v2369_v43 = vadd.f32 %v2368_v14, %v2367_v4  ;;  %v2370_v61 = vpop.f32.mrb[2].mxu0 }
 0x17c   : > { %v2371_v2 = vpop.f32.mrb[3].mxu0  ;;  %v2439_v22 = vpop.f32.mrb[0].mxu1 }
 0x17d   : > { %v2372_v12 = vadd.f32 %v2371_v2, %v2370_v61  ;;  %v2440_v37 = vpop.f32.mrb[1].mxu1 }
 0x17e   : > { %v3414_v54 = vadd.f32 %v2440_v37, %v2439_v22  ;;  %v2442_v45 = vpop.f32.mrb[2].mxu1 }
 0x17f   : > { %v2443_v50 = vpop.f32.mrb[3].mxu1 }
 0x180   : > { %v3416_v6 = vadd.f32 %v2443_v50, %v2442_v45 }
 0x188   : > { %v2373_v53 = vpop.f32.mrb[4].mxu0 }
 0x189   : > { %v2374_v21 = vpop.f32.mrb[5].mxu0 }
 0x18a   : > { %v2375_v18 = vadd.f32 %v2374_v21, %v2373_v53  ;;  %v2376_v23 = vpop.f32.mrb[6].mxu0 }
 0x18b   : > { %v2377_v38 = vpop.f32.mrb[7].mxu0 }
 0x18c   : > { %v2378_v29 = vadd.f32 %v2377_v38, %v2376_v23 }
 0x190   : > { %v2445_v47 = vpop.f32.mrb[4].mxu1 }
 0x191   : > { %v2446_v58 = vpop.f32.mrb[5].mxu1 }
 0x192   : > { %v3418_v25 = vadd.f32 %v2446_v58, %v2445_v47  ;;  %v2448_v42 = vpop.f32.mrb[6].mxu1 }
 0x193   : > { %v2449_v40 = vpop.f32.mrb[7].mxu1 }
 0x194   : > { %v3420_v7 = vadd.f32 %v2449_v40, %v2448_v42 }
 0x1a0   : > { %v2379_v31 = vpop.f32.mrb[8].mxu0 }
 0x1a1   : > { %v2380_v19 = vpop.f32.mrb[9].mxu0 }
 0x1a2   : > { %v2381_v9 = vadd.f32 %v2380_v19, %v2379_v31  ;;  %v2382_v0 = vpop.f32.mrb[10].mxu0 }
 0x1a3   : > { %v2383_v28 = vpop.f32.mrb[11].mxu0 }
 0x1a4   : > { %v3422_v24 = vadd.f32 %v2383_v28, %v2382_v0 }
 0x1a8   : > { %v2451_v59 = vpop.f32.mrb[8].mxu1 }
 0x1a9   : > { %v2452_v17 = vpop.f32.mrb[9].mxu1 }
 0x1aa   : > { %v3424_v5 = vadd.f32 %v2452_v17, %v2451_v59  ;;  %v2454_v13 = vpop.f32.mrb[10].mxu1 }
 0x1ab   : > { %v2455_v36 = vpop.f32.mrb[11].mxu1 }
 0x1ac   : > { %v3426_v51 = vadd.f32 %v2455_v36, %v2454_v13 }
 0x1b8   : > { %v2385_v41 = vpop.f32.mrb[12].mxu0 }
 0x1b9   : > { %v2386_v63 = vpop.f32.mrb[13].mxu0 }
 0x1ba   : > { %v2387_v44 = vadd.f32 %v2386_v63, %v2385_v41  ;;  %v2388_v39 = vpop.f32.mrb[14].mxu0 }
 0x1bb   : > { %v2389_v32 = vpop.f32.mrb[15].mxu0 }
 0x1bc   : > { %v2390_v48 = vadd.f32 %v2389_v32, %v2388_v39 }
 0x1bf   : > { %v2457_v55 = vpop.f32.mrb[12].mxu1 }
 0x1c0   : > { %v2458_v34 = vpop.f32.mrb[13].mxu1 }
 0x1c1   : > { %v3428_v16 = vadd.f32 %v2458_v34, %v2457_v55  ;;  %v2460_v35 = vpop.f32.mrb[14].mxu1 }
 0x1c2   : > { %v2461_v20 = vpop.f32.mrb[15].mxu1 }
 0x1c3   : > { %v3430_v49 = vadd.f32 %v2461_v20, %v2460_v35 }
 0x1c7   : > { %v2487_v52 = vpop.f32.mrb[16].mxu1 }
 0x1c8   : > { %v1707_v27 = vadd.f32 %v2487_v52, %v2375_v18  ;;  %v1698_v30 = vpop.f32.mrb[17].mxu1 }
 0x1c9   : > { %v1699_v60 = vadd.f32 %v2369_v43, %v1698_v30  ;;  %v2488_v15 = vpop.f32.mrb[18].mxu1 }
 0x1ca   : > { %v1834_v26 = vmul.f32 %v3440_v11, %v1707_v27  ;;  %v1710_v3 = vadd.f32 %v2488_v15, %v2378_v29  ;;  %v1701_v8 = vpop.f32.mrb[19].mxu1 }
 0x1cb   : > { %v1832_v62 = vmul.f32 %v3440_v11, %v1699_v60  ;;  %v1702_v46 = vadd.f32 %v2372_v12, %v1701_v8  ;;  %v2391_v57 = vpop.f32.mrb[16].mxu0 }
 0x1cc   : > { %v1873_v10 = vadd.f32 %v3442_v1, %v1834_v26  ;;  %v1835_v56 = vmul.f32 %v3440_v11, %v1710_v3  ;;  %v2392_v33 = vpop.f32.mrb[17].mxu0 }
 0x1cd   : > { %v1871_v4 = vadd.f32 %v3442_v1, %v1832_v62  ;;  %v1833_v14 = vmul.f32 %v3440_v11, %v1702_v46  ;;  %v2393_v43 = vadd.f32 %v2392_v33, %v2391_v57  ;;  %v2394_v61 = vpop.f32.mrb[18].mxu0 }
 0x1ce   : > { %v1905_v2 = vmax.f32 %v1873_v10, 0.0  ;;  %v1874_v22 = vadd.f32 %v3442_v1, %v1835_v56  ;;  %v2395_v37 = vpop.f32.mrb[19].mxu0 }
 0x1cf   : > { %v1903_v12 = vmax.f32 %v1871_v4, 0.0  ;;  %v1872_v45 = vadd.f32 %v3442_v1, %v1833_v14  ;;  %v2396_v50 = vadd.f32 %v2395_v37, %v2394_v61  ;;  %v2491_v53 = vpop.f32.mrb[20].mxu1 }
 0x1d0   : > { %v2321_v21 = vpack.c.bf16 %v1905_v2, %v1905_v2  ;;  %v1906_v18 = vmax.f32 %v1874_v22, 0.0  ;;  %v1723_v23 = vadd.f32 %v2491_v53, %v2387_v44  ;;  %v1714_v38 = vpop.f32.mrb[21].mxu1 }
 0x1d1   : > { %v2319_v29 = vpack.c.bf16 %v1903_v12, %v1903_v12  ;;  %v1904_v47 = vmax.f32 %v1872_v45, 0.0  ;;  %v1715_v58 = vadd.f32 %v2381_v9, %v1714_v38  ;;  %v2492_v42 = vpop.f32.mrb[22].mxu1 }
 0x1d2   : > { %2066 = vst.msk [vmem:[%s3456_s23 + $0x8] sm:$0xf] %vm2063_vm8, %v2321_v21  ;;  %v2322_v40 = vpack.c.bf16 %v1906_v18, %v1906_v18  ;;  %v1838_v31 = vmul.f32 %v3440_v11, %v1723_v23  ;;  %v1726_v19 = vadd.f32 %v2492_v42, %v2390_v48  ;;  %v1717_v0 = vpop.f32.mrb[23].mxu1 }
 0x1d3   : > { %2064 = vst.msk [vmem:[%s3456_s23] sm:$0xf] %vm2063_vm8, %v2319_v29  ;;  %v2320_v28 = vpack.c.bf16 %v1904_v47, %v1904_v47  ;;  %v1836_v59 = vmul.f32 %v3440_v11, %v1715_v58  ;;  %v1718_v17 = vadd.f32 %v3422_v24, %v1717_v0 }
 0x1d4   : > { %2067 = vst.msk [vmem:[%s3456_s23 + $0xc] sm:$0xf] %vm2063_vm8, %v2322_v40  ;;  %v1877_v13 = vadd.f32 %v3442_v1, %v1838_v31  ;;  %v1839_v9 = vmul.f32 %v3440_v11, %v1726_v19 }
 0x1d5   : > { %2065 = vst.msk [vmem:[%s3456_s23 + $0x4] sm:$0xf] %vm2063_vm8, %v2320_v28  ;;  %v1875_v36 = vadd.f32 %v3442_v1, %v1836_v59  ;;  %v1837_v41 = vmul.f32 %v3440_v11, %v1718_v17 }
 0x1d6   : > { %v1909_v63 = vmax.f32 %v1877_v13, 0.0  ;;  %v1878_v44 = vadd.f32 %v3442_v1, %v1839_v9 }
 0x1d7   : > { %v1907_v39 = vmax.f32 %v1875_v36, 0.0  ;;  %v1876_v32 = vadd.f32 %v3442_v1, %v1837_v41  ;;  %v2397_v24 = vpop.f32.mrb[20].mxu0  ;;  %v2495_v48 = vpop.f32.mrb[24].mxu1 }
 0x1d8   : > { %v2325_v55 = vpack.c.bf16 %v1909_v63, %v1909_v63  ;;  %v1910_v34 = vmax.f32 %v1878_v44, 0.0  ;;  %v2398_v35 = vpop.f32.mrb[21].mxu0  ;;  %v1730_v20 = vpop.f32.mrb[25].mxu1 }
 0x1d9   : > { %v2323_v52 = vpack.c.bf16 %v1907_v39, %v1907_v39  ;;  %v1908_v27 = vmax.f32 %v1876_v32, 0.0  ;;  %v2399_v30 = vadd.f32 %v2398_v35, %v2397_v24  ;;  %v1731_v60 = vadd.f32 %v2393_v43, %v1730_v20  ;;  %v2400_v15 = vpop.f32.mrb[22].mxu0  ;;  %v2496_v26 = vpop.f32.mrb[26].mxu1 }
 0x1da   : > { %2070 = vst.msk [vmem:[%s3456_s23 + $0x18] sm:$0xf] %vm2063_vm8, %v2325_v55  ;;  %v2326_v3 = vpack.c.bf16 %v1910_v34, %v1910_v34  ;;  %v2401_v8 = vpop.f32.mrb[23].mxu0  ;;  %v1733_v62 = vpop.f32.mrb[27].mxu1 }
 0x1db   : > { %2068 = vst.msk [vmem:[%s3456_s23 + $0x10] sm:$0xf] %vm2063_vm8, %v2323_v52  ;;  %v2324_v46 = vpack.c.bf16 %v1908_v27, %v1908_v27  ;;  %v1739_v57 = vadd.f32 %v2495_v48, %v2399_v30  ;;  %v1840_v10 = vmul.f32 %v3440_v11, %v1731_v60  ;;  %v2402_v56 = vadd.f32 %v2401_v8, %v2400_v15 }
 0x1dc   : > { %2071 = vst.msk [vmem:[%s3456_s23 + $0x1c] sm:$0xf] %vm2063_vm8, %v2326_v3  ;;  %v1734_v33 = vadd.f32 %v2396_v50, %v1733_v62 }
 0x1dd   : > { %2069 = vst.msk [vmem:[%s3456_s23 + $0x14] sm:$0xf] %vm2063_vm8, %v2324_v46  ;;  %v1842_v4 = vmul.f32 %v3440_v11, %v1739_v57  ;;  %v1879_v14 = vadd.f32 %v3442_v1, %v1840_v10  ;;  %v1742_v43 = vadd.f32 %v2496_v26, %v2402_v56 }
 0x1de   : > { %v1841_v61 = vmul.f32 %v3440_v11, %v1734_v33 }
 0x1df   : > { %v1881_v2 = vadd.f32 %v3442_v1, %v1842_v4  ;;  %v1911_v22 = vmax.f32 %v1879_v14, 0.0  ;;  %v1843_v37 = vmul.f32 %v3440_v11, %v1742_v43  ;;  %v2499_v12 = vpop.f32.mrb[28].mxu1 }
 0x1e0   : > { %v1880_v45 = vadd.f32 %v3442_v1, %v1841_v61  ;;  %v1746_v50 = vpop.f32.mrb[29].mxu1 }
 0x1e1   : > { %v1913_v53 = vmax.f32 %v1881_v2, 0.0  ;;  %v2327_v21 = vpack.c.bf16 %v1911_v22, %v1911_v22  ;;  %v1882_v18 = vadd.f32 %v3442_v1, %v1843_v37  ;;  %v2500_v23 = vpop.f32.mrb[30].mxu1 }
 0x1e2   : > { %v1912_v38 = vmax.f32 %v1880_v45, 0.0  ;;  %v1749_v29 = vpop.f32.mrb[31].mxu1 }
 0x1e3   : > { %v2329_v47 = vpack.c.bf16 %v1913_v53, %v1913_v53  ;;  %2072 = vst.msk [vmem:[%s3456_s23 + $0x20] sm:$0xf] %vm2063_vm8, %v2327_v21  ;;  %v1914_v58 = vmax.f32 %v1882_v18, 0.0  ;;  %v2403_v42 = vpop.f32.mrb[24].mxu0 }
 0x1e4   : > { %v2328_v40 = vpack.c.bf16 %v1912_v38, %v1912_v38  ;;  %v2404_v31 = vpop.f32.mrb[25].mxu0 }
 0x1e5   : > { %2074 = vst.msk [vmem:[%s3456_s23 + $0x28] sm:$0xf] %vm2063_vm8, %v2329_v47  ;;  %v2330_v19 = vpack.c.bf16 %v1914_v58, %v1914_v58  ;;  %v2405_v0 = vadd.f32 %v2404_v31, %v2403_v42  ;;  %v2406_v28 = vpop.f32.mrb[26].mxu0 }
 0x1e6   : > { %2073 = vst.msk [vmem:[%s3456_s23 + $0x24] sm:$0xf] %vm2063_vm8, %v2328_v40  ;;  %v2407_v59 = vpop.f32.mrb[27].mxu0 }
 0x1e7   : > { %2075 = vst.msk [vmem:[%s3456_s23 + $0x2c] sm:$0xf] %vm2063_vm8, %v2330_v19  ;;  %v2408_v17 = vadd.f32 %v2407_v59, %v2406_v28  ;;  %v1747_v13 = vadd.f32 %v2405_v0, %v1746_v50  ;;  %v3500_v9 = vpop.f32.mrb[32].mxu1 }
 0x1e8   : > { %v1762_v36 = vpop.f32.mrb[33].mxu1 }
 0x1e9   : > { %v1844_v41 = vmul.f32 %v3440_v11, %v1747_v13  ;;  %v1750_v63 = vadd.f32 %v2408_v17, %v1749_v29  ;;  %v3503_v44 = vpop.f32.mrb[34].mxu1 }
 0x1ea   : > { %v3505_v39 = vpop.f32.mrb[35].mxu1 }
 0x1eb   : > { %v1883_v32 = vadd.f32 %v3442_v1, %v1844_v41  ;;  %v1845_v24 = vmul.f32 %v3440_v11, %v1750_v63 }
 0x1ed   : > { %v1915_v48 = vmax.f32 %v1883_v32, 0.0  ;;  %v1884_v55 = vadd.f32 %v3442_v1, %v1845_v24 }
 0x1ef   : > { %v2331_v34 = vpack.c.bf16 %v1915_v48, %v1915_v48  ;;  %v1916_v35 = vmax.f32 %v1884_v55, 0.0  ;;  %v2409_v20 = vpop.f32.mrb[28].mxu0  ;;  %v3510_v52 = vpop.f32.mrb[36].mxu1 }
 0x1f0   : > { %v2410_v27 = vpop.f32.mrb[29].mxu0  ;;  %v3512_v30 = vpop.f32.mrb[37].mxu1 }
 0x1f1   : > { %2076 = vst.msk [vmem:[%s3456_s23 + $0x30] sm:$0xf] %vm2063_vm8, %v2331_v34  ;;  %v2332_v60 = vpack.c.bf16 %v1916_v35, %v1916_v35  ;;  %v2411_v15 = vadd.f32 %v2410_v27, %v2409_v20  ;;  %v2412_v26 = vpop.f32.mrb[30].mxu0  ;;  %v3516_v3 = vpop.f32.mrb[38].mxu1 }
 0x1f2   : > { %v2413_v8 = vpop.f32.mrb[31].mxu0  ;;  %v3518_v62 = vpop.f32.mrb[39].mxu1 }
 0x1f3   : > { %2077 = vst.msk [vmem:[%s3456_s23 + $0x34] sm:$0xf] %vm2063_vm8, %v2332_v60  ;;  %v1755_v46 = vadd.f32 %v2499_v12, %v2411_v15  ;;  %v2414_v57 = vadd.f32 %v2413_v8, %v2412_v26 }
 0x1f5   : > { %v1846_v10 = vmul.f32 %v3440_v11, %v1755_v46  ;;  %v1758_v56 = vadd.f32 %v2500_v23, %v2414_v57 }
 0x1f7   : > { %v1885_v33 = vadd.f32 %v3442_v1, %v1846_v10  ;;  %v1847_v4 = vmul.f32 %v3440_v11, %v1758_v56  ;;  %v2511_v14 = vpop.f32.mrb[40].mxu1 }
 0x1f8   : > { %v1803_v43 = vadd.f32 %v2511_v14, %v3418_v25  ;;  %v1794_v61 = vpop.f32.mrb[41].mxu1 }
 0x1f9   : > { %v1917_v2 = vmax.f32 %v1885_v33, 0.0  ;;  %v1886_v22 = vadd.f32 %v3442_v1, %v1847_v4  ;;  %v1795_v37 = vadd.f32 %v3414_v54, %v1794_v61  ;;  %v2512_v45 = vpop.f32.mrb[42].mxu1 }
 0x1fa   : > { %v1858_v12 = vmul.f32 %v3440_v11, %v1803_v43  ;;  %v1806_v50 = vadd.f32 %v2512_v45, %v3420_v7  ;;  %v1797_v53 = vpop.f32.mrb[43].mxu1 }
 0x1fb   : > { %v2333_v21 = vpack.c.bf16 %v1917_v2, %v1917_v2  ;;  %v1918_v18 = vmax.f32 %v1886_v22, 0.0  ;;  %v1856_v23 = vmul.f32 %v3440_v11, %v1795_v37  ;;  %v1798_v25 = vadd.f32 %v3416_v6, %v1797_v53  ;;  %v2415_v38 = vpop.f32.mrb[32].mxu0 }
 0x1fc   : > { %v1897_v29 = vadd.f32 %v3442_v1, %v1858_v12  ;;  %v1859_v47 = vmul.f32 %v3440_v11, %v1806_v50  ;;  %v2416_v58 = vpop.f32.mrb[33].mxu0 }
 0x1fd   : > { %2078 = vst.msk [vmem:[%s3456_s23 + $0x38] sm:$0xf] %vm2063_vm8, %v2333_v21  ;;  %v2334_v54 = vpack.c.bf16 %v1918_v18, %v1918_v18  ;;  %v1895_v42 = vadd.f32 %v3442_v1, %v1856_v23  ;;  %v1857_v7 = vmul.f32 %v3440_v11, %v1798_v25  ;;  %v2417_v40 = vadd.f32 %v2416_v58, %v2415_v38  ;;  %v2418_v31 = vpop.f32.mrb[34].mxu0 }
 0x1fe   : > { %v1929_v19 = vmax.f32 %v1897_v29, 0.0  ;;  %v1898_v0 = vadd.f32 %v3442_v1, %v1859_v47  ;;  %v2419_v28 = vpop.f32.mrb[35].mxu0 }
 0x1ff   : > { %2079 = vst.msk [vmem:[%s3456_s23 + $0x3c] sm:$0xf] %vm2063_vm8, %v2334_v54  ;;  %v1927_v6 = vmax.f32 %v1895_v42, 0.0  ;;  %v1896_v59 = vadd.f32 %v3442_v1, %v1857_v7  ;;  %v1763_v17 = vadd.f32 %v2417_v40, %v1762_v36  ;;  %v2420_v13 = vadd.f32 %v2419_v28, %v2418_v31  ;;  %v2515_v41 = vpop.f32.mrb[44].mxu1 }
 0x200   : > { %v2345_v63 = vpack.c.bf16 %v1929_v19, %v1929_v19  ;;  %v1930_v32 = vmax.f32 %v1898_v0, 0.0  ;;  %v1819_v24 = vadd.f32 %v2515_v41, %v3428_v16  ;;  %v1810_v48 = vpop.f32.mrb[45].mxu1 }
 0x201   : > { %v2343_v55 = vpack.c.bf16 %v1927_v6, %v1927_v6  ;;  %v1928_v34 = vmax.f32 %v1896_v59, 0.0  ;;  %v1848_v35 = vmul.f32 %v3440_v11, %v1763_v17  ;;  %v1766_v20 = vadd.f32 %v2420_v13, %v3505_v39  ;;  %v2516_v27 = vpop.f32.mrb[46].mxu1 }
 0x202   : > { %2090 = vst.msk [vmem:[%s3456_s23 + $0x68] sm:$0xf] %vm2063_vm8, %v2345_v63  ;;  %v2346_v36 = vpack.c.bf16 %v1930_v32, %v1930_v32  ;;  %v1862_v60 = vmul.f32 %v3440_v11, %v1819_v24  ;;  %v1811_v15 = vadd.f32 %v3424_v5, %v1810_v48  ;;  %v1822_v26 = vadd.f32 %v2516_v27, %v3430_v49  ;;  %v1813_v16 = vpop.f32.mrb[47].mxu1 }
 0x203   : > { %2088 = vst.msk [vmem:[%s3456_s23 + $0x60] sm:$0xf] %vm2063_vm8, %v2343_v55  ;;  %v2344_v8 = vpack.c.bf16 %v1928_v34, %v1928_v34  ;;  %v1887_v46 = vadd.f32 %v3442_v1, %v1848_v35  ;;  %v1849_v57 = vmul.f32 %v3440_v11, %v1766_v20  ;;  %v1814_v39 = vadd.f32 %v3426_v51, %v1813_v16 }
 0x204   : > { %2091 = vst.msk [vmem:[%s3456_s23 + $0x6c] sm:$0xf] %vm2063_vm8, %v2346_v36  ;;  %v1901_v10 = vadd.f32 %v3442_v1, %v1862_v60  ;;  %v1860_v56 = vmul.f32 %v3440_v11, %v1811_v15  ;;  %v1863_v5 = vmul.f32 %v3440_v11, %v1822_v26 }
 0x205   : > { %2089 = vst.msk [vmem:[%s3456_s23 + $0x64] sm:$0xf] %vm2063_vm8, %v2344_v8  ;;  %v1919_v49 = vmax.f32 %v1887_v46, 0.0  ;;  %v1888_v33 = vadd.f32 %v3442_v1, %v1849_v57  ;;  %v1861_v4 = vmul.f32 %v3440_v11, %v1814_v39 }
 0x206   : > { %v1933_v14 = vmax.f32 %v1901_v10, 0.0  ;;  %v1899_v51 = vadd.f32 %v3442_v1, %v1860_v56  ;;  %v1902_v43 = vadd.f32 %v3442_v1, %v1863_v5 }
 0x207   : > { %v2335_v61 = vpack.c.bf16 %v1919_v49, %v1919_v49  ;;  %v1920_v2 = vmax.f32 %v1888_v33, 0.0  ;;  %v1900_v22 = vadd.f32 %v3442_v1, %v1861_v4  ;;  %v2421_v37 = vpop.f32.mrb[36].mxu0 }
 0x208   : > { %v2349_v45 = vpack.c.bf16 %v1933_v14, %v1933_v14  ;;  %v1931_v12 = vmax.f32 %v1899_v51, 0.0  ;;  %v1934_v50 = vmax.f32 %v1902_v43, 0.0  ;;  %v2422_v53 = vpop.f32.mrb[37].mxu0 }
 0x209   : > { %2080 = vst.msk [vmem:[%s3456_s23 + $0x40] sm:$0xf] %vm2063_vm8, %v2335_v61  ;;  %v2336_v21 = vpack.c.bf16 %v1920_v2, %v1920_v2  ;;  %v1932_v18 = vmax.f32 %v1900_v22, 0.0  ;;  %v2423_v23 = vadd.f32 %v2422_v53, %v2421_v37  ;;  %v2424_v25 = vpop.f32.mrb[38].mxu0 }
 0x20a   : > { %2094 = vst.msk [vmem:[%s3456_s23 + $0x78] sm:$0xf] %vm2063_vm8, %v2349_v45  ;;  %v2347_v38 = vpack.c.bf16 %v1931_v12, %v1931_v12  ;;  %v2350_v29 = vpack.c.bf16 %v1934_v50, %v1934_v50  ;;  %v2425_v47 = vpop.f32.mrb[39].mxu0 }
 0x20b   : > { %2081 = vst.msk [vmem:[%s3456_s23 + $0x44] sm:$0xf] %vm2063_vm8, %v2336_v21  ;;  %v2348_v58 = vpack.c.bf16 %v1932_v18, %v1932_v18  ;;  %v1771_v54 = vadd.f32 %v3500_v9, %v2423_v23  ;;  %v2426_v42 = vadd.f32 %v2425_v47, %v2424_v25 }
 0x20c   : > { %2092 = vst.msk [vmem:[%s3456_s23 + $0x70] sm:$0xf] %vm2063_vm8, %v2347_v38  ;;  %2095 = vst.msk [vmem:[%s3456_s23 + $0x7c] sm:$0xf] %vm2063_vm8, %v2350_v29 }
 0x20d   : > { %2093 = vst.msk [vmem:[%s3456_s23 + $0x74] sm:$0xf] %vm2063_vm8, %v2348_v58  ;;  %v1850_v7 = vmul.f32 %v3440_v11, %v1771_v54  ;;  %v1774_v40 = vadd.f32 %v3503_v44, %v2426_v42 }
 0x20f   : > { %v1889_v31 = vadd.f32 %v3442_v1, %v1850_v7  ;;  %v1851_v19 = vmul.f32 %v3440_v11, %v1774_v40 }
 0x211   : > { %v1921_v0 = vmax.f32 %v1889_v31, 0.0  ;;  %v1890_v28 = vadd.f32 %v3442_v1, %v1851_v19 }
 0x213   : > { %v2337_v9 = vpack.c.bf16 %v1921_v0, %v1921_v0  ;;  %v1922_v6 = vmax.f32 %v1890_v28, 0.0  ;;  %v2427_v59 = vpop.f32.mrb[40].mxu0 }
 0x214   : > { %v2428_v17 = vpop.f32.mrb[41].mxu0 }
 0x215   : > { %2082 = vst.msk [vmem:[%s3456_s23 + $0x48] sm:$0xf] %vm2063_vm8, %v2337_v9  ;;  %v2338_v13 = vpack.c.bf16 %v1922_v6, %v1922_v6  ;;  %v2429_v41 = vadd.f32 %v2428_v17, %v2427_v59  ;;  %v2430_v63 = vpop.f32.mrb[42].mxu0 }
 0x216   : > { %v2431_v32 = vpop.f32.mrb[43].mxu0 }
 0x217   : > { %2083 = vst.msk [vmem:[%s3456_s23 + $0x4c] sm:$0xf] %vm2063_vm8, %v2338_v13  ;;  %v1779_v44 = vadd.f32 %v2429_v41, %v3512_v30  ;;  %v2432_v24 = vadd.f32 %v2431_v32, %v2430_v63 }
 0x219   : > { %v1852_v48 = vmul.f32 %v3440_v11, %v1779_v44  ;;  %v1782_v55 = vadd.f32 %v2432_v24, %v3518_v62 }
 0x21b   : > { %v1891_v34 = vadd.f32 %v3442_v1, %v1852_v48  ;;  %v1853_v35 = vmul.f32 %v3440_v11, %v1782_v55 }
 0x21d   : > { %v1923_v20 = vmax.f32 %v1891_v34, 0.0  ;;  %v1892_v27 = vadd.f32 %v3442_v1, %v1853_v35 }
 0x21f   : > { %v2339_v36 = vpack.c.bf16 %v1923_v20, %v1923_v20  ;;  %v1924_v60 = vmax.f32 %v1892_v27, 0.0  ;;  %v2433_v15 = vpop.f32.mrb[44].mxu0 }
 0x220   : > { %v2434_v26 = vpop.f32.mrb[45].mxu0 }
 0x221   : > { %2084 = vst.msk [vmem:[%s3456_s23 + $0x50] sm:$0xf] %vm2063_vm8, %v2339_v36  ;;  %v2340_v30 = vpack.c.bf16 %v1924_v60, %v1924_v60  ;;  %v2435_v16 = vadd.f32 %v2434_v26, %v2433_v15  ;;  %v2436_v8 = vpop.f32.mrb[46].mxu0 }
 0x222   : > { %v2437_v46 = vpop.f32.mrb[47].mxu0 }
 0x223   : > { %2085 = vst.msk [vmem:[%s3456_s23 + $0x54] sm:$0xf] %vm2063_vm8, %v2340_v30  ;;  %v1787_v62 = vadd.f32 %v3510_v52, %v2435_v16  ;;  %v2438_v57 = vadd.f32 %v2437_v46, %v2436_v8 }
 0x225   : > { %v1854_v39 = vmul.f32 %v3440_v11, %v1787_v62  ;;  %v1790_v10 = vadd.f32 %v3516_v3, %v2438_v57 }
 0x227   : > { %v1893_v56 = vadd.f32 %v3442_v1, %v1854_v39  ;;  %v1855_v5 = vmul.f32 %v3440_v11, %v1790_v10 }
 0x229   : > { %v1925_v49 = vmax.f32 %v1893_v56, 0.0  ;;  %v1894_v33 = vadd.f32 %v3442_v1, %v1855_v5 }
 0x22b   : > { %v2341_v4 = vpack.c.bf16 %v1925_v49, %v1925_v49  ;;  %v1926_v14 = vmax.f32 %v1894_v33, 0.0 }
 0x22d   : > { %2086 = vst.msk [vmem:[%s3456_s23 + $0x58] sm:$0xf] %vm2063_vm8, %v2341_v4  ;;  %v2342_v51 = vpack.c.bf16 %v1926_v14, %v1926_v14 }
 0x22f   : > { %2087 = vst.msk [vmem:[%s3456_s23 + $0x5c] sm:$0xf] %vm2063_vm8, %v2342_v51 }
 0x230 PF: > { %s14_s19 = sadd.s32 1, %s2655_s19   ;;  %s3649_s15 = smov %s2647_s17 }
 0x231   : > { %p11_p7 = scmp.ge.s32.totalorder %s14_s19, 6   ;;  %s3650_s16 = smov %s2651_s18 }
 0x232   : > { %s3651_s17 = smov %s3654_s20  ;;  %s3652_s18 = smov %s3658_s21 }
 0x233   :  { %13 = sbr.rel (!%p11_p7) target bundleno = 3 (0x3), region = 75 }

// kernel: fanet_head_forward.7
= control target key start
LH: loop header
LB: loop body
LE: loop exit
PB: predicated region body
PF: predicated region fallthrough
CT: control target
= control target key end

     0   :  { %s2363_s15 = smov 0   ;;  %s2365_s16 = smov 0   ;;  %s3321_s0 = inlined_call_operand.vmem [shape: bf16[2,2,16,16,8], index: 0, kind: input, shape index: {}]   ;;  %s3322_s1 = inlined_call_operand.vmem [shape: bf16[2,72,8], index: 1, kind: input, shape index: {}]   ;;  %s3323_s2 = inlined_call_operand.vmem [shape: f32[2,1,8], index: 2, kind: input, shape index: {}]   ;;  %s3324_s3 = inlined_call_operand.vmem [shape: f32[2,1,8], index: 3, kind: input, shape index: {}]   ;;  %s3325_s4 = inlined_call_operand.vmem [shape: bf16[2,2,16,16,8], index: 4, kind: output, shape index: {}]  }
   0x1   :  { %s2367_s17 = smov 0   ;;  %s2369_s18 = smov 0  }
   0x2   :  { %s2371_s19 = smov 0  }
   0x3 LB: > { %s23_s20 = sadd.s32 1, %s2319_s17  ;;  %s26_s21 = sadd.s32 1, %s2323_s18  ;;  %s2327_s19 = sphi %s2371_s19, %s14_s19   ;;  %s2323_s18 = sphi %s2369_s18, %s3331_s18   ;;  %s2319_s17 = sphi %s2367_s17, %s3330_s17   ;;  %s2315_s16 = sphi %s2365_s16, %s3329_s16   ;;  %s2311_s15 = sphi %s2363_s15, %s3328_s15  }
   0x4   : > { %p24_p0 = scmp.ge.s32.totalorder %s23_s20, 2  ;;  %p2030_p1 = scmp.ge.s32.totalorder %s2327_s19, 1 }
   0x5   : > { %p208_p2 = scmp.lt.s32.totalorder %s2327_s19, 5 }
   0x6   : > { %s3333_s20 = smov (%p24_p0, %s23_s20), 0  ;;  %s3335_s21 = smov (!%p24_p0, %s26_s21), %s2323_s18 }
   0x7   : > { %p209_p3 = pnand %p2030_p1, %p208_p2  ;;  %p28_p4 = scmp.ge.s32.totalorder %s3335_s21, 2 }
   0x8   : > { %vm548_vm0 = vcmask (!%p209_p3), 1040384   ;;  %vm549_vm1 = vsmask.f32 (!%p209_p3), 256  ;;  %v2329_v0 = vmov (!%p209_p3), 0   ;;  %p253_p5 = scmp.lt.s32.totalorder (!%p209_p3), %s2315_s16, 1  ;;  %p255_p6 = scmp.lt.s32.totalorder (!%p209_p3), %s2311_s15, 1 }
   0x9   : > { %s3337_s21 = smov (%p28_p4, %s3335_s21), 0  ;;  %212 = sbr.rel (%p209_p3) target bundleno = 621 (0x26d), region = 36 }
   0xa   : > { %v398_v1 = vrot.slane (!%p209_p3), %v2329_v0, 7  ;;  %vm2395_vm2 = vmand (!%p209_p3), %vm548_vm0, %vm549_vm1  ;;  %vm810_vm3 = vcmask (!%p209_p3), 1046528   ;;  %s2330_s24 = smov (!%p209_p3), 16   ;;  %vm585_vm4 = vsmask.f32 (!%p209_p3), 7424  ;;  %s2331_s30 = smov (!%p209_p3), 8  }
   0xb   : > { %s2332_s5 = smov (!%p209_p3), 24   ;;  %s2333_s6 = smov (!%p209_p3), 32   ;;  %vm1465_vm5 = vcmask (!%p209_p3), 1043456   ;;  %vm1132_vm6 = vcmask (!%p209_p3), 64512   ;;  %vm1165_vm7 = vcmask (!%p209_p3), 130048   ;;  %vm1198_vm8 = vcmask (!%p209_p3), 195584  }
   0xc   : > { %v2402_v3 = vsel (!%p209_p3), %vm2395_vm2, 0, %v398_v1  ;;  %v568_v4 = vsel (!%p209_p3), %vm2395_vm2, %v398_v1, 0  ;;  %s2334_s11 = smov (!%p209_p3), 40   ;;  %s2335_s12 = smov (!%p209_p3), 48   ;;  %vm1231_vm9 = vcmask (!%p209_p3), 261120   ;;  %vm1264_vm10 = vcmask (!%p209_p3), 326656  }
   0xd   : > { %v811_v5 = vrot.slane (!%p209_p3), %v2402_v3, 1  ;;  %v812_v6 = vrot.slane (!%p209_p3), %v568_v4, 1  ;;  %v587_v7 = vshrl.u32 (!%p209_p3), %v2402_v3, 16  ;;  %v589_v8 = vshll.u32 (!%p209_p3), %v2402_v3, 16  ;;  %s2336_s13 = smov (!%p209_p3), 56   ;;  %s2337_s14 = smov (!%p209_p3), 64  }
   0xe   : > { %v594_v9 = vshll.u32 (!%p209_p3), %v568_v4, 16  ;;  %vm1297_vm11 = vcmask (!%p209_p3), 392192   ;;  %vm1330_vm12 = vcmask (!%p209_p3), 457728   ;;  %vm1363_vm13 = vcmask (!%p209_p3), 523264  }
   0xf   : > { %v2414_v10 = vsel (!%p209_p3), %vm810_vm3, %v811_v5, %v812_v6  ;;  %v591_v11 = vrot.slane (!%p209_p3), %v589_v8, 1  ;;  %vm1432_vm14 = vcmask (!%p209_p3), 588800   ;;  %vm1868_vm15 = vcmask (!%p209_p3), 60416  }
  0x10   : > { %s3339_s16 = smov (!%p253_p5, %s2315_s16), 1  ;;  %s3341_s15 = smov (!%p255_p6, %s2311_s15), 1  ;;  %908 = vrot.lane.b32.xlu0 %v2414_v10, %s2330_s24  ;;  %v596_v12 = vrot.slane %v594_v9, 1 }
  0x11   : > { %s2032_s22 = sshll.u32 %s3339_s16, 6  ;;  %s2031_s23 = sshll.u32 %s3341_s15, 5  ;;  %v592_v13 = vor.u32 %v591_v11, %v587_v7 }
  0x12   : > { %s2418_s25 = sadd.s32 %s2032_s22, %s2031_s23  ;;  %s2218_s7 = smul.u32 36, %s3339_s16 }
  0x13   : > { %s2033_s26 = sshll.u32 %s2418_s25, 2  ;;  %v2429_v14 = vsel %vm585_vm4, %v592_v13, %v596_v12  ;;  %s269_s23 = scalar_lea.vmem %s3323_s2, %s3339_s16 }
  0x14   : > { %s2426_s29 = scalar_lea.vmem %s3321_s0, %s2033_s26  ;;  %876 = vrot.lane.b32.xlu0 %v2429_v14, %s2331_s30  ;;  %s2526_s10 = scalar_lea.vmem %s3322_s1, %s2218_s7 }
  0x15   : > { %v2268_v15 = vld [vmem:[%s2426_s29 + $0x40] sm:$0xff]   ;;  %v2270_v21 = vld [vmem:[%s2426_s29 + $0x48] sm:$0xff]   ;;  %v2272_v24 = vld [vmem:[%s2426_s29 + $0x38] sm:$0xff]   ;;  %s272_s28 = scalar_lea.vmem %s3324_s3, %s3339_s16 }
  0x16   : > { %v2269_v16 = vld [vmem:[%s2426_s29] sm:$0xff]   ;;  %v459_v17 = vshrl.u32 %v2268_v15, 16  ;;  %v462_v18 = vshll.u32 %v2268_v15, 16  ;;  %v2271_v22 = vld [vmem:[%s2426_s29 + $0x8] sm:$0xff]   ;;  %v466_v26 = vshrl.u32 %v2270_v21, 16  ;;  %v469_v27 = vshll.u32 %v2270_v21, 16 }
  0x17   : > { %v403_v19 = vshrl.u32 %v2269_v16, 16  ;;  %v406_v20 = vshll.u32 %v2269_v16, 16  ;;  %v410_v28 = vshrl.u32 %v2271_v22, 16  ;;  %v413_v30 = vshll.u32 %v2271_v22, 16 }
  0x18   : > { %v461_v23 = vrot.slane %v459_v17, 7  ;;  %v452_v31 = vshrl.u32 %v2272_v24, 16  ;;  %v455_v32 = vshll.u32 %v2272_v24, 16  ;;  %v468_v34 = vrot.slane %v466_v26, 7 }
  0x19   : > { %v405_v25 = vrot.slane %v403_v19, 7  ;;  %v412_v35 = vrot.slane %v410_v28, 7  ;;  %v2273_v19 = vld [vmem:[%s2426_s29 + $0x10] sm:$0xff]  }
  0x1a   : > { %v464_v29 = vor.u32 %v462_v18, %v461_v23  ;;  %v454_v38 = vrot.slane %v452_v31, 7  ;;  %v471_v40 = vor.u32 %v469_v27, %v468_v34  ;;  %v577_v46 = vsel %vm2395_vm2, %v461_v23, 0 }
  0x1b   : > { %v408_v33 = vor.u32 %v406_v20, %v405_v25  ;;  %v569_v36 = vsel %vm2395_vm2, %v405_v25, 0  ;;  %v415_v41 = vor.u32 %v413_v30, %v412_v35  ;;  %v839_v54 = vrot.slane %v577_v46, 1 }
  0x1c   : > { %v2442_v37 = vsel %vm2395_vm2, 0, %v464_v29  ;;  %v815_v42 = vrot.slane %v569_v36, 1  ;;  %v457_v43 = vor.u32 %v455_v32, %v454_v38  ;;  %v576_v44 = vsel %vm2395_vm2, %v454_v38, 0 }
  0x1d   : > { %956 = vrot.lane.b32.xlu1 %v2442_v37, %s2332_s5  ;;  %v2448_v39 = vsel %vm2395_vm2, 0, %v408_v33  ;;  %v2459_v47 = vsel %vm2395_vm2, 0, %v471_v40  ;;  %v2463_v48 = vsel %vm2395_vm2, 0, %v415_v41  ;;  %v836_v49 = vrot.slane %v576_v44, 1  ;;  %v2274_v33 = vld [vmem:[%s2426_s29 + $0x50] sm:$0xff]  }
  0x1e   : > { %940 = vrot.lane.b32.xlu0 %v2448_v39, %s2332_s5  ;;  %v814_v45 = vrot.slane %v2448_v39, 1  ;;  %v690_v50 = vshll.u32 %v576_v44, 16  ;;  %v2467_v51 = vsel %vm2395_vm2, 0, %v457_v43  ;;  %v838_v52 = vrot.slane %v2442_v37, 1  ;;  %v2281_v44 = vld [vmem:[%s2526_s10] sm:$0xff]  }
  0x1f   : > { %v835_v53 = vrot.slane %v2467_v51, 1  ;;  %v683_v55 = vshrl.u32 %v2467_v51, 16  ;;  %v685_v56 = vshll.u32 %v2467_v51, 16  ;;  %v599_v58 = vshrl.u32 %v2448_v39, 16  ;;  %2164 = vmatprep.subr.bf16.mxu0 %v2281_v44  ;;  %2206 = vmatprep.subr.bf16.mxu1 %v2281_v44 }
  0x20   : > { %v816_v57 = vsel %vm810_vm3, %v814_v45, %v815_v42  ;;  %v601_v59 = vshll.u32 %v2448_v39, 16  ;;  %v606_v60 = vshll.u32 %v569_v36, 16  ;;  %v692_v63 = vrot.slane %v690_v50, 1  ;;  %2165 = vmatpush3.bf16.msra.mxu0 %v2281_v44  ;;  %2211 = vmatpush3.bf16.msra.mxu1 %v2281_v44 }
  0x21   : > { %958 = vrot.lane.b32.xlu1 %v2459_v47, %s2332_s5  ;;  %v2481_v61 = vsel %vm810_vm3, %v835_v53, %v836_v49  ;;  %v687_v62 = vrot.slane %v685_v56, 1  ;;  %v613_v0 = vshll.u32 %v2463_v48, 16  ;;  %v570_v4 = vsel %vm2395_vm2, %v412_v35, 0  ;;  %v2282_v53 = vld [vmem:[%s2526_s10 + $0x8] sm:$0xff]  }
  0x22   : > { %942 = vrot.lane.b32.xlu0 %v2463_v48, %s2332_s5  ;;  %v603_v1 = vrot.slane %v601_v59, 1  ;;  %v697_v5 = vshll.u32 %v2442_v37, 16  ;;  %v2490_v6 = vsel %vm810_vm3, %v838_v52, %v839_v54  ;;  %v608_v8 = vrot.slane %v606_v60, 1  ;;  %2166 = vmatprep.subr.bf16.mxu0 %v2282_v53  ;;  %v2283_v59 = vld [vmem:[%s2526_s10 + $0x10] sm:$0xff]  }
  0x23   : > { %v688_v7 = vor.u32 %v687_v62, %v683_v55  ;;  %v611_v9 = vshrl.u32 %v2463_v48, 16  ;;  %v695_v12 = vshrl.u32 %v2442_v37, 16  ;;  %v702_v15 = vshll.u32 %v577_v46, 16  ;;  %2207 = vmatprep.subr.bf16.mxu1 %v2282_v53 }
  0x24   : > { %v604_v11 = vor.u32 %v603_v1, %v599_v58  ;;  %v699_v13 = vrot.slane %v697_v5, 1  ;;  %v615_v17 = vrot.slane %v613_v0, 1  ;;  %v618_v18 = vshll.u32 %v570_v4, 16  ;;  %2167 = vmatpush3.bf16.msra.mxu0 %v2282_v53  ;;  %2212 = vmatpush3.bf16.msra.mxu1 %v2282_v53 }
  0x25   : > { %924 = vrot.lane.b32.xlu1 %v2481_v61, %s2330_s24  ;;  %v2496_v16 = vsel %vm585_vm4, %v688_v7, %v692_v63  ;;  %v704_v22 = vrot.slane %v702_v15, 1  ;;  %v709_v23 = vshll.u32 %v2459_v47, 16  ;;  %v578_v26 = vsel %vm2395_vm2, %v468_v34, 0  ;;  %2168 = vmatprep.subr.bf16.mxu0 %v2283_v59 }
  0x26   : > { %910 = vrot.lane.b32.xlu0 %v816_v57, %s2330_s24  ;;  %v609_v20 = vsel %vm585_vm4, %v604_v11, %v608_v8  ;;  %v700_v21 = vor.u32 %v699_v13, %v695_v12  ;;  %v616_v24 = vor.u32 %v615_v17, %v611_v9  ;;  %v620_v25 = vrot.slane %v618_v18, 1  ;;  %2208 = vmatprep.subr.bf16.mxu1 %v2283_v59  ;;  %v2286_v17 = vld [vmem:[%s2526_s10 + $0x20] ss:$0 sps:$4 sm:$0xff]  }
  0x27   : > { %v417_v27 = vshrl.u32 %v2273_v19, 16  ;;  %v707_v29 = vshrl.u32 %v2459_v47, 16  ;;  %v711_v30 = vrot.slane %v709_v23, 1  ;;  %v714_v31 = vshll.u32 %v578_v26, 16 }
  0x28   : > { %v2510_v28 = vsel %vm585_vm4, %v700_v21, %v704_v22  ;;  %v2514_v32 = vsel %vm585_vm4, %v616_v24, %v620_v25  ;;  %v420_v36 = vshll.u32 %v2273_v19, 16  ;;  %v817_v40 = vrot.slane %v2463_v48, 1  ;;  %2169 = vmatpush3.bf16.msra.mxu0 %v2283_v59  ;;  %2213 = vmatpush3.bf16.msra.mxu1 %v2283_v59  ;;  %v2275_v24 = vld [vmem:[%s2426_s29 + $0x18] sm:$0xff]  }
  0x29   : > { %926 = vrot.lane.b32.xlu1 %v2490_v6, %s2330_s24  ;;  %v419_v35 = vrot.slane %v417_v27, 7  ;;  %v712_v34 = vor.u32 %v711_v30, %v707_v29  ;;  %v716_v38 = vrot.slane %v714_v31, 1  ;;  %v818_v41 = vrot.slane %v570_v4, 1  ;;  %v2284_v4 = vld [vmem:[%s2526_s10 + $0x18] sm:$0xff]  }
  0x2a   : > { %892 = vrot.lane.b32.xlu0 %v2496_v16, %s2331_s30  ;;  %v473_v42 = vshrl.u32 %v2274_v33, 16  ;;  %v476_v50 = vshll.u32 %v2274_v33, 16  ;;  %v841_v54 = vrot.slane %v2459_v47, 1  ;;  %v842_v55 = vrot.slane %v578_v26, 1  ;;  %2170 = vmatprep.subr.bf16.mxu0 %v2284_v4  ;;  %v2276_v30 = vld [vmem:[%s2426_s29 + $0x58] sm:$0xff]  }
  0x2b   : > { %v422_v43 = vor.u32 %v420_v36, %v419_v35  ;;  %v2533_v45 = vsel %vm585_vm4, %v712_v34, %v716_v38  ;;  %v2536_v46 = vsel %vm810_vm3, %v817_v40, %v818_v41  ;;  %v571_v58 = vsel %vm2395_vm2, %v419_v35, 0  ;;  %2209 = vmatprep.subr.bf16.mxu1 %v2284_v4 }
  0x2c   : > { %v475_v49 = vrot.slane %v473_v42, 7  ;;  %v2557_v60 = vsel %vm810_vm3, %v841_v54, %v842_v55  ;;  %v630_v0 = vshll.u32 %v571_v58, 16  ;;  %2171 = vmatpush3.bf16.msra.mxu0 %v2284_v4  ;;  %2214 = vmatpush3.bf16.msra.mxu1 %v2284_v4  ;;  %v821_v23 = vrot.slane %v571_v58, 1 }
  0x2d   : > { %878 = vrot.lane.b32.xlu1 %v609_v20, %s2331_s30  ;;  %v2540_v52 = vsel %vm2395_vm2, 0, %v422_v43  ;;  %2216 = vmatprep.subr.msk.bf16.mxu0 %vm1465_vm5, %v2286_v17  ;;  %v424_v26 = vshrl.u32 %v2275_v24, 16  ;;  %v427_v33 = vshll.u32 %v2275_v24, 16  ;;  %v480_v35 = vshrl.u32 %v2276_v30, 16 }
  0x2e   : > { %972 = vrot.lane.b32.xlu0 %v609_v20, %s2333_s6  ;;  %v625_v56 = vshll.u32 %v2540_v52, 16  ;;  %v623_v62 = vshrl.u32 %v2540_v52, 16  ;;  %v632_v8 = vrot.slane %v630_v0, 1  ;;  %v579_v9 = vsel %vm2395_vm2, %v475_v49, 0  ;;  %2217 = vmatprep.subr.msk.bf16.mxu1 %vm1465_vm5, %v2286_v17 }
  0x2f   : > { %v726_v13 = vshll.u32 %v579_v9, 16  ;;  %v1467_v20 = vsel %vm1465_vm5, %v2286_v17, 0  ;;  %v820_v22 = vrot.slane %v2540_v52, 1  ;;  %v845_v29 = vrot.slane %v579_v9, 1 }
  0x30   : > { %v627_v63 = vrot.slane %v625_v56, 1  ;;  %2173 = vmatpush3.bf16.msra.mxu0 %v1467_v20  ;;  %2215 = vmatpush3.bf16.msra.mxu1 %v1467_v20  ;;  %v426_v31 = vrot.slane %v424_v26, 7  ;;  %v482_v34 = vrot.slane %v480_v35, 7  ;;  %v483_v38 = vshll.u32 %v2276_v30, 16 }
  0x31   : > { %894 = vrot.lane.b32.xlu1 %v2510_v28, %s2331_s30  ;;  %v728_v19 = vrot.slane %v726_v13, 1  ;;  %v822_v25 = vsel %vm810_vm3, %v820_v22, %v821_v23 }
  0x32   : > { %974 = vrot.lane.b32.xlu0 %v2514_v32, %s2333_s6  ;;  %v628_v7 = vor.u32 %v627_v63, %v623_v62  ;;  %v429_v36 = vor.u32 %v427_v33, %v426_v31  ;;  %v485_v42 = vor.u32 %v483_v38, %v482_v34  ;;  %v572_v43 = vsel %vm2395_vm2, %v426_v31, 0  ;;  %v2278_v63 = vld [vmem:[%s2426_s29 + $0x60] sm:$0xff]  }
  0x33   : > { %v580_v56 = vsel %vm2395_vm2, %v482_v34, 0  ;;  %v824_v9 = vrot.slane %v572_v43, 1 }
  0x34   : > { %v633_v15 = vsel %vm585_vm4, %v628_v7, %v632_v8  ;;  %v2610_v40 = vsel %vm2395_vm2, 0, %v429_v36 }
  0x35   : > { %988 = vrot.lane.b32.xlu1 %v2510_v28, %s2333_s6  ;;  %v637_v41 = vshll.u32 %v2610_v40, 16  ;;  %v635_v44 = vshrl.u32 %v2610_v40, 16  ;;  %v823_v8 = vrot.slane %v2610_v40, 1 }
  0x36   : > { %1004 = vrot.lane.b32.xlu0 %v816_v57, %s2334_s11  ;;  %v478_v57 = vor.u32 %v476_v50, %v475_v49  ;;  %v2625_v49 = vsel %vm2395_vm2, 0, %v485_v42  ;;  %v2277_v50 = vld [vmem:[%s2426_s29 + $0x20] sm:$0xff]  }
  0x37   : > { %v733_v53 = vshll.u32 %v2625_v49, 16  ;;  %v731_v58 = vshrl.u32 %v2625_v49, 16  ;;  %v434_v4 = vshll.u32 %v2277_v50, 16  ;;  %v847_v20 = vrot.slane %v2625_v49, 1 }
  0x38   : > { %v2562_v1 = vsel %vm2395_vm2, 0, %v478_v57  ;;  %v431_v57 = vshrl.u32 %v2277_v50, 16 }
  0x39   : > { %990 = vrot.lane.b32.xlu1 %v2533_v45, %s2333_s6  ;;  %v721_v5 = vshll.u32 %v2562_v1, 16  ;;  %v719_v11 = vshrl.u32 %v2562_v1, 16  ;;  %v844_v27 = vrot.slane %v2562_v1, 1  ;;  %v735_v59 = vrot.slane %v733_v53, 1 }
  0x3a   : > { %1006 = vrot.lane.b32.xlu0 %v2536_v46, %s2334_s11  ;;  %v433_v0 = vrot.slane %v431_v57, 7 }
  0x3b   : > { %v723_v12 = vrot.slane %v721_v5, 1  ;;  %v736_v5 = vor.u32 %v735_v59, %v731_v58 }
  0x3c   : > { %v573_v24 = vsel %vm2395_vm2, %v433_v0, 0 }
  0x3d   : > { %1020 = vrot.lane.b32.xlu1 %v2490_v6, %s2334_s11  ;;  %v724_v18 = vor.u32 %v723_v12, %v719_v11  ;;  %v487_v11 = vshrl.u32 %v2278_v63, 16  ;;  %v436_v12 = vor.u32 %v434_v4, %v433_v0 }
  0x3e   : > { %1036 = vrot.lane.b32.xlu0 %v2463_v48, %s2335_s12 }
  0x3f   : > { %v2587_v21 = vsel %vm585_vm4, %v724_v18, %v728_v19  ;;  %v489_v17 = vrot.slane %v487_v11, 7  ;;  %v490_v18 = vshll.u32 %v2278_v63, 16  ;;  %v2653_v19 = vsel %vm2395_vm2, 0, %v436_v12 }
  0x40   : > { %v649_v22 = vshll.u32 %v2653_v19, 16  ;;  %v647_v26 = vshrl.u32 %v2653_v19, 16  ;;  %v826_v53 = vrot.slane %v2653_v19, 1 }
  0x41   : > { %1022 = vrot.lane.b32.xlu1 %v2557_v60, %s2334_s11  ;;  %v492_v23 = vor.u32 %v490_v18, %v489_v17  ;;  %v581_v35 = vsel %vm2395_vm2, %v489_v17, 0 }
  0x42   : > { %1038 = vrot.lane.b32.xlu0 %v2540_v52, %s2335_s12  ;;  %v851_v0 = vrot.slane %v581_v35, 1 }
  0x43   : > { %v2671_v30 = vsel %vm2395_vm2, 0, %v492_v23 }
  0x44   : > { %v745_v31 = vshll.u32 %v2671_v30, 16  ;;  %v743_v34 = vshrl.u32 %v2671_v30, 16  ;;  %v850_v63 = vrot.slane %v2671_v30, 1 }
  0x45   : > { %1052 = vrot.lane.b32.xlu1 %v2459_v47, %s2335_s12 }
  0x46   : > { %1068 = vrot.lane.b32.xlu0 %v2514_v32, %s2336_s13  ;;  %v747_v38 = vrot.slane %v745_v31, 1 }
  0x49   : > { %1054 = vrot.lane.b32.xlu1 %v2562_v1, %s2335_s12 }
  0x4a   : > { %1070 = vrot.lane.b32.xlu0 %v633_v15, %s2336_s13 }
  0x4d   : > { %1084 = vrot.lane.b32.xlu1 %v2533_v45, %s2336_s13 }
  0x4e   : > { %1100 = vrot.lane.b32.xlu0 %v2536_v46, %s2337_s14 }
  0x51   : > { %1086 = vrot.lane.b32.xlu1 %v2587_v21, %s2336_s13 }
  0x52   : > { %880 = vrot.lane.b32.xlu0 %v2514_v32, %s2331_s30  ;;  %v846_v32 = vsel %vm810_vm3, %v844_v27, %v845_v29  ;;  %v651_v27 = vrot.slane %v649_v22, 1  ;;  %v654_v29 = vshll.u32 %v573_v24, 16 }
  0x54   : > { %v652_v33 = vor.u32 %v651_v27, %v647_v26 }
  0x55   : > { %1116 = vrot.lane.b32.xlu1 %v2557_v60, %s2337_s14 }
  0x56   : > { %1102 = vrot.lane.b32.xlu0 %v822_v25, %s2337_s14 }
  0x59   : > { %896 = vrot.lane.b32.xlu1 %v2533_v45, %s2331_s30  ;;  %v639_v45 = vrot.slane %v637_v41, 1  ;;  %v750_v41 = vshll.u32 %v581_v35, 16 }
  0x5a   : > { %882 = vrot.lane.b32.xlu0 %v633_v15, %s2331_s30 }
  0x5b   : > { %v640_v54 = vor.u32 %v639_v45, %v635_v44  ;;  %v748_v44 = vor.u32 %v747_v38, %v743_v34  ;;  %v752_v45 = vrot.slane %v750_v41, 1  ;;  %v2285_v41 = vld [vmem:[%s2426_s29 + $0x30] sm:$0xff]  }
  0x5d   : > { %1118 = vrot.lane.b32.xlu1 %v846_v32, %s2337_s14 }
  0x5e   : > { %912 = vrot.lane.b32.xlu0 %v2536_v46, %s2330_s24  ;;  %v642_v46 = vshll.u32 %v572_v43, 16 }
  0x60   : > { %v644_v55 = vrot.slane %v642_v46, 1  ;;  %v2699_v46 = vsel %vm585_vm4, %v748_v44, %v752_v45 }
  0x61   : > { %898 = vrot.lane.b32.xlu1 %v2587_v21, %s2331_s30 }
  0x62   : > { %914 = vrot.lane.b32.xlu0 %v822_v25, %s2330_s24  ;;  %v645_v62 = vsel %vm585_vm4, %v640_v54, %v644_v55  ;;  %v827_v54 = vrot.slane %v573_v24, 1 }
  0x64   : > { %v2713_v58 = vsel %vm810_vm3, %v826_v53, %v827_v54 }
  0x65   : > { %928 = vrot.lane.b32.xlu1 %v2557_v60, %s2330_s24  ;;  %v738_v60 = vshll.u32 %v580_v56, 16 }
  0x66   : > { %944 = vrot.lane.b32.xlu0 %v2540_v52, %s2332_s5 }
  0x67   : > { %v740_v7 = vrot.slane %v738_v60, 1 }
  0x69   : > { %930 = vrot.lane.b32.xlu1 %v846_v32, %s2330_s24  ;;  %v741_v13 = vsel %vm585_vm4, %v736_v5, %v740_v7 }
  0x6a   : > { %946 = vrot.lane.b32.xlu0 %v2610_v40, %s2332_s5 }
  0x6d   : > { %960 = vrot.lane.b32.xlu1 %v2562_v1, %s2332_s5 }
  0x6e   : > { %976 = vrot.lane.b32.xlu0 %v633_v15, %s2333_s6  ;;  %v2649_v15 = vsel %vm810_vm3, %v823_v8, %v824_v9  ;;  %v2731_v9 = vsel %vm810_vm3, %v850_v63, %v851_v0 }
  0x71   : > { %962 = vrot.lane.b32.xlu1 %v2625_v49, %s2332_s5 }
  0x72   : > { %978 = vrot.lane.b32.xlu0 %v645_v62, %s2333_s6 }
  0x75   : > { %992 = vrot.lane.b32.xlu1 %v2587_v21, %s2333_s6  ;;  %v848_v21 = vrot.slane %v580_v56, 1  ;;  %v2279_v56 = vld [vmem:[%s2426_s29 + $0x28] sm:$0xff]  }
  0x76   : > { %1008 = vrot.lane.b32.xlu0 %v822_v25, %s2334_s11  ;;  %v438_v60 = vshrl.u32 %v2279_v56, 16  ;;  %v441_v8 = vshll.u32 %v2279_v56, 16 }
  0x77   : > { %v2666_v25 = vsel %vm810_vm3, %v847_v20, %v848_v21 }
  0x78   : > { %v440_v7 = vrot.slane %v438_v60, 7  ;;  %v445_v60 = vshrl.u32 %v2285_v41, 16 }
  0x79   : > { %994 = vrot.lane.b32.xlu1 %v741_v13, %s2333_s6 }
  0x7a   : > { %1010 = vrot.lane.b32.xlu0 %v2649_v15, %s2334_s11  ;;  %v443_v18 = vor.u32 %v441_v8, %v440_v7 }
  0x7c   : > { %v2747_v23 = vsel %vm2395_vm2, 0, %v443_v18 }
  0x7d   : > { %1024 = vrot.lane.b32.xlu1 %v846_v32, %s2334_s11  ;;  %v656_v32 = vrot.slane %v654_v29, 1  ;;  %v574_v29 = vsel %vm2395_vm2, %v440_v7, 0 }
  0x7e   : > { %1040 = vrot.lane.b32.xlu0 %v2610_v40, %s2335_s12  ;;  %v666_v35 = vshll.u32 %v574_v29, 16 }
  0x7f   : > { %v2687_v42 = vsel %vm585_vm4, %v652_v33, %v656_v32  ;;  %v659_v33 = vshrl.u32 %v2747_v23, 16 }
  0x80   : > { %v668_v53 = vrot.slane %v666_v35, 1 }
  0x81   : > { %1026 = vrot.lane.b32.xlu1 %v2666_v25, %s2334_s11 }
  0x82   : > { %1042 = vrot.lane.b32.xlu0 %v2653_v19, %s2335_s12  ;;  %v2680_v36 = vpop.permute.xlu0 %908 }
  0x85   : > { %1056 = vrot.lane.b32.xlu1 %v2625_v49, %s2335_s12 }
  0x86   : > { %1072 = vrot.lane.b32.xlu0 %v645_v62, %s2336_s13  ;;  %v2693_v43 = vpop.permute.xlu0 %876 }
  0x89   : > { %1058 = vrot.lane.b32.xlu1 %v2671_v30, %s2335_s12 }
  0x8a   : > { %1074 = vrot.lane.b32.xlu0 %v2687_v42, %s2336_s13 }
  0x8d   : > { %1088 = vrot.lane.b32.xlu1 %v741_v13, %s2336_s13 }
  0x8e   : > { %1104 = vrot.lane.b32.xlu0 %v2649_v15, %s2337_s14 }
  0x8f   : > { %v2701_v50 = vpop.permute.xlu1 %956 }
  0x90   : > { %v2704_v55 = vpop.permute.xlu0 %940 }
  0x91   : > { %1090 = vrot.lane.b32.xlu1 %v2699_v46, %s2336_s13 }
  0x92   : > { %884 = vrot.lane.b32.xlu0 %v645_v62, %s2331_s30  ;;  %v2280_v62 = vld [vmem:[%s2426_s29 + $0x68] sm:$0xff]  }
  0x93   : > { %v2710_v57 = vpop.permute.xlu1 %958  ;;  %v494_v12 = vshrl.u32 %v2280_v62, 16  ;;  %v497_v21 = vshll.u32 %v2280_v62, 16 }
  0x94   : > { %v2715_v59 = vpop.permute.xlu0 %942 }
  0x95   : > { %1120 = vrot.lane.b32.xlu1 %v2666_v25, %s2337_s14 }
  0x96   : > { %1106 = vrot.lane.b32.xlu0 %v2713_v58, %s2337_s14 }
  0x97   : > { %v2722_v4 = vpop.permute.xlu1 %924 }
  0x98   : > { %v2725_v5 = vpop.permute.xlu0 %910 }
  0x99   : > { %900 = vrot.lane.b32.xlu1 %v741_v13, %s2331_s30  ;;  %v496_v13 = vrot.slane %v494_v12, 7  ;;  %v2287_v12 = vld [vmem:[%s2426_s29 + $0x70] sm:$0xff]  }
  0x9a   : > { %886 = vrot.lane.b32.xlu0 %v2687_v42, %s2331_s30  ;;  %v501_v35 = vshrl.u32 %v2287_v12, 16 }
  0x9b   : > { %v2733_v11 = vpop.permute.xlu1 %926  ;;  %v499_v26 = vor.u32 %v497_v21, %v496_v13  ;;  %v582_v54 = vsel %vm2395_vm2, %v496_v13, 0  ;;  %v447_v13 = vrot.slane %v445_v60, 7  ;;  %v448_v21 = vshll.u32 %v2285_v41, 16 }
  0x9c   : > { %v2735_v17 = vpop.permute.xlu0 %892  ;;  %v762_v62 = vshll.u32 %v582_v54, 16  ;;  %v1134_v41 = vsel %vm1132_vm6, %v2402_v3, %v2693_v43 }
  0x9d   : > { %1122 = vrot.lane.b32.xlu1 %v2731_v9, %s2337_s14  ;;  %v2769_v34 = vsel %vm2395_vm2, 0, %v499_v26  ;;  %v1167_v43 = vsel %vm1165_vm7, %v1134_v41, %v2680_v36 }
  0x9e   : > { %916 = vrot.lane.b32.xlu0 %v2649_v15, %s2330_s24  ;;  %v661_v15 = vshll.u32 %v2747_v23, 16  ;;  %v755_v63 = vshrl.u32 %v2769_v34, 16 }
  0x9f   : > { %v2741_v20 = vpop.permute.xlu1 %878 }
  0xa0   : > { %v2743_v22 = vpop.permute.xlu0 %972  ;;  %v663_v32 = vrot.slane %v661_v15, 1  ;;  %v764_v15 = vrot.slane %v762_v62, 1 }
  0xa1   : > { %902 = vrot.lane.b32.xlu1 %v2699_v46, %s2331_s30 }
  0xa2   : > { %918 = vrot.lane.b32.xlu0 %v2713_v58, %s2330_s24  ;;  %v664_v45 = vor.u32 %v663_v32, %v659_v33  ;;  %v829_v33 = vrot.slane %v2747_v23, 1  ;;  %v830_v32 = vrot.slane %v574_v29, 1 }
  0xa3   : > { %v2753_v24 = vpop.permute.xlu1 %894 }
  0xa4   : > { %v2756_v27 = vpop.permute.xlu0 %974  ;;  %v2793_v8 = vsel %vm585_vm4, %v664_v45, %v668_v53  ;;  %v450_v45 = vor.u32 %v448_v21, %v447_v13  ;;  %v2816_v29 = vsel %vm810_vm3, %v829_v33, %v830_v32  ;;  %v854_v21 = vrot.slane %v582_v54, 1 }
  0xa5   : > { %932 = vrot.lane.b32.xlu1 %v2666_v25, %s2330_s24  ;;  %v757_v25 = vshll.u32 %v2769_v34, 16  ;;  %v1200_v33 = vsel %vm1198_vm8, %v1167_v43, %v2704_v55  ;;  %v1136_v32 = vsel %vm1132_vm6, %v2448_v39, %v2741_v20 }
  0xa6   : > { %948 = vrot.lane.b32.xlu0 %v2653_v19, %s2332_s5 }
  0xa7   : > { %v2764_v31 = vpop.permute.xlu1 %988  ;;  %v759_v0 = vrot.slane %v757_v25, 1 }
  0xa8   : > { %v2771_v38 = vpop.permute.xlu0 %1004 }
  0xa9   : > { %934 = vrot.lane.b32.xlu1 %v2731_v9, %s2330_s24 }
  0xaa   : > { %950 = vrot.lane.b32.xlu0 %v2747_v23, %s2332_s5 }
  0xab   : > { %v2779_v44 = vpop.permute.xlu1 %990 }
  0xac   : > { %v2783_v56 = vpop.permute.xlu0 %1006 }
  0xad   : > { %964 = vrot.lane.b32.xlu1 %v2671_v30, %s2332_s5 }
  0xae   : > { %980 = vrot.lane.b32.xlu0 %v2687_v42, %s2333_s6  ;;  %v760_v42 = vor.u32 %v759_v0, %v755_v63  ;;  %v503_v63 = vrot.slane %v501_v35, 7  ;;  %v504_v0 = vshll.u32 %v2287_v12, 16  ;;  %v1150_v35 = vsel %vm1132_vm6, %v2467_v51, %v2735_v17 }
  0xaf   : > { %v2790_v7 = vpop.permute.xlu1 %1020 }
  0xb0   : > { %v1037_v18 = vpop.permute.xlu0 %1036  ;;  %v2813_v53 = vsel %vm585_vm4, %v760_v42, %v764_v15  ;;  %v2833_v42 = vsel %vm2395_vm2, %v447_v13, 0  ;;  %v506_v15 = vor.u32 %v504_v0, %v503_v63  ;;  %v1233_v13 = vsel %vm1231_vm9, %v1200_v33, %v2743_v22 }
  0xb1   : > { %966 = vrot.lane.b32.xlu1 %v2769_v34, %s2332_s5  ;;  %v1266_v55 = vsel %vm1264_vm10, %v1233_v13, %v2771_v38  ;;  %v678_v17 = vshll.u32 %v2833_v42, 16  ;;  %v1169_v22 = vsel %vm1165_vm7, %v1136_v32, %v2725_v5  ;;  %v1183_v0 = vsel %vm1165_vm7, %v1150_v35, %v2722_v4 }
  0xb2   : > { %982 = vrot.lane.b32.xlu0 %v2793_v8, %s2333_s6  ;;  %v2862_v38 = vsel %vm2395_vm2, 0, %v506_v15  ;;  %v1202_v5 = vsel %vm1198_vm8, %v1169_v22, %v2715_v59 }
  0xb3   : > { %v2800_v26 = vpop.permute.xlu1 %1022  ;;  %v769_v4 = vshll.u32 %v2862_v38, 16  ;;  %v680_v33 = vrot.slane %v678_v17, 1  ;;  %v1235_v35 = vsel %vm1231_vm9, %v1202_v5, %v2756_v27  ;;  %v767_v27 = vshrl.u32 %v2862_v38, 16 }
  0xb4   : > { %v2803_v25 = vpop.permute.xlu0 %1038 }
  0xb5   : > { %996 = vrot.lane.b32.xlu1 %v2699_v46, %s2333_s6  ;;  %v2820_v46 = vsel %vm2395_vm2, 0, %v450_v45 }
  0xb6   : > { %1012 = vrot.lane.b32.xlu0 %v2713_v58, %s2334_s11  ;;  %v853_v58 = vrot.slane %v2769_v34, 1  ;;  %v673_v36 = vshll.u32 %v2820_v46, 16  ;;  %v671_v20 = vshrl.u32 %v2820_v46, 16 }
  0xb7   : > { %v1053_v60 = vpop.permute.xlu1 %1052 }
  0xb8   : > { %v1069_v62 = vpop.permute.xlu0 %1068  ;;  %v2853_v39 = vsel %vm810_vm3, %v853_v58, %v854_v21  ;;  %v675_v41 = vrot.slane %v673_v36, 1 }
  0xb9   : > { %998 = vrot.lane.b32.xlu1 %v2813_v53, %s2333_s6 }
  0xba   : > { %1014 = vrot.lane.b32.xlu0 %v2816_v29, %s2334_s11  ;;  %v676_v15 = vor.u32 %v675_v41, %v671_v20  ;;  %v771_v20 = vrot.slane %v769_v4, 1 }
  0xbb   : > { %v2829_v12 = vpop.permute.xlu1 %1054 }
  0xbc   : > { %v1071_v54 = vpop.permute.xlu0 %1070  ;;  %v2906_v22 = vsel %vm585_vm4, %v676_v15, %v680_v33  ;;  %v833_v15 = vrot.slane %v2833_v42, 1  ;;  %v856_v42 = vrot.slane %v2862_v38, 1 }
  0xbd   : > { %1028 = vrot.lane.b32.xlu1 %v2731_v9, %s2334_s11  ;;  %v1299_v9 = vsel %vm1297_vm11, %v1266_v55, %v1037_v18  ;;  %v2877_v18 = vsel %vm2395_vm2, %v503_v63, 0  ;;  %v1152_v63 = vsel %vm1132_vm6, %v2442_v37, %v2753_v24 }
  0xbe   : > { %1044 = vrot.lane.b32.xlu0 %v2747_v23, %s2335_s12  ;;  %v1332_v43 = vsel %vm1330_vm12, %v1299_v9, %v1069_v62  ;;  %v1216_v62 = vsel %vm1198_vm8, %v1183_v0, %v2701_v50  ;;  %v774_v50 = vshll.u32 %v2877_v18, 16 }
  0xbf   : > { %v1085_v45 = vpop.permute.xlu1 %1084  ;;  %v1249_v59 = vsel %vm1231_vm9, %v1216_v62, %v2764_v31  ;;  %v1268_v31 = vsel %vm1264_vm10, %v1235_v35, %v2783_v56  ;;  %v1185_v56 = vsel %vm1165_vm7, %v1152_v63, %v2733_v11  ;;  %v857_v35 = vrot.slane %v2877_v18, 1 }
  0xc0   : > { %v1101_v58 = vpop.permute.xlu0 %1100  ;;  %v1282_v13 = vsel %vm1264_vm10, %v1249_v59, %v2790_v7  ;;  %v1301_v24 = vsel %vm1297_vm11, %v1268_v31, %v2803_v25  ;;  %v772_v25 = vor.u32 %v771_v20, %v767_v27  ;;  %v1218_v11 = vsel %vm1198_vm8, %v1185_v56, %v2710_v57 }
  0xc1   : > { %v1365_v21 = vsel %vm1363_vm13, %v1332_v43, %v1101_v58  ;;  %1030 = vrot.lane.b32.xlu1 %v2853_v39, %s2334_s11  ;;  %v1315_v55 = vsel %vm1297_vm11, %v1282_v13, %v1053_v60  ;;  %v1334_v60 = vsel %vm1330_vm12, %v1301_v24, %v1071_v54  ;;  %v1251_v43 = vsel %vm1231_vm9, %v1218_v11, %v2779_v44  ;;  %v2288_v13 = vld [vmem:[%s2426_s29 + $0x78] sm:$0xff]  }
  0xc2   : > { %1046 = vrot.lane.b32.xlu0 %v2820_v46, %s2335_s12  ;;  %2174 = vmatprep.mubr.msk.bf16.mxu0 %vm1432_vm14, %v1365_v21  ;;  %v1348_v7 = vsel %vm1330_vm12, %v1315_v55, %v1085_v45  ;;  %v776_v45 = vrot.slane %v774_v50, 1  ;;  %v1284_v21 = vsel %vm1264_vm10, %v1251_v43, %v2800_v26  ;;  %v832_v44 = vrot.slane %v2820_v46, 1 }
  0xc3   : > { %v1087_v36 = vpop.permute.xlu1 %1086  ;;  %v1317_v5 = vsel %vm1297_vm11, %v1284_v21, %v2829_v12  ;;  %v508_v55 = vshrl.u32 %v2288_v13, 16  ;;  %v511_v24 = vshll.u32 %v2288_v13, 16 }
  0xc4   : > { %v2884_v32 = vpop.permute.xlu0 %880  ;;  %v777_v57 = vsel %vm585_vm4, %v772_v25, %v776_v45  ;;  %v1350_v4 = vsel %vm1330_vm12, %v1317_v5, %v1087_v36  ;;  %v834_v36 = vsel %vm810_vm3, %v832_v44, %v833_v15 }
  0xc5   : > { %1060 = vrot.lane.b32.xlu1 %v2769_v34, %s2335_s12  ;;  %v510_v20 = vrot.slane %v508_v55, 7 }
  0xc6   : > { %1076 = vrot.lane.b32.xlu0 %v2793_v8, %s2336_s13 }
  0xc7   : > { %v1117_v17 = vpop.permute.xlu1 %1116  ;;  %v584_v25 = vsel %vm2395_vm2, %v510_v20, 0 }
  0xc8   : > { %v1103_v9 = vpop.permute.xlu0 %1102  ;;  %v1381_v41 = vsel %vm1363_vm13, %v1348_v7, %v1117_v17  ;;  %v513_v17 = vor.u32 %v511_v24, %v510_v20  ;;  %v867_v43 = vshll.u32 %v584_v25, 16  ;;  %v874_v13 = vrot.slane %v584_v25, 1 }
  0xc9   : > { %v1367_v0 = vsel %vm1363_vm13, %v1334_v60, %v1103_v9  ;;  %1062 = vrot.lane.b32.xlu1 %v2862_v38, %s2335_s12  ;;  %2190 = vmatprep.mubr.msk.bf16.mxu1 %vm1432_vm14, %v1381_v41 }
  0xca   : > { %1078 = vrot.lane.b32.xlu0 %v2906_v22, %s2336_s13  ;;  %2175 = vmatmul.mubr.msk.bf16.vlgmr.msra.gmra.mrb[0].mxu0 %vm1432_vm14, %v1367_v0  ;;  %v567_v60 = vsel %vm2395_vm2, 0, %v513_v17  ;;  %v869_v2 = vrot.slane %v867_v43, 1 }
  0xcb   : > { %v2921_v54 = vpop.permute.xlu1 %896  ;;  %v862_v41 = vshll.u32 %v567_v60, 16  ;;  %v860_v45 = vshrl.u32 %v567_v60, 16 }
  0xcc   : > { %v2925_v58 = vpop.permute.xlu0 %882 }
  0xcd   : > { %1092 = vrot.lane.b32.xlu1 %v2813_v53, %s2336_s13  ;;  %v864_v11 = vrot.slane %v862_v41, 1 }
  0xce   : > { %1108 = vrot.lane.b32.xlu0 %v2816_v29, %s2337_s14 }
  0xcf   : > { %v1119_v62 = vpop.permute.xlu1 %1118 }
  0xd0   : > { %v2939_v26 = vpop.permute.xlu0 %912  ;;  %v1383_v33 = vsel %vm1363_vm13, %v1350_v4, %v1119_v62  ;;  %v865_v4 = vor.u32 %v864_v11, %v860_v45 }
  0xd1   : > { %1094 = vrot.lane.b32.xlu1 %v777_v57, %s2336_s13  ;;  %2191 = vmatmul.mubr.msk.bf16.vlgmr.msra.gmra.mrb[0].mxu1 %vm1432_vm14, %v1383_v33 }
  0xd2   : > { %888 = vrot.lane.b32.xlu0 %v2793_v8, %s2331_s30  ;;  %v858_v8 = vsel %vm810_vm3, %v856_v42, %v857_v35  ;;  %v1138_v42 = vsel %vm1132_vm6, %v2463_v48, %v2884_v32  ;;  %v873_v35 = vrot.slane %v567_v60, 1 }
  0xd3   : > { %v2946_v12 = vpop.permute.xlu1 %898 }
  0xd4   : > { %v2949_v59 = vpop.permute.xlu0 %914  ;;  %v875_v48 = vsel %vm810_vm3, %v873_v35, %v874_v13 }
  0xd5   : > { %1124 = vrot.lane.b32.xlu1 %v2853_v39, %s2337_s14 }
  0xd6   : > { %1110 = vrot.lane.b32.xlu0 %v834_v36, %s2337_s14 }
  0xd7   : > { %v2956_v63 = vpop.permute.xlu1 %928 }
  0xd8   : > { %v945_v50 = vpop.permute.xlu0 %944 }
  0xd9   : > { %904 = vrot.lane.b32.xlu1 %v2813_v53, %s2331_s30 }
  0xda   : > { %890 = vrot.lane.b32.xlu0 %v2906_v22, %s2331_s30 }
  0xdb   : > { %v2964_v31 = vpop.permute.xlu1 %930 }
  0xdc   : > { %v2966_v27 = vpop.permute.xlu0 %946 }
  0xdd   : > { %1126 = vrot.lane.b32.xlu1 %v858_v8, %s2337_s14 }
  0xde   : > { %920 = vrot.lane.b32.xlu0 %v2816_v29, %s2330_s24 }
  0xdf   : > { %v2971_v18 = vpop.permute.xlu1 %960 }
  0xe0   : > { %v977_v53 = vpop.permute.xlu0 %976 }
  0xe1   : > { %906 = vrot.lane.b32.xlu1 %v777_v57, %s2331_s30  ;;  %s3183_s30 = scalar_lea.vmem %s3325_s4, %s2033_s26 }
  0xe2   : > { %922 = vrot.lane.b32.xlu0 %v834_v36, %s2330_s24 }
  0xe3   : > { %v2975_v7 = vpop.permute.xlu1 %962 }
  0xe4   : > { %v979_v56 = vpop.permute.xlu0 %978 }
  0xe5   : > { %936 = vrot.lane.b32.xlu1 %v2853_v39, %s2330_s24 }
  0xe6   : > { %952 = vrot.lane.b32.xlu0 %v2820_v46, %s2332_s5 }
  0xe7   : > { %v993_v29 = vpop.permute.xlu1 %992 }
  0xe8   : > { %v1009_v9 = vpop.permute.xlu0 %1008 }
  0xe9   : > { %938 = vrot.lane.b32.xlu1 %v858_v8, %s2330_s24 }
  0xea   : > { %954 = vrot.lane.b32.xlu0 %v2467_v51, %s2332_s5 }
  0xeb   : > { %v2986_v0 = vpop.permute.xlu1 %994 }
  0xec   : > { %v1011_v39 = vpop.permute.xlu0 %1010 }
  0xed   : > { %968 = vrot.lane.b32.xlu1 %v2862_v38, %s2332_s5 }
  0xee   : > { %984 = vrot.lane.b32.xlu0 %v2906_v22, %s2333_s6  ;;  %v870_v22 = vsel %vm585_vm4, %v865_v4, %v869_v2 }
  0xef   : > { %v1025_v21 = vpop.permute.xlu1 %1024 }
  0xf0   : > { %v1041_v5 = vpop.permute.xlu0 %1040 }
  0xf1   : > { %970 = vrot.lane.b32.xlu1 %v567_v60, %s2332_s5 }
  0xf2   : > { %986 = vrot.lane.b32.xlu0 %v2496_v16, %s2333_s6 }
  0xf3   : > { %v1027_v62 = vpop.permute.xlu1 %1026 }
  0xf4   : > { %v1043_v44 = vpop.permute.xlu0 %1042 }
  0xf5   : > { %1000 = vrot.lane.b32.xlu1 %v777_v57, %s2333_s6  ;;  %v1171_v57 = vsel %vm1165_vm7, %v1138_v42, %v2939_v26  ;;  %v1140_v26 = vsel %vm1132_vm6, %v2540_v52, %v2925_v58 }
  0xf6   : > { %1016 = vrot.lane.b32.xlu0 %v834_v36, %s2334_s11  ;;  %v1204_v36 = vsel %vm1198_vm8, %v1171_v57, %v945_v50  ;;  %v1173_v52 = vsel %vm1165_vm7, %v1140_v26, %v2949_v59 }
  0xf7   : > { %v1057_v15 = vpop.permute.xlu1 %1056  ;;  %v1237_v24 = vsel %vm1231_vm9, %v1204_v36, %v977_v53 }
  0xf8   : > { %v1073_v33 = vpop.permute.xlu0 %1072  ;;  %v1270_v17 = vsel %vm1264_vm10, %v1237_v24, %v1009_v9 }
  0xf9   : > { %1002 = vrot.lane.b32.xlu1 %v870_v22, %s2333_s6  ;;  %v1303_v32 = vsel %vm1297_vm11, %v1270_v17, %v1041_v5 }
  0xfa   : > { %1018 = vrot.lane.b32.xlu0 %v2481_v61, %s2334_s11  ;;  %v1336_v50 = vsel %vm1330_vm12, %v1303_v32, %v1073_v33 }
  0xfb   : > { %v1059_v55 = vpop.permute.xlu1 %1058 }
  0xfc   : > { %v1075_v20 = vpop.permute.xlu0 %1074 }
  0xfd   : > { %1032 = vrot.lane.b32.xlu1 %v858_v8, %s2334_s11  ;;  %v1154_v8 = vsel %vm1132_vm6, %v2459_v47, %v2921_v54  ;;  %v1206_v47 = vsel %vm1198_vm8, %v1173_v52, %v2966_v27 }
  0xfe   : > { %1048 = vrot.lane.b32.xlu0 %v2467_v51, %s2335_s12  ;;  %v1187_v51 = vsel %vm1165_vm7, %v1154_v8, %v2956_v63  ;;  %v1239_v63 = vsel %vm1231_vm9, %v1206_v47, %v979_v56 }
  0xff   : > { %v1089_v41 = vpop.permute.xlu1 %1088  ;;  %v1220_v58 = vsel %vm1198_vm8, %v1187_v51, %v2971_v18 }
 0x100   : > { %v1105_v25 = vpop.permute.xlu0 %1104  ;;  %v1253_v54 = vsel %vm1231_vm9, %v1220_v58, %v993_v29 }
 0x101   : > { %v1369_v53 = vsel %vm1363_vm13, %v1336_v50, %v1105_v25  ;;  %1034 = vrot.lane.b32.xlu1 %v875_v48, %s2334_s11  ;;  %v1286_v11 = vsel %vm1264_vm10, %v1253_v54, %v1025_v21 }
 0x102   : > { %1050 = vrot.lane.b32.xlu0 %v2442_v37, %s2335_s12  ;;  %2178 = vmatprep.mubr.msk.bf16.mxu0 %vm1432_vm14, %v1369_v53  ;;  %v1272_v37 = vsel %vm1264_vm10, %v1239_v63, %v1011_v39  ;;  %v1319_v59 = vsel %vm1297_vm11, %v1286_v11, %v1057_v15 }
 0x103   : > { %v1091_v9 = vpop.permute.xlu1 %1090  ;;  %v1305_v18 = vsel %vm1297_vm11, %v1272_v37, %v1043_v44  ;;  %v1352_v27 = vsel %vm1330_vm12, %v1319_v59, %v1089_v41 }
 0x104   : > { %v885_v45 = vpop.permute.xlu0 %884  ;;  %v1338_v29 = vsel %vm1330_vm12, %v1305_v18, %v1075_v20 }
 0x105   : > { %1064 = vrot.lane.b32.xlu1 %v567_v60, %s2335_s12  ;;  %v1156_v60 = vsel %vm1132_vm6, %v2562_v1, %v2946_v12  ;;  %v1142_v26 = vsel %vm1132_vm6, %v2610_v40, %v885_v45 }
 0x106   : > { %1080 = vrot.lane.b32.xlu0 %v2496_v16, %s2336_s13  ;;  %v1189_v16 = vsel %vm1165_vm7, %v1156_v60, %v2964_v31 }
 0x107   : > { %v1121_v43 = vpop.permute.xlu1 %1120  ;;  %v1222_v21 = vsel %vm1198_vm8, %v1189_v16, %v2975_v7 }
 0x108   : > { %v1107_v5 = vpop.permute.xlu0 %1106  ;;  %v1385_v56 = vsel %vm1363_vm13, %v1352_v27, %v1121_v43  ;;  %v1255_v1 = vsel %vm1231_vm9, %v1222_v21, %v2986_v0 }
 0x109   : > { %v1371_v39 = vsel %vm1363_vm13, %v1338_v29, %v1107_v5  ;;  %1066 = vrot.lane.b32.xlu1 %v2402_v3, %s2335_s12  ;;  %2194 = vmatprep.mubr.msk.bf16.mxu1 %vm1432_vm14, %v1385_v56  ;;  %v1288_v3 = vsel %vm1264_vm10, %v1255_v1, %v1027_v62 }
 0x10a   : > { %1082 = vrot.lane.b32.xlu0 %v2510_v28, %s2336_s13  ;;  %2179 = vmatmul.mubr.msk.bf16.gmra.mrb[4].mxu0 %vm1432_vm14, %v1371_v39  ;;  %v1321_v2 = vsel %vm1297_vm11, %v1288_v3, %v1059_v55 }
 0x10b   : > { %v901_v4 = vpop.permute.xlu1 %900  ;;  %v1354_v28 = vsel %vm1330_vm12, %v1321_v2, %v1091_v9 }
 0x10c   : > { %v887_v12 = vpop.permute.xlu0 %886  ;;  %v1158_v40 = vsel %vm1132_vm6, %v2625_v49, %v901_v4 }
 0x10d   : > { %1096 = vrot.lane.b32.xlu1 %v870_v22, %s2336_s13  ;;  %v1144_v9 = vsel %vm1132_vm6, %v2653_v19, %v887_v12 }
 0x10e   : > { %1112 = vrot.lane.b32.xlu0 %v2481_v61, %s2337_s14 }
 0x10f   : > { %v1123_v31 = vpop.permute.xlu1 %1122 }
 0x110   : > { %v917_v44 = vpop.permute.xlu0 %916  ;;  %v1387_v7 = vsel %vm1363_vm13, %v1354_v28, %v1123_v31 }
 0x111   : > { %1098 = vrot.lane.b32.xlu1 %v2429_v14, %s2336_s13  ;;  %2195 = vmatmul.mubr.msk.bf16.gmra.mrb[4].mxu1 %vm1432_vm14, %v1387_v7 }
 0x112   : > { %1114 = vrot.lane.b32.xlu0 %v2490_v6, %s2337_s14 }
 0x113   : > { %v903_v0 = vpop.permute.xlu1 %902 }
 0x114   : > { %v919_v62 = vpop.permute.xlu0 %918  ;;  %v1160_v1 = vsel %vm1132_vm6, %v2671_v30, %v903_v0 }
 0x115   : > { %1128 = vrot.lane.b32.xlu1 %v875_v48, %s2337_s14  ;;  %v1177_v11 = vsel %vm1165_vm7, %v1144_v9, %v919_v62 }
 0x117   : > { %v933_v22 = vpop.permute.xlu1 %932 }
 0x118   : > { %v949_v61 = vpop.permute.xlu0 %948  ;;  %v1191_v63 = vsel %vm1165_vm7, %v1158_v40, %v933_v22 }
 0x119   : > { %1130 = vrot.lane.b32.xlu1 %v2414_v10, %s2337_s14  ;;  %v1175_v10 = vsel %vm1165_vm7, %v1142_v26, %v917_v44 }
 0x11a   : > { %v1208_v25 = vsel %vm1198_vm8, %v1175_v10, %v949_v61 }
 0x11b   : > { %v935_v15 = vpop.permute.xlu1 %934 }
 0x11c   : > { %v951_v33 = vpop.permute.xlu0 %950  ;;  %v1193_v3 = vsel %vm1165_vm7, %v1160_v1, %v935_v15 }
 0x11d   : > { %v1210_v18 = vsel %vm1198_vm8, %v1177_v11, %v951_v33 }
 0x11f   : > { %v965_v42 = vpop.permute.xlu1 %964 }
 0x120   : > { %v981_v35 = vpop.permute.xlu0 %980  ;;  %v1224_v37 = vsel %vm1198_vm8, %v1191_v63, %v965_v42 }
 0x121   : > { %v1241_v53 = vsel %vm1231_vm9, %v1208_v25, %v981_v35 }
 0x123   : > { %v967_v13 = vpop.permute.xlu1 %966 }
 0x124   : > { %v983_v14 = vpop.permute.xlu0 %982  ;;  %v1226_v2 = vsel %vm1198_vm8, %v1193_v3, %v967_v13 }
 0x125   : > { %v1243_v43 = vsel %vm1231_vm9, %v1210_v18, %v983_v14 }
 0x127   : > { %v997_v57 = vpop.permute.xlu1 %996 }
 0x128   : > { %v1013_v55 = vpop.permute.xlu0 %1012  ;;  %v1257_v19 = vsel %vm1231_vm9, %v1224_v37, %v997_v57 }
 0x129   : > { %v1274_v51 = vsel %vm1264_vm10, %v1241_v53, %v1013_v55 }
 0x12b   : > { %v999_v36 = vpop.permute.xlu1 %998 }
 0x12c   : > { %v1015_v20 = vpop.permute.xlu0 %1014  ;;  %v1259_v31 = vsel %vm1231_vm9, %v1226_v2, %v999_v36 }
 0x12d   : > { %v1276_v29 = vsel %vm1264_vm10, %v1243_v43, %v1015_v20 }
 0x12f   : > { %v1029_v6 = vpop.permute.xlu1 %1028 }
 0x130   : > { %v1045_v24 = vpop.permute.xlu0 %1044  ;;  %v1290_v49 = vsel %vm1264_vm10, %v1257_v19, %v1029_v6 }
 0x131   : > { %v1307_v52 = vsel %vm1297_vm11, %v1274_v51, %v1045_v24 }
 0x133   : > { %v1031_v17 = vpop.permute.xlu1 %1030 }
 0x134   : > { %v1047_v32 = vpop.permute.xlu0 %1046  ;;  %v1292_v7 = vsel %vm1264_vm10, %v1259_v31, %v1031_v17 }
 0x135   : > { %v1309_v56 = vsel %vm1297_vm11, %v1276_v29, %v1047_v32 }
 0x137   : > { %v1061_v48 = vpop.permute.xlu1 %1060 }
 0x138   : > { %v1077_v41 = vpop.permute.xlu0 %1076  ;;  %v1323_v5 = vsel %vm1297_vm11, %v1290_v49, %v1061_v48 }
 0x139   : > { %v1340_v47 = vsel %vm1330_vm12, %v1307_v52, %v1077_v41 }
 0x13b   : > { %v1063_v50 = vpop.permute.xlu1 %1062 }
 0x13c   : > { %v1079_v8 = vpop.permute.xlu0 %1078  ;;  %v1325_v62 = vsel %vm1297_vm11, %v1292_v7, %v1063_v50 }
 0x13d   : > { %v1342_v16 = vsel %vm1330_vm12, %v1309_v56, %v1079_v8 }
 0x13f   : > { %v1093_v58 = vpop.permute.xlu1 %1092 }
 0x140   : > { %v1109_v54 = vpop.permute.xlu0 %1108  ;;  %v1356_v60 = vsel %vm1330_vm12, %v1323_v5, %v1093_v58 }
 0x141   : > { %v1373_v45 = vsel %vm1363_vm13, %v1340_v47, %v1109_v54 }
 0x142   : > { %2182 = vmatprep.mubr.msk.bf16.mxu0 %vm1432_vm14, %v1373_v45 }
 0x143   : > { %v1095_v59 = vpop.permute.xlu1 %1094 }
 0x144   : > { %v889_v27 = vpop.permute.xlu0 %888  ;;  %v1358_v30 = vsel %vm1330_vm12, %v1325_v62, %v1095_v59 }
 0x145   : > { %v1146_v8 = vsel %vm1132_vm6, %v2747_v23, %v889_v27 }
 0x147   : > { %v1125_v39 = vpop.permute.xlu1 %1124 }
 0x148   : > { %v1111_v21 = vpop.permute.xlu0 %1110  ;;  %v1389_v4 = vsel %vm1363_vm13, %v1356_v60, %v1125_v39 }
 0x149   : > { %v1375_v12 = vsel %vm1363_vm13, %v1342_v16, %v1111_v21  ;;  %2198 = vmatprep.mubr.msk.bf16.mxu1 %vm1432_vm14, %v1389_v4 }
 0x14a   : > { %2183 = vmatmul.mubr.msk.bf16.gmra.mrb[8].mxu0 %vm1432_vm14, %v1375_v12 }
 0x14b   : > { %v905_v28 = vpop.permute.xlu1 %904 }
 0x14c   : > { %v891_v44 = vpop.permute.xlu0 %890 }
 0x14d   : > { %v1148_v52 = vsel %vm1132_vm6, %v2820_v46, %v891_v44  ;;  %v1162_v46 = vsel %vm1132_vm6, %v2769_v34, %v905_v28 }
 0x14f   : > { %v1127_v0 = vpop.permute.xlu1 %1126 }
 0x150   : > { %v921_v22 = vpop.permute.xlu0 %920  ;;  %v1391_v61 = vsel %vm1363_vm13, %v1358_v30, %v1127_v0  ;;  %v3167_v30 = vld [vmem:[%s269_s23] ss:$0 sm:$0xff] }
 0x151   : > { %2199 = vmatmul.mubr.msk.bf16.gmra.mrb[8].mxu1 %vm1432_vm14, %v1391_v61  ;;  %v1179_v53 = vsel %vm1165_vm7, %v1146_v8, %v921_v22  ;;  %v3169_v22 = vld [vmem:[%s272_s28] ss:$0 sm:$0xff] }
 0x153   : > { %v907_v15 = vpop.permute.xlu1 %906 }
 0x154   : > { %v923_v33 = vpop.permute.xlu0 %922  ;;  %v1164_v60 = vsel %vm1132_vm6, %v2862_v38, %v907_v15 }
 0x155   : > { %v1181_v40 = vsel %vm1165_vm7, %v1148_v52, %v923_v33 }
 0x157   : > { %v937_v42 = vpop.permute.xlu1 %936 }
 0x158   : > { %v953_v35 = vpop.permute.xlu0 %952  ;;  %v1195_v19 = vsel %vm1165_vm7, %v1162_v46, %v937_v42 }
 0x159   : > { %v1212_v58 = vsel %vm1198_vm8, %v1179_v53, %v953_v35 }
 0x15b   : > { %v939_v13 = vpop.permute.xlu1 %938 }
 0x15c   : > { %v955_v14 = vpop.permute.xlu0 %954  ;;  %v1197_v21 = vsel %vm1165_vm7, %v1164_v60, %v939_v13 }
 0x15d   : > { %v1214_v23 = vsel %vm1198_vm8, %v1181_v40, %v955_v14 }
 0x15f   : > { %v969_v57 = vpop.permute.xlu1 %968 }
 0x160   : > { %v985_v55 = vpop.permute.xlu0 %984  ;;  %v1228_v43 = vsel %vm1198_vm8, %v1195_v19, %v969_v57 }
 0x161   : > { %v1245_v47 = vsel %vm1231_vm9, %v1212_v58, %v985_v55 }
 0x163   : > { %v971_v36 = vpop.permute.xlu1 %970 }
 0x164   : > { %v987_v20 = vpop.permute.xlu0 %986  ;;  %v1230_v1 = vsel %vm1198_vm8, %v1197_v21, %v971_v36 }
 0x165   : > { %v1247_v59 = vsel %vm1231_vm9, %v1214_v23, %v987_v20 }
 0x167   : > { %v1001_v6 = vpop.permute.xlu1 %1000 }
 0x168   : > { %v1017_v24 = vpop.permute.xlu0 %1016  ;;  %v1261_v5 = vsel %vm1231_vm9, %v1228_v43, %v1001_v6 }
 0x169   : > { %v1278_v54 = vsel %vm1264_vm10, %v1245_v47, %v1017_v24 }
 0x16b   : > { %v1003_v17 = vpop.permute.xlu1 %1002 }
 0x16c   : > { %v1019_v32 = vpop.permute.xlu0 %1018  ;;  %v1263_v2 = vsel %vm1231_vm9, %v1230_v1, %v1003_v17 }
 0x16d   : > { %v1280_v27 = vsel %vm1264_vm10, %v1247_v59, %v1019_v32 }
 0x16f   : > { %v1033_v48 = vpop.permute.xlu1 %1032 }
 0x170   : > { %v1049_v41 = vpop.permute.xlu0 %1048  ;;  %v1294_v39 = vsel %vm1264_vm10, %v1261_v5, %v1033_v48 }
 0x171   : > { %v1311_v45 = vsel %vm1297_vm11, %v1278_v54, %v1049_v41 }
 0x173   : > { %v1035_v26 = vpop.permute.xlu1 %1034 }
 0x174   : > { %v1051_v10 = vpop.permute.xlu0 %1050  ;;  %v1296_v28 = vsel %vm1264_vm10, %v1263_v2, %v1035_v26 }
 0x175   : > { %v1313_v49 = vsel %vm1297_vm11, %v1280_v27, %v1051_v10 }
 0x177   : > { %v1065_v50 = vpop.permute.xlu1 %1064 }
 0x178   : > { %v1081_v25 = vpop.permute.xlu0 %1080  ;;  %v1327_v4 = vsel %vm1297_vm11, %v1294_v39, %v1065_v50 }
 0x179   : > { %v1344_v11 = vsel %vm1330_vm12, %v1311_v45, %v1081_v25 }
 0x17b   : > { %v1067_v51 = vpop.permute.xlu1 %1066 }
 0x17c   : > { %v1083_v9 = vpop.permute.xlu0 %1082  ;;  %v1329_v31 = vsel %vm1297_vm11, %v1296_v28, %v1067_v51 }
 0x17d   : > { %v1346_v56 = vsel %vm1330_vm12, %v1313_v49, %v1083_v9 }
 0x17f   : > { %v1097_v63 = vpop.permute.xlu1 %1096 }
 0x180   : > { %v1113_v37 = vpop.permute.xlu0 %1112  ;;  %v1360_v12 = vsel %vm1330_vm12, %v1327_v4, %v1097_v63 }
 0x181   : > { %v1377_v18 = vsel %vm1363_vm13, %v1344_v11, %v1113_v37 }
 0x182   : > { %2186 = vmatprep.mubr.msk.bf16.mxu0 %vm1432_vm14, %v1377_v18 }
 0x183   : > { %v1099_v29 = vpop.permute.xlu1 %1098 }
 0x184   : > { %v1115_v34 = vpop.permute.xlu0 %1114  ;;  %v1362_v44 = vsel %vm1330_vm12, %v1329_v31, %v1099_v29 }
 0x185   : > { %v1379_v16 = vsel %vm1363_vm13, %v1346_v56, %v1115_v34 }
 0x186   : > { %2187 = vmatmul.mubr.msk.bf16.gmra.mrb[12].mxu0 %vm1432_vm14, %v1379_v16 }
 0x187   : > { %v1129_v3 = vpop.permute.xlu1 %1128 }
 0x188   : > { %v1393_v38 = vsel %vm1363_vm13, %v1360_v12, %v1129_v3 }
 0x189   : > { %2202 = vmatprep.mubr.msk.bf16.mxu1 %vm1432_vm14, %v1393_v38 }
 0x18b   : > { %v1131_v7 = vpop.permute.xlu1 %1130 }
 0x18c   : > { %v1395_v62 = vsel %vm1363_vm13, %v1362_v44, %v1131_v7 }
 0x18d   : > { %2203 = vmatmul.mubr.msk.bf16.gmra.mrb[12].mxu1 %vm1432_vm14, %v1395_v62 }
 0x19d   : > { %v2176_v0 = vpop.f32.mrb[0].mxu0 }
 0x19e   : > { %v1639_v61 = vmul.f32 %v2176_v0, %v3167_v30  ;;  %v1503_v15 = vpop.f32.mrb[1].mxu0 }
 0x19f   : > { %v1637_v33 = vmul.f32 %v3167_v30, %v1503_v15  ;;  %v2177_v42 = vpop.f32.mrb[2].mxu0 }
 0x1a0   : > { %v1678_v35 = vadd.f32 %v3169_v22, %v1639_v61  ;;  %v1640_v13 = vmul.f32 %v2177_v42, %v3167_v30  ;;  %v1506_v14 = vpop.f32.mrb[3].mxu0 }
 0x1a1   : > { %v1676_v57 = vadd.f32 %v3169_v22, %v1637_v33  ;;  %v1638_v55 = vmul.f32 %v3167_v30, %v1506_v14 }
 0x1a2   : > { %v1710_v36 = vmax.f32 %v1678_v35, 0.0  ;;  %v1679_v20 = vadd.f32 %v3169_v22, %v1640_v13 }
 0x1a3   : > { %v1708_v6 = vmax.f32 %v1676_v57, 0.0  ;;  %v1677_v24 = vadd.f32 %v3169_v22, %v1638_v55 }
 0x1a4   : > { %v2113_v17 = vpack.c.bf16 %v1710_v36, %v1710_v36  ;;  %v1711_v32 = vmax.f32 %v1679_v20, 0.0  ;;  %v2192_v48 = vpop.f32.mrb[0].mxu1 }
 0x1a5   : > { %v2111_v41 = vpack.c.bf16 %v1708_v6, %v1708_v6  ;;  %v1709_v26 = vmax.f32 %v1677_v24, 0.0  ;;  %v1655_v10 = vmul.f32 %v2192_v48, %v3167_v30  ;;  %v1567_v50 = vpop.f32.mrb[1].mxu1 }
 0x1a6   : > { %1871 = vst.msk [vmem:[%s3183_s30 + $0x8] sm:$0xf] %vm1868_vm15, %v2113_v17  ;;  %v2114_v25 = vpack.c.bf16 %v1711_v32, %v1711_v32  ;;  %v1653_v8 = vmul.f32 %v3167_v30, %v1567_v50  ;;  %v2193_v53 = vpop.f32.mrb[2].mxu1 }
 0x1a7   : > { %1869 = vst.msk [vmem:[%s3183_s30] sm:$0xf] %vm1868_vm15, %v2111_v41  ;;  %v2112_v51 = vpack.c.bf16 %v1709_v26, %v1709_v26  ;;  %v1694_v52 = vadd.f32 %v3169_v22, %v1655_v10  ;;  %v1656_v58 = vmul.f32 %v2193_v53, %v3167_v30  ;;  %v1570_v9 = vpop.f32.mrb[3].mxu1 }
 0x1a8   : > { %1872 = vst.msk [vmem:[%s3183_s30 + $0xc] sm:$0xf] %vm1868_vm15, %v2114_v25  ;;  %v1692_v47 = vadd.f32 %v3169_v22, %v1653_v8  ;;  %v1654_v54 = vmul.f32 %v3167_v30, %v1570_v9 }
 0x1a9   : > { %1870 = vst.msk [vmem:[%s3183_s30 + $0x4] sm:$0xf] %vm1868_vm15, %v2112_v51  ;;  %v1726_v40 = vmax.f32 %v1694_v52, 0.0  ;;  %v1695_v45 = vadd.f32 %v3169_v22, %v1656_v58 }
 0x1aa   : > { %v1724_v63 = vmax.f32 %v1692_v47, 0.0  ;;  %v1693_v23 = vadd.f32 %v3169_v22, %v1654_v54 }
 0x1ab   : > { %v2129_v11 = vpack.c.bf16 %v1726_v40, %v1726_v40  ;;  %v1727_v37 = vmax.f32 %v1695_v45, 0.0 }
 0x1ac   : > { %v2127_v46 = vpack.c.bf16 %v1724_v63, %v1724_v63  ;;  %v1725_v59 = vmax.f32 %v1693_v23, 0.0 }
 0x1ad   : > { %1887 = vst.msk [vmem:[%s3183_s30 + $0x48] sm:$0xf] %vm1868_vm15, %v2129_v11  ;;  %v2130_v18 = vpack.c.bf16 %v1727_v37, %v1727_v37 }
 0x1ae   : > { %1885 = vst.msk [vmem:[%s3183_s30 + $0x40] sm:$0xf] %vm1868_vm15, %v2127_v46  ;;  %v2128_v19 = vpack.c.bf16 %v1725_v59, %v1725_v59 }
 0x1af   : > { %1888 = vst.msk [vmem:[%s3183_s30 + $0x4c] sm:$0xf] %vm1868_vm15, %v2130_v18 }
 0x1b0   : > { %1886 = vst.msk [vmem:[%s3183_s30 + $0x44] sm:$0xf] %vm1868_vm15, %v2128_v19 }
 0x1dd   : > { %v2180_v27 = vpop.f32.mrb[4].mxu0 }
 0x1de   : > { %v1643_v43 = vmul.f32 %v2180_v27, %v3167_v30  ;;  %v1519_v49 = vpop.f32.mrb[5].mxu0 }
 0x1df   : > { %v1641_v29 = vmul.f32 %v3167_v30, %v1519_v49  ;;  %v2181_v5 = vpop.f32.mrb[6].mxu0 }
 0x1e0   : > { %v1682_v56 = vadd.f32 %v3169_v22, %v1643_v43  ;;  %v1644_v34 = vmul.f32 %v2181_v5, %v3167_v30  ;;  %v1522_v60 = vpop.f32.mrb[7].mxu0 }
 0x1e1   : > { %v1680_v39 = vadd.f32 %v3169_v22, %v1641_v29  ;;  %v1642_v16 = vmul.f32 %v3167_v30, %v1522_v60 }
 0x1e2   : > { %v1714_v21 = vmax.f32 %v1682_v56, 0.0  ;;  %v1683_v4 = vadd.f32 %v3169_v22, %v1644_v34 }
 0x1e3   : > { %v1712_v1 = vmax.f32 %v1680_v39, 0.0  ;;  %v1681_v12 = vadd.f32 %v3169_v22, %v1642_v16 }
 0x1e4   : > { %v2117_v3 = vpack.c.bf16 %v1714_v21, %v1714_v21  ;;  %v1715_v2 = vmax.f32 %v1683_v4, 0.0  ;;  %v2196_v38 = vpop.f32.mrb[4].mxu1 }
 0x1e5   : > { %v2115_v28 = vpack.c.bf16 %v1712_v1, %v1712_v1  ;;  %v1713_v31 = vmax.f32 %v1681_v12, 0.0  ;;  %v1659_v44 = vmul.f32 %v2196_v38, %v3167_v30  ;;  %v1583_v7 = vpop.f32.mrb[5].mxu1 }
 0x1e6   : > { %1875 = vst.msk [vmem:[%s3183_s30 + $0x18] sm:$0xf] %vm1868_vm15, %v2117_v3  ;;  %v2118_v62 = vpack.c.bf16 %v1715_v2, %v1715_v2  ;;  %v1657_v0 = vmul.f32 %v3167_v30, %v1583_v7  ;;  %v2197_v61 = vpop.f32.mrb[6].mxu1 }
 0x1e7   : > { %1873 = vst.msk [vmem:[%s3183_s30 + $0x10] sm:$0xf] %vm1868_vm15, %v2115_v28  ;;  %v2116_v15 = vpack.c.bf16 %v1713_v31, %v1713_v31  ;;  %v1698_v33 = vadd.f32 %v3169_v22, %v1659_v44  ;;  %v1660_v42 = vmul.f32 %v2197_v61, %v3167_v30  ;;  %v1586_v35 = vpop.f32.mrb[7].mxu1 }
 0x1e8   : > { %1876 = vst.msk [vmem:[%s3183_s30 + $0x1c] sm:$0xf] %vm1868_vm15, %v2118_v62  ;;  %v1696_v13 = vadd.f32 %v3169_v22, %v1657_v0  ;;  %v1658_v14 = vmul.f32 %v3167_v30, %v1586_v35 }
 0x1e9   : > { %1874 = vst.msk [vmem:[%s3183_s30 + $0x14] sm:$0xf] %vm1868_vm15, %v2116_v15  ;;  %v1730_v57 = vmax.f32 %v1698_v33, 0.0  ;;  %v1699_v55 = vadd.f32 %v3169_v22, %v1660_v42 }
 0x1ea   : > { %v1728_v36 = vmax.f32 %v1696_v13, 0.0  ;;  %v1697_v20 = vadd.f32 %v3169_v22, %v1658_v14 }
 0x1eb   : > { %v2133_v6 = vpack.c.bf16 %v1730_v57, %v1730_v57  ;;  %v1731_v24 = vmax.f32 %v1699_v55, 0.0 }
 0x1ec   : > { %v2131_v17 = vpack.c.bf16 %v1728_v36, %v1728_v36  ;;  %v1729_v32 = vmax.f32 %v1697_v20, 0.0 }
 0x1ed   : > { %1891 = vst.msk [vmem:[%s3183_s30 + $0x58] sm:$0xf] %vm1868_vm15, %v2133_v6  ;;  %v2134_v48 = vpack.c.bf16 %v1731_v24, %v1731_v24 }
 0x1ee   : > { %1889 = vst.msk [vmem:[%s3183_s30 + $0x50] sm:$0xf] %vm1868_vm15, %v2131_v17  ;;  %v2132_v41 = vpack.c.bf16 %v1729_v32, %v1729_v32 }
 0x1ef   : > { %1892 = vst.msk [vmem:[%s3183_s30 + $0x5c] sm:$0xf] %vm1868_vm15, %v2134_v48 }
 0x1f0   : > { %1890 = vst.msk [vmem:[%s3183_s30 + $0x54] sm:$0xf] %vm1868_vm15, %v2132_v41 }
 0x21d   : > { %v2184_v26 = vpop.f32.mrb[8].mxu0 }
 0x21e   : > { %v1647_v10 = vmul.f32 %v2184_v26, %v3167_v30  ;;  %v1535_v50 = vpop.f32.mrb[9].mxu0 }
 0x21f   : > { %v1645_v25 = vmul.f32 %v3167_v30, %v1535_v50  ;;  %v2185_v8 = vpop.f32.mrb[10].mxu0 }
 0x220   : > { %v1686_v53 = vadd.f32 %v3169_v22, %v1647_v10  ;;  %v1648_v51 = vmul.f32 %v2185_v8, %v3167_v30  ;;  %v1538_v52 = vpop.f32.mrb[11].mxu0 }
 0x221   : > { %v1684_v58 = vadd.f32 %v3169_v22, %v1645_v25  ;;  %v1646_v9 = vmul.f32 %v3167_v30, %v1538_v52 }
 0x222   : > { %v1718_v47 = vmax.f32 %v1686_v53, 0.0  ;;  %v1687_v54 = vadd.f32 %v3169_v22, %v1648_v51 }
 0x223   : > { %v1716_v40 = vmax.f32 %v1684_v58, 0.0  ;;  %v1685_v45 = vadd.f32 %v3169_v22, %v1646_v9 }
 0x224   : > { %v2121_v63 = vpack.c.bf16 %v1718_v47, %v1718_v47  ;;  %v1719_v23 = vmax.f32 %v1687_v54, 0.0  ;;  %v2200_v11 = vpop.f32.mrb[8].mxu1 }
 0x225   : > { %v2119_v37 = vpack.c.bf16 %v1716_v40, %v1716_v40  ;;  %v1717_v46 = vmax.f32 %v1685_v45, 0.0  ;;  %v1663_v59 = vmul.f32 %v2200_v11, %v3167_v30  ;;  %v1599_v18 = vpop.f32.mrb[9].mxu1 }
 0x226   : > { %1879 = vst.msk [vmem:[%s3183_s30 + $0x28] sm:$0xf] %vm1868_vm15, %v2121_v63  ;;  %v2122_v19 = vpack.c.bf16 %v1719_v23, %v1719_v23  ;;  %v1661_v27 = vmul.f32 %v3167_v30, %v1599_v18  ;;  %v2201_v43 = vpop.f32.mrb[10].mxu1 }
 0x227   : > { %1877 = vst.msk [vmem:[%s3183_s30 + $0x20] sm:$0xf] %vm1868_vm15, %v2119_v37  ;;  %v2120_v49 = vpack.c.bf16 %v1717_v46, %v1717_v46  ;;  %v1702_v29 = vadd.f32 %v3169_v22, %v1663_v59  ;;  %v1664_v5 = vmul.f32 %v2201_v43, %v3167_v30  ;;  %v1602_v56 = vpop.f32.mrb[11].mxu1 }
 0x228   : > { %1880 = vst.msk [vmem:[%s3183_s30 + $0x2c] sm:$0xf] %vm1868_vm15, %v2122_v19  ;;  %v1700_v34 = vadd.f32 %v3169_v22, %v1661_v27  ;;  %v1662_v60 = vmul.f32 %v3167_v30, %v1602_v56 }
 0x229   : > { %1878 = vst.msk [vmem:[%s3183_s30 + $0x24] sm:$0xf] %vm1868_vm15, %v2120_v49  ;;  %v1734_v39 = vmax.f32 %v1702_v29, 0.0  ;;  %v1703_v16 = vadd.f32 %v3169_v22, %v1664_v5 }
 0x22a   : > { %v1732_v21 = vmax.f32 %v1700_v34, 0.0  ;;  %v1701_v4 = vadd.f32 %v3169_v22, %v1662_v60 }
 0x22b   : > { %v2137_v1 = vpack.c.bf16 %v1734_v39, %v1734_v39  ;;  %v1735_v12 = vmax.f32 %v1703_v16, 0.0 }
 0x22c   : > { %v2135_v3 = vpack.c.bf16 %v1732_v21, %v1732_v21  ;;  %v1733_v2 = vmax.f32 %v1701_v4, 0.0 }
 0x22d   : > { %1895 = vst.msk [vmem:[%s3183_s30 + $0x68] sm:$0xf] %vm1868_vm15, %v2137_v1  ;;  %v2138_v38 = vpack.c.bf16 %v1735_v12, %v1735_v12 }
 0x22e   : > { %1893 = vst.msk [vmem:[%s3183_s30 + $0x60] sm:$0xf] %vm1868_vm15, %v2135_v3  ;;  %v2136_v28 = vpack.c.bf16 %v1733_v2, %v1733_v2 }
 0x22f   : > { %1896 = vst.msk [vmem:[%s3183_s30 + $0x6c] sm:$0xf] %vm1868_vm15, %v2138_v38 }
 0x230   : > { %1894 = vst.msk [vmem:[%s3183_s30 + $0x64] sm:$0xf] %vm1868_vm15, %v2136_v28 }
 0x259   : > { %v2188_v31 = vpop.f32.mrb[12].mxu0 }
 0x25a   : > { %v1651_v44 = vmul.f32 %v2188_v31, %v3167_v30  ;;  %v1551_v7 = vpop.f32.mrb[13].mxu0 }
 0x25b   : > { %v1649_v62 = vmul.f32 %v3167_v30, %v1551_v7  ;;  %v2189_v0 = vpop.f32.mrb[14].mxu0 }
 0x25c   : > { %v1690_v61 = vadd.f32 %v3169_v22, %v1651_v44  ;;  %v1652_v15 = vmul.f32 %v2189_v0, %v3167_v30  ;;  %v1554_v33 = vpop.f32.mrb[15].mxu0 }
 0x25d   : > { %v1688_v42 = vadd.f32 %v3169_v22, %v1649_v62  ;;  %v1650_v35 = vmul.f32 %v3167_v30, %v1554_v33 }
 0x25e   : > { %v1722_v13 = vmax.f32 %v1690_v61, 0.0  ;;  %v1691_v14 = vadd.f32 %v3169_v22, %v1652_v15 }
 0x25f   : > { %v1720_v57 = vmax.f32 %v1688_v42, 0.0  ;;  %v1689_v55 = vadd.f32 %v3169_v22, %v1650_v35 }
 0x260   : > { %v2125_v36 = vpack.c.bf16 %v1722_v13, %v1722_v13  ;;  %v1723_v20 = vmax.f32 %v1691_v14, 0.0  ;;  %v2204_v6 = vpop.f32.mrb[12].mxu1 }
 0x261   : > { %v2123_v24 = vpack.c.bf16 %v1720_v57, %v1720_v57  ;;  %v1721_v17 = vmax.f32 %v1689_v55, 0.0  ;;  %v1667_v32 = vmul.f32 %v2204_v6, %v3167_v30  ;;  %v1615_v48 = vpop.f32.mrb[13].mxu1 }
 0x262   : > { %1883 = vst.msk [vmem:[%s3183_s30 + $0x38] sm:$0xf] %vm1868_vm15, %v2125_v36  ;;  %v2126_v41 = vpack.c.bf16 %v1723_v20, %v1723_v20  ;;  %v1665_v26 = vmul.f32 %v3167_v30, %v1615_v48  ;;  %v2205_v10 = vpop.f32.mrb[14].mxu1 }
 0x263   : > { %1881 = vst.msk [vmem:[%s3183_s30 + $0x30] sm:$0xf] %vm1868_vm15, %v2123_v24  ;;  %v2124_v50 = vpack.c.bf16 %v1721_v17, %v1721_v17  ;;  %v1706_v25 = vadd.f32 %v3169_v22, %v1667_v32  ;;  %v1668_v8 = vmul.f32 %v2205_v10, %v3167_v30  ;;  %v1618_v53 = vpop.f32.mrb[15].mxu1 }
 0x264   : > { %1884 = vst.msk [vmem:[%s3183_s30 + $0x3c] sm:$0xf] %vm1868_vm15, %v2126_v41  ;;  %v1704_v51 = vadd.f32 %v3169_v22, %v1665_v26  ;;  %v1666_v52 = vmul.f32 %v3167_v30, %v1618_v53 }
 0x265   : > { %1882 = vst.msk [vmem:[%s3183_s30 + $0x34] sm:$0xf] %vm1868_vm15, %v2124_v50  ;;  %v1738_v58 = vmax.f32 %v1706_v25, 0.0  ;;  %v1707_v9 = vadd.f32 %v3169_v22, %v1668_v8 }
 0x266   : > { %v1736_v47 = vmax.f32 %v1704_v51, 0.0  ;;  %v1705_v54 = vadd.f32 %v3169_v22, %v1666_v52 }
 0x267   : > { %v2141_v40 = vpack.c.bf16 %v1738_v58, %v1738_v58  ;;  %v1739_v45 = vmax.f32 %v1707_v9, 0.0 }
 0x268   : > { %v2139_v63 = vpack.c.bf16 %v1736_v47, %v1736_v47  ;;  %v1737_v23 = vmax.f32 %v1705_v54, 0.0 }
 0x269   : > { %1899 = vst.msk [vmem:[%s3183_s30 + $0x78] sm:$0xf] %vm1868_vm15, %v2141_v40  ;;  %v2142_v11 = vpack.c.bf16 %v1739_v45, %v1739_v45 }
 0x26a   : > { %1897 = vst.msk [vmem:[%s3183_s30 + $0x70] sm:$0xf] %vm1868_vm15, %v2139_v63  ;;  %v2140_v37 = vpack.c.bf16 %v1737_v23, %v1737_v23 }
 0x26b   : > { %1900 = vst.msk [vmem:[%s3183_s30 + $0x7c] sm:$0xf] %vm1868_vm15, %v2142_v11 }
 0x26c   : > { %1898 = vst.msk [vmem:[%s3183_s30 + $0x74] sm:$0xf] %vm1868_vm15, %v2140_v37 }
 0x26d PF: > { %s14_s19 = sadd.s32 1, %s2327_s19   ;;  %s3328_s15 = smov %s2319_s17 }
 0x26e   : > { %p11_p7 = scmp.ge.s32.totalorder %s14_s19, 6   ;;  %s3329_s16 = smov %s2323_s18 }
 0x26f   : > { %s3330_s17 = smov %s3333_s20  ;;  %s3331_s18 = smov %s3337_s21 }
 0x270   :  { %13 = sbr.rel (!%p11_p7) target bundleno = 3 (0x3), region = 75 }

</bundles_post_ra>
